<compile_context>
chip_gen: v7x
topology: tpu7x:2x2x1
jax: 0.10.0
libtpu: 0.0.40
codegen_flags: <defaults>
</compile_context>

<pallas_src>
import functools
import math

import jax
import jax.numpy as jnp
from jax import lax
from jax.experimental import pallas as pl
from jax.experimental.pallas import tpu as pltpu


_VMEM_FALLBACK_BYTES = 48 * 1024 * 1024


@functools.lru_cache(maxsize=1)
def _vmem_limit_bytes():
    """Generation-aware VMEM budget: ~7/8 of physical VMEM, conservative fallback."""
    try:
        cap = int(pltpu.get_tpu_info().vmem_capacity_bytes)
        return max(cap * 7 // 8, 16 * 1024 * 1024)
    except Exception:
        return _VMEM_FALLBACK_BYTES


# ---------------------------------------------------------------------------
# In-kernel helpers
# ---------------------------------------------------------------------------

def _maxk_threshold(acc, k, d_valid):
    """Per-row threshold after k selection rounds over acc[:, :d_valid] (f32).

    Each round removes ALL occurrences of the current row max (k XLU reductions total,
    no lane-index bookkeeping).
    # TODO(synk): torch.topk+scatter keeps exactly k entries on exact float ties; this
    #             threshold form keeps >= k (matches lax.top_k thresholding for distinct
    #             values and only differs on exact ties, essentially never after an f32
    #             matmul).
    """
    tm, d = acc.shape
    neg = jnp.finfo(acc.dtype).min
    if d_valid < d:
        lane = lax.broadcasted_iota(jnp.int32, (tm, d), 1)
        work = jnp.where(lane < d_valid, acc, neg)   # exclude padded lanes
    else:
        work = acc
    thr = jnp.full((tm, 1), neg, acc.dtype)
    for _ in range(k):                                # k is a small static constant
        thr = jnp.max(work, axis=-1, keepdims=True)   # current row max (XLU)
        work = jnp.where(work == thr, neg, work)      # drop all occurrences (VPU)
    return thr


def _maxk_store(acc, out_ref, *, k, d_valid, slab_rows=128):
    """Write maxk(acc) into out_ref, processing row slabs to bound vreg pressure."""
    tm = acc.shape[0]
    for r in range(0, tm, slab_rows):
        blk = acc[r:r + slab_rows]
        thr = _maxk_threshold(blk, k, d_valid)
        out_ref[r:r + slab_rows, :] = jnp.where(blk >= thr, blk, 0.0).astype(out_ref.dtype)


# ---------------------------------------------------------------------------
# Pallas kernels
# ---------------------------------------------------------------------------

def _linear_kernel(x_ref, w_ref, b_ref, *out_refs, k, d_valid, emit_maxk, compute_dtype):
    """o = x @ w + b ; optionally also emit maxk(o) as a fused second output."""
    acc = jnp.dot(x_ref[...].astype(compute_dtype), w_ref[...],
                  preferred_element_type=jnp.float32)
    acc = acc + b_ref[...]                            # bias / epilogue stay in f32
    out_refs[0][...] = acc.astype(out_refs[0].dtype)
    if emit_maxk:
        _maxk_store(acc, out_refs[1], k=k, d_valid=d_valid)


def _sage_combine_kernel(h_ref, n_ref, ws_ref, wn_ref, b_ref, *out_refs,
                         k, d_valid, emit_maxk, compute_dtype):
    """o = h @ ws + n @ wn + b ; optionally also emit maxk(o) (next layer's input)."""
    acc = jnp.dot(h_ref[...].astype(compute_dtype), ws_ref[...],
                  preferred_element_type=jnp.float32)
    acc = acc + jnp.dot(n_ref[...].astype(compute_dtype), wn_ref[...],
                        preferred_element_type=jnp.float32)
    acc = acc + b_ref[...]
    out_refs[0][...] = acc.astype(out_refs[0].dtype)
    if emit_maxk:
        _maxk_store(acc, out_refs[1], k=k, d_valid=d_valid)


def _spmm_kernel(a_ref, h_ref, inv_ref, o_ref, *scratch, compute_dtype):
    """o = diag(inv_deg) @ (A01 @ h), K-tiled; 1/deg applied in the f32 finalize.

    The f32 output block is VMEM-resident across the reduction axis, so we accumulate
    directly into it; a scratch accumulator is only used when storing bf16 outputs.
    """
    acc_ref = scratch[0] if scratch else o_ref

    @pl.when(pl.program_id(1) == 0)
    def _():
        acc_ref[...] = jnp.zeros_like(acc_ref)

    acc_ref[...] += jnp.dot(a_ref[...].astype(compute_dtype),
                            h_ref[...].astype(compute_dtype),
                            preferred_element_type=jnp.float32)

    @pl.when(pl.program_id(1) == pl.num_programs(1) - 1)
    def _():
        o_ref[...] = (acc_ref[...] * inv_ref[...]).astype(o_ref.dtype)


# ---------------------------------------------------------------------------
# pallas_call wrappers (inputs must already be tile-aligned / lane-padded)
# ---------------------------------------------------------------------------

def _check_aligned(name, val, mult):
    if val % mult != 0:
        raise ValueError(f"{name}={val} must be a multiple of {mult}")


def pallas_linear(x, w_t, b_row, *, tm=256, emit_maxk=False, k=1, d_valid=None,
                  compute_dtype=jnp.float32, out_dtype=jnp.float32):
    """x: [M, K], w_t: [K, N] (compute_dtype), b_row: [1, N] (f32)."""
    M, K = x.shape
    Kw, N = w_t.shape
    assert Kw == K
    _check_aligned("M", M, tm)
    _check_aligned("K", K, 128)
    _check_aligned("N", N, 128)
    if d_valid is None:
        d_valid = N

    n_out = 2 if emit_maxk else 1
    kern = functools.partial(_linear_kernel, k=k, d_valid=d_valid,
                             emit_maxk=emit_maxk, compute_dtype=compute_dtype)
    outs = pl.pallas_call(
        kern,
        out_shape=tuple(jax.ShapeDtypeStruct((M, N), out_dtype) for _ in range(n_out)),
        grid=(M // tm,),
        in_specs=[
            pl.BlockSpec((tm, K), lambda i: (i, 0)),
            pl.BlockSpec((K, N), lambda i: (0, 0)),
            pl.BlockSpec((1, N), lambda i: (0, 0)),
        ],
        out_specs=tuple(pl.BlockSpec((tm, N), lambda i: (i, 0)) for _ in range(n_out)),
        compiler_params=pltpu.CompilerParams(
            dimension_semantics=("parallel",),
            vmem_limit_bytes=_vmem_limit_bytes()),
    )(x, w_t, b_row)
    return (outs[0], outs[1]) if emit_maxk else outs[0]


def pallas_sage_combine(h, h_neigh, ws_t, wn_t, b_row, *, tm=256, emit_maxk=False,
                        k=1, d_valid=None, compute_dtype=jnp.float32,
                        out_dtype=jnp.float32):
    """fc_self(h) + fc_neigh(h_neigh) + bias, optionally fused with the next MaxK."""
    M, K = h.shape
    Kw, N = ws_t.shape
    assert h_neigh.shape == (M, K) and wn_t.shape == (K, N) and Kw == K
    _check_aligned("M", M, tm)
    _check_aligned("K", K, 128)
    _check_aligned("N", N, 128)
    if d_valid is None:
        d_valid = N

    n_out = 2 if emit_maxk else 1
    kern = functools.partial(_sage_combine_kernel, k=k, d_valid=d_valid,
                             emit_maxk=emit_maxk, compute_dtype=compute_dtype)
    outs = pl.pallas_call(
        kern,
        out_shape=tuple(jax.ShapeDtypeStruct((M, N), out_dtype) for _ in range(n_out)),
        grid=(M // tm,),
        in_specs=[
            pl.BlockSpec((tm, K), lambda i: (i, 0)),
            pl.BlockSpec((tm, K), lambda i: (i, 0)),
            pl.BlockSpec((K, N), lambda i: (0, 0)),
            pl.BlockSpec((K, N), lambda i: (0, 0)),
            pl.BlockSpec((1, N), lambda i: (0, 0)),
        ],
        out_specs=tuple(pl.BlockSpec((tm, N), lambda i: (i, 0)) for _ in range(n_out)),
        compiler_params=pltpu.CompilerParams(
            dimension_semantics=("parallel",),
            vmem_limit_bytes=_vmem_limit_bytes()),
    )(h, h_neigh, ws_t, wn_t, b_row)
    return (outs[0], outs[1]) if emit_maxk else outs[0]


def pallas_spmm(a, h, inv_deg, *, tm=512, tk=512, compute_dtype=jnp.float32,
                out_dtype=jnp.float32):
    """Mean aggregation: diag(inv_deg) @ (A01 @ h).

    a: [M, K] exact 0/1 adjacency in a narrow dtype (bf16 / int8 / fp8), widened
    in-kernel; h: [K, D] activations; inv_deg: [M, 1] f32 applied in the finalize.
    Reduction axis last ('arbitrary'); f32 accumulation.
    """
    M, K = a.shape
    Kh, D = h.shape
    assert K == Kh and inv_deg.shape == (M, 1)
    _check_aligned("M", M, tm)
    _check_aligned("K", K, tk)
    _check_aligned("D", D, 128)

    use_scratch = jnp.dtype(out_dtype) != jnp.dtype(jnp.float32)
    scratch = [pltpu.VMEM((tm, D), jnp.float32)] if use_scratch else []
    # TODO(synk): for real sparse graphs, add block-sparsity skipping (per-(i,kk)
    #             nonzero-tile map via PrefetchScalarGridSpec remapping kk).
    kern = functools.partial(_spmm_kernel, compute_dtype=compute_dtype)
    return pl.pallas_call(
        kern,
        out_shape=jax.ShapeDtypeStruct((M, D), out_dtype),
        grid=(M // tm, K // tk),                       # reduction axis last
        in_specs=[
            pl.BlockSpec((tm, tk), lambda i, kk: (i, kk)),
            pl.BlockSpec((tk, D), lambda i, kk: (kk, 0)),
            pl.BlockSpec((tm, 1), lambda i, kk: (i, 0)),
        ],
        out_specs=pl.BlockSpec((tm, D), lambda i, kk: (i, 0)),
        scratch_shapes=scratch,
        compiler_params=pltpu.CompilerParams(
            dimension_semantics=("parallel", "arbitrary"),
            vmem_limit_bytes=_vmem_limit_bytes()),
    )(a, h, inv_deg)


# ---------------------------------------------------------------------------
# Model: parameter init, one-time prep (hoisted out of the jit), forward
# ---------------------------------------------------------------------------

def _round_up(x, m):
    return ((x + m - 1) // m) * m


def _pad2d(x, rows, cols):
    pr, pc = rows - x.shape[0], cols - x.shape[1]
    if pr == 0 and pc == 0:
        return x
    return jnp.pad(x, ((0, pr), (0, pc)))


def _xavier_uniform(key, out_dim, in_dim, dtype=jnp.float32):
    bound = (6.0 / (in_dim + out_dim)) ** 0.5
    return jax.random.uniform(key, (out_dim, in_dim), dtype, -bound, bound)


def init_maxk_sage_params(key, in_size, hid_size, num_hid_layers, out_size):
    keys = jax.random.split(key, 4 + 4 * num_hid_layers)
    params = {
        "w_in": _xavier_uniform(keys[0], hid_size, in_size),
        "b_in": jax.random.uniform(keys[1], (hid_size,), jnp.float32, -0.1, 0.1),
        "w_out": _xavier_uniform(keys[2], out_size, hid_size),
        "b_out": jax.random.uniform(keys[3], (out_size,), jnp.float32, -0.1, 0.1),
        "layers": [],
    }
    for i in range(num_hid_layers):
        kk = keys[4 + 4 * i: 8 + 4 * i]
        params["layers"].append({
            "w_self": _xavier_uniform(kk[0], hid_size, hid_size),
            "b_self": jax.random.uniform(kk[1], (hid_size,), jnp.float32, -0.1, 0.1),
            "w_neigh": _xavier_uniform(kk[2], hid_size, hid_size),
            "b_neigh": jax.random.uniform(kk[3], (hid_size,), jnp.float32, -0.1, 0.1),
        })
    return params


def _clamp_tiles(n_nodes, tm_dense, tm_spmm, tk_spmm):
    """Shrink (power-of-two) tile sizes so the 'parallel' row axis has >= 2 grid steps
    on small graphs (keeps both v7x TensorCores busy) without over-padding rows."""
    def fit(t):
        while t > 128 and _round_up(n_nodes, t) // t < 2:
            t //= 2
        return t
    return fit(tm_dense), fit(tm_spmm), fit(tk_spmm)


def prepare_maxk_sage(params, adj, *, maxk, tm_dense=256, tm_spmm=512, tk_spmm=512,
                      compute_dtype=jnp.float32, adj_dtype=jnp.bfloat16):
    """One-time host-side prep (hoisted out of the per-call forward):
      * exact 0/1 adjacency stored in a narrow dtype + per-row 1/deg (f32) vector
        (int8 on v5e/v6e or fp8 on v7x further shrink the dominant HBM stream),
      * weights transposed / lane-padded / cast to the MXU compute dtype,
      * tile sizes validated (must nest) and clamped for tiny graphs.
    `adj` is the binary adjacency of graph g (row i = in-neighbors of node i).
    Returns (tensors, cfg): a pytree of device arrays plus a static config dict.
    """
    n = adj.shape[0]
    in_size = params["w_in"].shape[1]
    hid = params["w_in"].shape[0]
    out_size = params["w_out"].shape[0]

    tm_dense, tm_spmm, tk_spmm = _clamp_tiles(n, tm_dense, tm_spmm, tk_spmm)
    for name, t in (("tm_dense", tm_dense), ("tm_spmm", tm_spmm), ("tk_spmm", tk_spmm)):
        _check_aligned(name, t, 128)
    row_mult = math.lcm(tm_dense, tm_spmm, tk_spmm)
    if row_mult != max(tm_dense, tm_spmm, tk_spmm):
        raise ValueError("tile sizes must nest (each must divide the largest) to avoid "
                         "row over-padding")

    Np = _round_up(n, row_mult)
    Ip = _round_up(in_size, 128)
    Hp = _round_up(hid, 128)
    Op = _round_up(out_size, 128)

    f32 = jnp.float32
    adj01 = (adj != 0).astype(f32)
    deg = jnp.sum(adj01, axis=1, keepdims=True)
    inv_deg = jnp.where(deg > 0, 1.0 / jnp.maximum(deg, 1.0), 0.0).astype(f32)

    tensors = {
        "adj": _pad2d(adj01, Np, Np).astype(adj_dtype),     # 0/1: exact in bf16/int8/fp8
        "inv_deg": _pad2d(inv_deg, Np, 1),                  # f32, applied in SpMM finalize
        "w_in": _pad2d(params["w_in"].T.astype(f32), Ip, Hp).astype(compute_dtype),
        "b_in": jnp.pad(params["b_in"].astype(f32), (0, Hp - hid))[None, :],
        "w_out": _pad2d(params["w_out"].T.astype(f32), Hp, Op).astype(compute_dtype),
        "b_out": jnp.pad(params["b_out"].astype(f32), (0, Op - out_size))[None, :],
        "layers": [],
    }
    for layer in params["layers"]:
        tensors["layers"].append({
            "w_self": _pad2d(layer["w_self"].T.astype(f32), Hp, Hp).astype(compute_dtype),
            "w_neigh": _pad2d(layer["w_neigh"].T.astype(f32), Hp, Hp).astype(compute_dtype),
            "b": jnp.pad((layer["b_self"] + layer["b_neigh"]).astype(f32),
                         (0, Hp - hid))[None, :],
        })

    cfg = dict(n_nodes=n, in_size=in_size, hid=hid, out_size=out_size,
               Np=Np, Ip=Ip, maxk=maxk,
               tm_dense=tm_dense, tm_spmm=tm_spmm, tk_spmm=tk_spmm,
               compute_dtype=compute_dtype)
    return tensors, cfg


def maxk_sage_forward(tensors, x, *, cfg):
    """Full MaxKSAGE forward on pre-padded parameters/adjacency. Pads x, runs all
    layers in the padded lane-dense domain, slices the result back at the end."""
    n, out_size, hid = cfg["n_nodes"], cfg["out_size"], cfg["hid"]
    Np, Ip, maxk = cfg["Np"], cfg["Ip"], cfg["maxk"]
    tm_d, tm_s, tk_s = cfg["tm_dense"], cfg["tm_spmm"], cfg["tk_spmm"]
    cdt = cfg["compute_dtype"]
    act_dtype = cdt            # bf16 mode also *stores* activations in bf16 (f32 acc/bias/MaxK)
    num_layers = len(tensors["layers"])

    xp = _pad2d(x.astype(jnp.float32), Np, Ip)

    # lin_in, fused with the first layer's MaxK nonlinearity.
    res = pallas_linear(xp, tensors["w_in"], tensors["b_in"], tm=tm_d,
                        emit_maxk=(num_layers > 0), k=maxk, d_valid=hid,
                        compute_dtype=cdt, out_dtype=act_dtype)
    if num_layers > 0:
        h, h_k = res
    else:
        h = res

    # Hidden MaxKSAGEConv layers (feat_drop = identity in eval; norm=False).
    for i, layer in enumerate(tensors["layers"]):
        last = i == num_layers - 1
        h_neigh = pallas_spmm(tensors["adj"], h_k, tensors["inv_deg"],
                              tm=tm_s, tk=tk_s, compute_dtype=cdt, out_dtype=act_dtype)
        res = pallas_sage_combine(h, h_neigh, layer["w_self"], layer["w_neigh"],
                                  layer["b"], tm=tm_d, emit_maxk=(not last),
                                  k=maxk, d_valid=hid,
                                  compute_dtype=cdt, out_dtype=act_dtype)
        if not last:
            h, h_k = res
        else:
            h = res

    out = pallas_linear(h, tensors["w_out"], tensors["b_out"], tm=tm_d,
                        emit_maxk=False, compute_dtype=cdt, out_dtype=jnp.float32)
    return out[:n, :out_size]


def reference_forward(params, a_norm, x, *, maxk):
    """Pure-JAX reference with identical semantics (sanity check)."""
    h = x @ params["w_in"].T + params["b_in"]
    for layer in params["layers"]:
        thr = lax.top_k(h, maxk)[0][:, -1:]
        h_k = jnp.where(h >= thr, h, 0.0)
        h_neigh = a_norm @ h_k
        h = (h @ layer["w_self"].T + layer["b_self"]
             + h_neigh @ layer["w_neigh"].T + layer["b_neigh"])
    return h @ params["w_out"].T + params["b_out"]


# ---------------------------------------------------------------------------
# Main
# ---------------------------------------------------------------------------

if __name__ == "__main__":
    # Small, deliberately non-aligned config (tiles auto-clamp to 128, lanes pad to 128).
    IN_SIZE, HID_SIZE, NUM_HID_LAYERS, OUT_SIZE, MAXK = 48, 64, 2, 16, 8
    N_NODES = 200

    root = jax.random.PRNGKey(0)
    k_graph, k_feat, k_params = jax.random.split(root, 3)

    # Dense random 0/1 graph with self loops (deg >= 1); mean aggregator = row-normalized.
    adj = (jax.random.uniform(k_graph, (N_NODES, N_NODES)) < 0.15).astype(jnp.float32)
    adj = adj.at[jnp.arange(N_NODES), jnp.arange(N_NODES)].set(1.0)
    a_norm = adj / jnp.sum(adj, axis=1, keepdims=True)

    x = jax.random.normal(k_feat, (N_NODES, IN_SIZE), jnp.float32)
    params = init_maxk_sage_params(k_params, IN_SIZE, HID_SIZE, NUM_HID_LAYERS, OUT_SIZE)
    ref = reference_forward(params, a_norm, x, maxk=MAXK)

    # --- f32 compute path (exact 0/1 adjacency in bf16 + f32 1/deg epilogue) ---
    tensors, cfg = prepare_maxk_sage(params, adj, maxk=MAXK)      # one-time prep (hoisted)
    fwd_f32 = jax.jit(functools.partial(maxk_sage_forward, cfg=cfg))
    out = jax.block_until_ready(fwd_f32(tensors, x))
    assert out.shape == (N_NODES, OUT_SIZE)
    assert bool(jnp.all(jnp.isfinite(out)))
    assert bool(jnp.allclose(out, ref, rtol=1e-2, atol=1e-2))

    # --- bf16 MXU path (v6e/v7x): bf16 dot inputs + bf16 activation storage,
    #     f32 accumulation / bias / MaxK threshold / 1-deg scaling ---
    tensors_bf, cfg_bf = prepare_maxk_sage(params, adj, maxk=MAXK,
                                           compute_dtype=jnp.bfloat16)
    fwd_bf16 = jax.jit(functools.partial(maxk_sage_forward, cfg=cfg_bf))
    out_bf16 = jax.block_until_ready(fwd_bf16(tensors_bf, x))
    assert bool(jnp.all(jnp.isfinite(out_bf16)))
    assert float(jnp.mean(jnp.abs(out_bf16 - ref))) < 0.2

    print("KERNEL_OK")
</pallas_src>

<mosaic_0001>
module attributes {stable_mosaic.version = 11 : i64} {
  func.func @_linear_kernel(%arg0: i32, %arg1: memref<128x128xf32, #tpu.memory_space<vmem>>, %arg2: memref<128x128xf32, #tpu.memory_space<vmem>>, %arg3: memref<1x128xf32, #tpu.memory_space<vmem>>, %arg4: memref<128x128xf32, #tpu.memory_space<vmem>>, %arg5: memref<128x128xf32, #tpu.memory_space<vmem>>) attributes {dimension_semantics = [#tpu.dimension_semantics<parallel>], iteration_bounds = array<i64: 2>, scalar_prefetch = 0 : i64, scratch_operands = 0 : i64, tpu.core_type = #tpu.core_type<tc>, window_params = [{transform_indices = @transform_0, window_bounds = array<i64: 128, 128>}, {pipeline_mode = #tpu.pipeline_mode<synchronous>, transform_indices = @transform_1, window_bounds = array<i64: 128, 128>}, {pipeline_mode = #tpu.pipeline_mode<synchronous>, transform_indices = @transform_2, window_bounds = array<i64: 1, 128>}, {transform_indices = @transform_3, window_bounds = array<i64: 128, 128>}, {transform_indices = @transform_4, window_bounds = array<i64: 128, 128>}]} {
    %c0 = arith.constant 0 : index
    %c0_0 = arith.constant 0 : index
    %0 = vector.load %arg1[%c0, %c0_0] : memref<128x128xf32, #tpu.memory_space<vmem>>, vector<128x128xf32>
    %c0_1 = arith.constant 0 : index
    %c0_2 = arith.constant 0 : index
    %1 = vector.load %arg2[%c0_1, %c0_2] : memref<128x128xf32, #tpu.memory_space<vmem>>, vector<128x128xf32>
    %cst = arith.constant dense<0.000000e+00> : vector<128x128xf32>
    %2 = tpu.matmul %0, %1, %cst {dimension_numbers = #tpu.dot_dimension_numbers<[1], [0], [0], [1], [0, 0, 1, 1], [], []>} : vector<128x128xf32>, vector<128x128xf32>, vector<128x128xf32> -> vector<128x128xf32>
    %c0_3 = arith.constant 0 : index
    %c0_4 = arith.constant 0 : index
    %3 = vector.load %arg3[%c0_3, %c0_4] : memref<1x128xf32, #tpu.memory_space<vmem>>, vector<1x128xf32>
    %4 = vector.broadcast %3 : vector<1x128xf32> to vector<128x128xf32>
    %5 = arith.addf %2, %4 : vector<128x128xf32>
    %c0_5 = arith.constant 0 : index
    %c0_6 = arith.constant 0 : index
    %6 = vector.load %arg4[%c0_5, %c0_6] : memref<128x128xf32, #tpu.memory_space<vmem>>, vector<128x128xf32>
    tpu.vector_store %arg4[%c0_5, %c0_6], %5 {strides = array<i32>} : memref<128x128xf32, #tpu.memory_space<vmem>>, vector<128x128xf32>,
    %7 = tpu.iota {dimensions = array<i32: 1>} : vector<128x128xi32>
    %c64_i32 = arith.constant 64 : i32
    %8 = vector.broadcast %c64_i32 : i32 to vector<128x128xi32>
    %9 = arith.cmpi slt, %7, %8 : vector<128x128xi32>
    %cst_7 = arith.constant -3.40282347E+38 : f32
    %10 = vector.broadcast %cst_7 : f32 to vector<128x128xf32>
    %11 = arith.select %9, %5, %10 : vector<128x128xi1>, vector<128x128xf32>
    %cst_8 = arith.constant dense<0xFF800000> : vector<128xf32>
    %12 = vector.multi_reduction <maximumf>, %11, %cst_8 [1] : vector<128x128xf32> to vector<128xf32>
    %13 = vector.shape_cast %12 : vector<128xf32> to vector<128x1xf32>
    %14 = vector.broadcast %13 : vector<128x1xf32> to vector<128x128xf32>
    %15 = arith.cmpf oeq, %11, %14 : vector<128x128xf32>
    %cst_9 = arith.constant -3.40282347E+38 : f32
    %16 = vector.broadcast %cst_9 : f32 to vector<128x128xf32>
    %17 = arith.select %15, %16, %11 : vector<128x128xi1>, vector<128x128xf32>
    %cst_10 = arith.constant dense<0xFF800000> : vector<128xf32>
    %18 = vector.multi_reduction <maximumf>, %17, %cst_10 [1] : vector<128x128xf32> to vector<128xf32>
    %19 = vector.shape_cast %18 : vector<128xf32> to vector<128x1xf32>
    %20 = vector.broadcast %19 : vector<128x1xf32> to vector<128x128xf32>
    %21 = arith.cmpf oeq, %17, %20 : vector<128x128xf32>
    %cst_11 = arith.constant -3.40282347E+38 : f32
    %22 = vector.broadcast %cst_11 : f32 to vector<128x128xf32>
    %23 = arith.select %21, %22, %17 : vector<128x128xi1>, vector<128x128xf32>
    %cst_12 = arith.constant dense<0xFF800000> : vector<128xf32>
    %24 = vector.multi_reduction <maximumf>, %23, %cst_12 [1] : vector<128x128xf32> to vector<128xf32>
    %25 = vector.shape_cast %24 : vector<128xf32> to vector<128x1xf32>
    %26 = vector.broadcast %25 : vector<128x1xf32> to vector<128x128xf32>
    %27 = arith.cmpf oeq, %23, %26 : vector<128x128xf32>
    %cst_13 = arith.constant -3.40282347E+38 : f32
    %28 = vector.broadcast %cst_13 : f32 to vector<128x128xf32>
    %29 = arith.select %27, %28, %23 : vector<128x128xi1>, vector<128x128xf32>
    %cst_14 = arith.constant dense<0xFF800000> : vector<128xf32>
    %30 = vector.multi_reduction <maximumf>, %29, %cst_14 [1] : vector<128x128xf32> to vector<128xf32>
    %31 = vector.shape_cast %30 : vector<128xf32> to vector<128x1xf32>
    %32 = vector.broadcast %31 : vector<128x1xf32> to vector<128x128xf32>
    %33 = arith.cmpf oeq, %29, %32 : vector<128x128xf32>
    %cst_15 = arith.constant -3.40282347E+38 : f32
    %34 = vector.broadcast %cst_15 : f32 to vector<128x128xf32>
    %35 = arith.select %33, %34, %29 : vector<128x128xi1>, vector<128x128xf32>
    %cst_16 = arith.constant dense<0xFF800000> : vector<128xf32>
    %36 = vector.multi_reduction <maximumf>, %35, %cst_16 [1] : vector<128x128xf32> to vector<128xf32>
    %37 = vector.shape_cast %36 : vector<128xf32> to vector<128x1xf32>
    %38 = vector.broadcast %37 : vector<128x1xf32> to vector<128x128xf32>
    %39 = arith.cmpf oeq, %35, %38 : vector<128x128xf32>
    %cst_17 = arith.constant -3.40282347E+38 : f32
    %40 = vector.broadcast %cst_17 : f32 to vector<128x128xf32>
    %41 = arith.select %39, %40, %35 : vector<128x128xi1>, vector<128x128xf32>
    %cst_18 = arith.constant dense<0xFF800000> : vector<128xf32>
    %42 = vector.multi_reduction <maximumf>, %41, %cst_18 [1] : vector<128x128xf32> to vector<128xf32>
    %43 = vector.shape_cast %42 : vector<128xf32> to vector<128x1xf32>
    %44 = vector.broadcast %43 : vector<128x1xf32> to vector<128x128xf32>
    %45 = arith.cmpf oeq, %41, %44 : vector<128x128xf32>
    %cst_19 = arith.constant -3.40282347E+38 : f32
    %46 = vector.broadcast %cst_19 : f32 to vector<128x128xf32>
    %47 = arith.select %45, %46, %41 : vector<128x128xi1>, vector<128x128xf32>
    %cst_20 = arith.constant dense<0xFF800000> : vector<128xf32>
    %48 = vector.multi_reduction <maximumf>, %47, %cst_20 [1] : vector<128x128xf32> to vector<128xf32>
    %49 = vector.shape_cast %48 : vector<128xf32> to vector<128x1xf32>
    %50 = vector.broadcast %49 : vector<128x1xf32> to vector<128x128xf32>
    %51 = arith.cmpf oeq, %47, %50 : vector<128x128xf32>
    %cst_21 = arith.constant -3.40282347E+38 : f32
    %52 = vector.broadcast %cst_21 : f32 to vector<128x128xf32>
    %53 = arith.select %51, %52, %47 : vector<128x128xi1>, vector<128x128xf32>
    %cst_22 = arith.constant dense<0xFF800000> : vector<128xf32>
    %54 = vector.multi_reduction <maximumf>, %53, %cst_22 [1] : vector<128x128xf32> to vector<128xf32>
    %55 = vector.shape_cast %54 : vector<128xf32> to vector<128x1xf32>
    %56 = vector.broadcast %55 : vector<128x1xf32> to vector<128x128xf32>
    %57 = arith.cmpf oge, %5, %56 : vector<128x128xf32>
    %cst_23 = arith.constant 0.000000e+00 : f32
    %58 = vector.broadcast %cst_23 : f32 to vector<128x128xf32>
    %59 = arith.select %57, %5, %58 : vector<128x128xi1>, vector<128x128xf32>
    %c0_24 = arith.constant 0 : index
    %c0_25 = arith.constant 0 : index
    %60 = vector.load %arg5[%c0_24, %c0_25] : memref<128x128xf32, #tpu.memory_space<vmem>>, vector<128x128xf32>
    tpu.vector_store %arg5[%c0_24, %c0_25], %59 {strides = array<i32>} : memref<128x128xf32, #tpu.memory_space<vmem>>, vector<128x128xf32>,
    return
  }
  func.func @transform_0(%arg0: i32) -> (i32, i32) {
    %c0_i32 = arith.constant 0 : i32
    %c0_i32_0 = arith.constant 0 : i32
    return %arg0, %c0_i32 : i32, i32
  }
  func.func @transform_1(%arg0: i32) -> (i32, i32) {
    %c0_i32 = arith.constant 0 : i32
    %c0_i32_0 = arith.constant 0 : i32
    %c0_i32_1 = arith.constant 0 : i32
    return %c0_i32, %c0_i32_0 : i32, i32
  }
  func.func @transform_2(%arg0: i32) -> (i32, i32) {
    %c0_i32 = arith.constant 0 : i32
    %c0_i32_0 = arith.constant 0 : i32
    %c0_i32_1 = arith.constant 0 : i32
    return %c0_i32, %c0_i32_0 : i32, i32
  }
  func.func @transform_3(%arg0: i32) -> (i32, i32) {
    %c0_i32 = arith.constant 0 : i32
    %c0_i32_0 = arith.constant 0 : i32
    return %arg0, %c0_i32 : i32, i32
  }
  func.func @transform_4(%arg0: i32) -> (i32, i32) {
    %c0_i32 = arith.constant 0 : i32
    %c0_i32_0 = arith.constant 0 : i32
    return %arg0, %c0_i32 : i32, i32
  }
}

module attributes {stable_mosaic.version = 11 : i64} {
  func.func @_sage_combine_kernel(%arg0: i32, %arg1: memref<128x128xf32, #tpu.memory_space<vmem>>, %arg2: memref<128x128xf32, #tpu.memory_space<vmem>>, %arg3: memref<128x128xf32, #tpu.memory_space<vmem>>, %arg4: memref<128x128xf32, #tpu.memory_space<vmem>>, %arg5: memref<1x128xf32, #tpu.memory_space<vmem>>, %arg6: memref<128x128xf32, #tpu.memory_space<vmem>>, %arg7: memref<128x128xf32, #tpu.memory_space<vmem>>) attributes {dimension_semantics = [#tpu.dimension_semantics<parallel>], iteration_bounds = array<i64: 2>, scalar_prefetch = 0 : i64, scratch_operands = 0 : i64, tpu.core_type = #tpu.core_type<tc>, window_params = [{transform_indices = @transform_0, window_bounds = array<i64: 128, 128>}, {transform_indices = @transform_1, window_bounds = array<i64: 128, 128>}, {pipeline_mode = #tpu.pipeline_mode<synchronous>, transform_indices = @transform_2, window_bounds = array<i64: 128, 128>}, {pipeline_mode = #tpu.pipeline_mode<synchronous>, transform_indices = @transform_3, window_bounds = array<i64: 128, 128>}, {pipeline_mode = #tpu.pipeline_mode<synchronous>, transform_indices = @transform_4, window_bounds = array<i64: 1, 128>}, {transform_indices = @transform_5, window_bounds = array<i64: 128, 128>}, {transform_indices = @transform_6, window_bounds = array<i64: 128, 128>}]} {
    %c0 = arith.constant 0 : index
    %c0_0 = arith.constant 0 : index
    %0 = vector.load %arg1[%c0, %c0_0] : memref<128x128xf32, #tpu.memory_space<vmem>>, vector<128x128xf32>
    %c0_1 = arith.constant 0 : index
    %c0_2 = arith.constant 0 : index
    %1 = vector.load %arg3[%c0_1, %c0_2] : memref<128x128xf32, #tpu.memory_space<vmem>>, vector<128x128xf32>
    %cst = arith.constant dense<0.000000e+00> : vector<128x128xf32>
    %2 = tpu.matmul %0, %1, %cst {dimension_numbers = #tpu.dot_dimension_numbers<[1], [0], [0], [1], [0, 0, 1, 1], [], []>} : vector<128x128xf32>, vector<128x128xf32>, vector<128x128xf32> -> vector<128x128xf32>
    %c0_3 = arith.constant 0 : index
    %c0_4 = arith.constant 0 : index
    %3 = vector.load %arg2[%c0_3, %c0_4] : memref<128x128xf32, #tpu.memory_space<vmem>>, vector<128x128xf32>
    %c0_5 = arith.constant 0 : index
    %c0_6 = arith.constant 0 : index
    %4 = vector.load %arg4[%c0_5, %c0_6] : memref<128x128xf32, #tpu.memory_space<vmem>>, vector<128x128xf32>
    %cst_7 = arith.constant dense<0.000000e+00> : vector<128x128xf32>
    %5 = tpu.matmul %3, %4, %cst_7 {dimension_numbers = #tpu.dot_dimension_numbers<[1], [0], [0], [1], [0, 0, 1, 1], [], []>} : vector<128x128xf32>, vector<128x128xf32>, vector<128x128xf32> -> vector<128x128xf32>
    %6 = arith.addf %2, %5 : vector<128x128xf32>
    %c0_8 = arith.constant 0 : index
    %c0_9 = arith.constant 0 : index
    %7 = vector.load %arg5[%c0_8, %c0_9] : memref<1x128xf32, #tpu.memory_space<vmem>>, vector<1x128xf32>
    %8 = vector.broadcast %7 : vector<1x128xf32> to vector<128x128xf32>
    %9 = arith.addf %6, %8 : vector<128x128xf32>
    %c0_10 = arith.constant 0 : index
    %c0_11 = arith.constant 0 : index
    %10 = vector.load %arg6[%c0_10, %c0_11] : memref<128x128xf32, #tpu.memory_space<vmem>>, vector<128x128xf32>
    tpu.vector_store %arg6[%c0_10, %c0_11], %9 {strides = array<i32>} : memref<128x128xf32, #tpu.memory_space<vmem>>, vector<128x128xf32>,
    %11 = tpu.iota {dimensions = array<i32: 1>} : vector<128x128xi32>
    %c64_i32 = arith.constant 64 : i32
    %12 = vector.broadcast %c64_i32 : i32 to vector<128x128xi32>
    %13 = arith.cmpi slt, %11, %12 : vector<128x128xi32>
    %cst_12 = arith.constant -3.40282347E+38 : f32
    %14 = vector.broadcast %cst_12 : f32 to vector<128x128xf32>
    %15 = arith.select %13, %9, %14 : vector<128x128xi1>, vector<128x128xf32>
    %cst_13 = arith.constant dense<0xFF800000> : vector<128xf32>
    %16 = vector.multi_reduction <maximumf>, %15, %cst_13 [1] : vector<128x128xf32> to vector<128xf32>
    %17 = vector.shape_cast %16 : vector<128xf32> to vector<128x1xf32>
    %18 = vector.broadcast %17 : vector<128x1xf32> to vector<128x128xf32>
    %19 = arith.cmpf oeq, %15, %18 : vector<128x128xf32>
    %cst_14 = arith.constant -3.40282347E+38 : f32
    %20 = vector.broadcast %cst_14 : f32 to vector<128x128xf32>
    %21 = arith.select %19, %20, %15 : vector<128x128xi1>, vector<128x128xf32>
    %cst_15 = arith.constant dense<0xFF800000> : vector<128xf32>
    %22 = vector.multi_reduction <maximumf>, %21, %cst_15 [1] : vector<128x128xf32> to vector<128xf32>
    %23 = vector.shape_cast %22 : vector<128xf32> to vector<128x1xf32>
    %24 = vector.broadcast %23 : vector<128x1xf32> to vector<128x128xf32>
    %25 = arith.cmpf oeq, %21, %24 : vector<128x128xf32>
    %cst_16 = arith.constant -3.40282347E+38 : f32
    %26 = vector.broadcast %cst_16 : f32 to vector<128x128xf32>
    %27 = arith.select %25, %26, %21 : vector<128x128xi1>, vector<128x128xf32>
    %cst_17 = arith.constant dense<0xFF800000> : vector<128xf32>
    %28 = vector.multi_reduction <maximumf>, %27, %cst_17 [1] : vector<128x128xf32> to vector<128xf32>
    %29 = vector.shape_cast %28 : vector<128xf32> to vector<128x1xf32>
    %30 = vector.broadcast %29 : vector<128x1xf32> to vector<128x128xf32>
    %31 = arith.cmpf oeq, %27, %30 : vector<128x128xf32>
    %cst_18 = arith.constant -3.40282347E+38 : f32
    %32 = vector.broadcast %cst_18 : f32 to vector<128x128xf32>
    %33 = arith.select %31, %32, %27 : vector<128x128xi1>, vector<128x128xf32>
    %cst_19 = arith.constant dense<0xFF800000> : vector<128xf32>
    %34 = vector.multi_reduction <maximumf>, %33, %cst_19 [1] : vector<128x128xf32> to vector<128xf32>
    %35 = vector.shape_cast %34 : vector<128xf32> to vector<128x1xf32>
    %36 = vector.broadcast %35 : vector<128x1xf32> to vector<128x128xf32>
    %37 = arith.cmpf oeq, %33, %36 : vector<128x128xf32>
    %cst_20 = arith.constant -3.40282347E+38 : f32
    %38 = vector.broadcast %cst_20 : f32 to vector<128x128xf32>
    %39 = arith.select %37, %38, %33 : vector<128x128xi1>, vector<128x128xf32>
    %cst_21 = arith.constant dense<0xFF800000> : vector<128xf32>
    %40 = vector.multi_reduction <maximumf>, %39, %cst_21 [1] : vector<128x128xf32> to vector<128xf32>
    %41 = vector.shape_cast %40 : vector<128xf32> to vector<128x1xf32>
    %42 = vector.broadcast %41 : vector<128x1xf32> to vector<128x128xf32>
    %43 = arith.cmpf oeq, %39, %42 : vector<128x128xf32>
    %cst_22 = arith.constant -3.40282347E+38 : f32
    %44 = vector.broadcast %cst_22 : f32 to vector<128x128xf32>
    %45 = arith.select %43, %44, %39 : vector<128x128xi1>, vector<128x128xf32>
    %cst_23 = arith.constant dense<0xFF800000> : vector<128xf32>
    %46 = vector.multi_reduction <maximumf>, %45, %cst_23 [1] : vector<128x128xf32> to vector<128xf32>
    %47 = vector.shape_cast %46 : vector<128xf32> to vector<128x1xf32>
    %48 = vector.broadcast %47 : vector<128x1xf32> to vector<128x128xf32>
    %49 = arith.cmpf oeq, %45, %48 : vector<128x128xf32>
    %cst_24 = arith.constant -3.40282347E+38 : f32
    %50 = vector.broadcast %cst_24 : f32 to vector<128x128xf32>
    %51 = arith.select %49, %50, %45 : vector<128x128xi1>, vector<128x128xf32>
    %cst_25 = arith.constant dense<0xFF800000> : vector<128xf32>
    %52 = vector.multi_reduction <maximumf>, %51, %cst_25 [1] : vector<128x128xf32> to vector<128xf32>
    %53 = vector.shape_cast %52 : vector<128xf32> to vector<128x1xf32>
    %54 = vector.broadcast %53 : vector<128x1xf32> to vector<128x128xf32>
    %55 = arith.cmpf oeq, %51, %54 : vector<128x128xf32>
    %cst_26 = arith.constant -3.40282347E+38 : f32
    %56 = vector.broadcast %cst_26 : f32 to vector<128x128xf32>
    %57 = arith.select %55, %56, %51 : vector<128x128xi1>, vector<128x128xf32>
    %cst_27 = arith.constant dense<0xFF800000> : vector<128xf32>
    %58 = vector.multi_reduction <maximumf>, %57, %cst_27 [1] : vector<128x128xf32> to vector<128xf32>
    %59 = vector.shape_cast %58 : vector<128xf32> to vector<128x1xf32>
    %60 = vector.broadcast %59 : vector<128x1xf32> to vector<128x128xf32>
    %61 = arith.cmpf oge, %9, %60 : vector<128x128xf32>
    %cst_28 = arith.constant 0.000000e+00 : f32
    %62 = vector.broadcast %cst_28 : f32 to vector<128x128xf32>
    %63 = arith.select %61, %9, %62 : vector<128x128xi1>, vector<128x128xf32>
    %c0_29 = arith.constant 0 : index
    %c0_30 = arith.constant 0 : index
    %64 = vector.load %arg7[%c0_29, %c0_30] : memref<128x128xf32, #tpu.memory_space<vmem>>, vector<128x128xf32>
    tpu.vector_store %arg7[%c0_29, %c0_30], %63 {strides = array<i32>} : memref<128x128xf32, #tpu.memory_space<vmem>>, vector<128x128xf32>,
    return
  }
  func.func @transform_0(%arg0: i32) -> (i32, i32) {
    %c0_i32 = arith.constant 0 : i32
    %c0_i32_0 = arith.constant 0 : i32
    return %arg0, %c0_i32 : i32, i32
  }
  func.func @transform_1(%arg0: i32) -> (i32, i32) {
    %c0_i32 = arith.constant 0 : i32
    %c0_i32_0 = arith.constant 0 : i32
    return %arg0, %c0_i32 : i32, i32
  }
  func.func @transform_2(%arg0: i32) -> (i32, i32) {
    %c0_i32 = arith.constant 0 : i32
    %c0_i32_0 = arith.constant 0 : i32
    %c0_i32_1 = arith.constant 0 : i32
    return %c0_i32, %c0_i32_0 : i32, i32
  }
  func.func @transform_3(%arg0: i32) -> (i32, i32) {
    %c0_i32 = arith.constant 0 : i32
    %c0_i32_0 = arith.constant 0 : i32
    %c0_i32_1 = arith.constant 0 : i32
    return %c0_i32, %c0_i32_0 : i32, i32
  }
  func.func @transform_4(%arg0: i32) -> (i32, i32) {
    %c0_i32 = arith.constant 0 : i32
    %c0_i32_0 = arith.constant 0 : i32
    %c0_i32_1 = arith.constant 0 : i32
    return %c0_i32, %c0_i32_0 : i32, i32
  }
  func.func @transform_5(%arg0: i32) -> (i32, i32) {
    %c0_i32 = arith.constant 0 : i32
    %c0_i32_0 = arith.constant 0 : i32
    return %arg0, %c0_i32 : i32, i32
  }
  func.func @transform_6(%arg0: i32) -> (i32, i32) {
    %c0_i32 = arith.constant 0 : i32
    %c0_i32_0 = arith.constant 0 : i32
    return %arg0, %c0_i32 : i32, i32
  }
}

module attributes {stable_mosaic.version = 11 : i64} {
  func.func @_sage_combine_kernel(%arg0: i32, %arg1: memref<128x128xf32, #tpu.memory_space<vmem>>, %arg2: memref<128x128xf32, #tpu.memory_space<vmem>>, %arg3: memref<128x128xf32, #tpu.memory_space<vmem>>, %arg4: memref<128x128xf32, #tpu.memory_space<vmem>>, %arg5: memref<1x128xf32, #tpu.memory_space<vmem>>, %arg6: memref<128x128xf32, #tpu.memory_space<vmem>>) attributes {dimension_semantics = [#tpu.dimension_semantics<parallel>], iteration_bounds = array<i64: 2>, scalar_prefetch = 0 : i64, scratch_operands = 0 : i64, tpu.core_type = #tpu.core_type<tc>, window_params = [{transform_indices = @transform_0, window_bounds = array<i64: 128, 128>}, {transform_indices = @transform_1, window_bounds = array<i64: 128, 128>}, {pipeline_mode = #tpu.pipeline_mode<synchronous>, transform_indices = @transform_2, window_bounds = array<i64: 128, 128>}, {pipeline_mode = #tpu.pipeline_mode<synchronous>, transform_indices = @transform_3, window_bounds = array<i64: 128, 128>}, {pipeline_mode = #tpu.pipeline_mode<synchronous>, transform_indices = @transform_4, window_bounds = array<i64: 1, 128>}, {transform_indices = @transform_5, window_bounds = array<i64: 128, 128>}]} {
    %c0 = arith.constant 0 : index
    %c0_0 = arith.constant 0 : index
    %0 = vector.load %arg1[%c0, %c0_0] : memref<128x128xf32, #tpu.memory_space<vmem>>, vector<128x128xf32>
    %c0_1 = arith.constant 0 : index
    %c0_2 = arith.constant 0 : index
    %1 = vector.load %arg3[%c0_1, %c0_2] : memref<128x128xf32, #tpu.memory_space<vmem>>, vector<128x128xf32>
    %cst = arith.constant dense<0.000000e+00> : vector<128x128xf32>
    %2 = tpu.matmul %0, %1, %cst {dimension_numbers = #tpu.dot_dimension_numbers<[1], [0], [0], [1], [0, 0, 1, 1], [], []>} : vector<128x128xf32>, vector<128x128xf32>, vector<128x128xf32> -> vector<128x128xf32>
    %c0_3 = arith.constant 0 : index
    %c0_4 = arith.constant 0 : index
    %3 = vector.load %arg2[%c0_3, %c0_4] : memref<128x128xf32, #tpu.memory_space<vmem>>, vector<128x128xf32>
    %c0_5 = arith.constant 0 : index
    %c0_6 = arith.constant 0 : index
    %4 = vector.load %arg4[%c0_5, %c0_6] : memref<128x128xf32, #tpu.memory_space<vmem>>, vector<128x128xf32>
    %cst_7 = arith.constant dense<0.000000e+00> : vector<128x128xf32>
    %5 = tpu.matmul %3, %4, %cst_7 {dimension_numbers = #tpu.dot_dimension_numbers<[1], [0], [0], [1], [0, 0, 1, 1], [], []>} : vector<128x128xf32>, vector<128x128xf32>, vector<128x128xf32> -> vector<128x128xf32>
    %6 = arith.addf %2, %5 : vector<128x128xf32>
    %c0_8 = arith.constant 0 : index
    %c0_9 = arith.constant 0 : index
    %7 = vector.load %arg5[%c0_8, %c0_9] : memref<1x128xf32, #tpu.memory_space<vmem>>, vector<1x128xf32>
    %8 = vector.broadcast %7 : vector<1x128xf32> to vector<128x128xf32>
    %9 = arith.addf %6, %8 : vector<128x128xf32>
    %c0_10 = arith.constant 0 : index
    %c0_11 = arith.constant 0 : index
    %10 = vector.load %arg6[%c0_10, %c0_11] : memref<128x128xf32, #tpu.memory_space<vmem>>, vector<128x128xf32>
    tpu.vector_store %arg6[%c0_10, %c0_11], %9 {strides = array<i32>} : memref<128x128xf32, #tpu.memory_space<vmem>>, vector<128x128xf32>,
    return
  }
  func.func @transform_0(%arg0: i32) -> (i32, i32) {
    %c0_i32 = arith.constant 0 : i32
    %c0_i32_0 = arith.constant 0 : i32
    return %arg0, %c0_i32 : i32, i32
  }
  func.func @transform_1(%arg0: i32) -> (i32, i32) {
    %c0_i32 = arith.constant 0 : i32
    %c0_i32_0 = arith.constant 0 : i32
    return %arg0, %c0_i32 : i32, i32
  }
  func.func @transform_2(%arg0: i32) -> (i32, i32) {
    %c0_i32 = arith.constant 0 : i32
    %c0_i32_0 = arith.constant 0 : i32
    %c0_i32_1 = arith.constant 0 : i32
    return %c0_i32, %c0_i32_0 : i32, i32
  }
  func.func @transform_3(%arg0: i32) -> (i32, i32) {
    %c0_i32 = arith.constant 0 : i32
    %c0_i32_0 = arith.constant 0 : i32
    %c0_i32_1 = arith.constant 0 : i32
    return %c0_i32, %c0_i32_0 : i32, i32
  }
  func.func @transform_4(%arg0: i32) -> (i32, i32) {
    %c0_i32 = arith.constant 0 : i32
    %c0_i32_0 = arith.constant 0 : i32
    %c0_i32_1 = arith.constant 0 : i32
    return %c0_i32, %c0_i32_0 : i32, i32
  }
  func.func @transform_5(%arg0: i32) -> (i32, i32) {
    %c0_i32 = arith.constant 0 : i32
    %c0_i32_0 = arith.constant 0 : i32
    return %arg0, %c0_i32 : i32, i32
  }
}

module attributes {stable_mosaic.version = 11 : i64} {
  func.func @_spmm_kernel(%arg0: i32, %arg1: i32, %arg2: memref<128x128xbf16, #tpu.memory_space<vmem>>, %arg3: memref<128x128xf32, #tpu.memory_space<vmem>>, %arg4: memref<128x1xf32, #tpu.memory_space<vmem>>, %arg5: memref<128x128xf32, #tpu.memory_space<vmem>>) attributes {dimension_semantics = [#tpu.dimension_semantics<parallel>, #tpu.dimension_semantics<arbitrary>], iteration_bounds = array<i64: 2, 2>, scalar_prefetch = 0 : i64, scratch_operands = 0 : i64, tpu.core_type = #tpu.core_type<tc>, window_params = [{transform_indices = @transform_0, window_bounds = array<i64: 128, 128>}, {transform_indices = @transform_1, window_bounds = array<i64: 128, 128>}, {transform_indices = @transform_2, window_bounds = array<i64: 128, 1>}, {transform_indices = @transform_3, window_bounds = array<i64: 128, 128>}]} {
    %c0_i32 = arith.constant 0 : i32
    %0 = arith.cmpi eq, %arg1, %c0_i32 : i32
    %1 = arith.extui %0 : i1 to i32
    %c0_i32_0 = arith.constant 0 : i32
    %2 = arith.cmpi ne, %1, %c0_i32_0 : i32
    scf.if %2 {
      %cst_9 = arith.constant 0.000000e+00 : f32
      %13 = vector.broadcast %cst_9 : f32 to vector<128x128xf32>
      %c0_10 = arith.constant 0 : index
      %c0_11 = arith.constant 0 : index
      %14 = vector.load %arg5[%c0_10, %c0_11] : memref<128x128xf32, #tpu.memory_space<vmem>>, vector<128x128xf32>
      tpu.vector_store %arg5[%c0_10, %c0_11], %13 {strides = array<i32>} : memref<128x128xf32, #tpu.memory_space<vmem>>, vector<128x128xf32>,
    } else {
    }
    %c0 = arith.constant 0 : index
    %c0_1 = arith.constant 0 : index
    %3 = vector.load %arg5[%c0, %c0_1] : memref<128x128xf32, #tpu.memory_space<vmem>>, vector<128x128xf32>
    %c0_2 = arith.constant 0 : index
    %c0_3 = arith.constant 0 : index
    %4 = vector.load %arg2[%c0_2, %c0_3] : memref<128x128xbf16, #tpu.memory_space<vmem>>, vector<128x128xbf16>
    %5 = arith.extf %4 : vector<128x128xbf16> to vector<128x128xf32>
    %c0_4 = arith.constant 0 : index
    %c0_5 = arith.constant 0 : index
    %6 = vector.load %arg3[%c0_4, %c0_5] : memref<128x128xf32, #tpu.memory_space<vmem>>, vector<128x128xf32>
    %cst = arith.constant dense<0.000000e+00> : vector<128x128xf32>
    %7 = tpu.matmul %5, %6, %cst {dimension_numbers = #tpu.dot_dimension_numbers<[1], [0], [0], [1], [0, 0, 1, 1], [], []>} : vector<128x128xf32>, vector<128x128xf32>, vector<128x128xf32> -> vector<128x128xf32>
    %8 = arith.addf %3, %7 : vector<128x128xf32>
    %c0_6 = arith.constant 0 : index
    %c0_7 = arith.constant 0 : index
    %9 = vector.load %arg5[%c0_6, %c0_7] : memref<128x128xf32, #tpu.memory_space<vmem>>, vector<128x128xf32>
    tpu.vector_store %arg5[%c0_6, %c0_7], %8 {strides = array<i32>} : memref<128x128xf32, #tpu.memory_space<vmem>>, vector<128x128xf32>,
    %c1_i32 = arith.constant 1 : i32
    %10 = arith.cmpi eq, %arg1, %c1_i32 : i32
    %11 = arith.extui %10 : i1 to i32
    %c0_i32_8 = arith.constant 0 : i32
    %12 = arith.cmpi ne, %11, %c0_i32_8 : i32
    scf.if %12 {
      %c0_9 = arith.constant 0 : index
      %c0_10 = arith.constant 0 : index
      %13 = vector.load %arg5[%c0_9, %c0_10] : memref<128x128xf32, #tpu.memory_space<vmem>>, vector<128x128xf32>
      %c0_11 = arith.constant 0 : index
      %c0_12 = arith.constant 0 : index
      %14 = vector.load %arg4[%c0_11, %c0_12] : memref<128x1xf32, #tpu.memory_space<vmem>>, vector<128x1xf32>
      %15 = vector.broadcast %14 : vector<128x1xf32> to vector<128x128xf32>
      %16 = arith.mulf %13, %15 : vector<128x128xf32>
      %c0_13 = arith.constant 0 : index
      %c0_14 = arith.constant 0 : index
      %17 = vector.load %arg5[%c0_13, %c0_14] : memref<128x128xf32, #tpu.memory_space<vmem>>, vector<128x128xf32>
      tpu.vector_store %arg5[%c0_13, %c0_14], %16 {strides = array<i32>} : memref<128x128xf32, #tpu.memory_space<vmem>>, vector<128x128xf32>,
    } else {
    }
    return
  }
  func.func @transform_0(%arg0: i32, %arg1: i32) -> (i32, i32) {
    %c0_i32 = arith.constant 0 : i32
    return %arg0, %arg1 : i32, i32
  }
  func.func @transform_1(%arg0: i32, %arg1: i32) -> (i32, i32) {
    %c0_i32 = arith.constant 0 : i32
    %c0_i32_0 = arith.constant 0 : i32
    return %arg1, %c0_i32 : i32, i32
  }
  func.func @transform_2(%arg0: i32, %arg1: i32) -> (i32, i32) {
    %c0_i32 = arith.constant 0 : i32
    %c0_i32_0 = arith.constant 0 : i32
    return %arg0, %c0_i32 : i32, i32
  }
  func.func @transform_3(%arg0: i32, %arg1: i32) -> (i32, i32) {
    %c0_i32 = arith.constant 0 : i32
    %c0_i32_0 = arith.constant 0 : i32
    return %arg0, %c0_i32 : i32, i32
  }
}

module attributes {stable_mosaic.version = 11 : i64} {
  func.func @_linear_kernel(%arg0: i32, %arg1: memref<128x128xf32, #tpu.memory_space<vmem>>, %arg2: memref<128x128xf32, #tpu.memory_space<vmem>>, %arg3: memref<1x128xf32, #tpu.memory_space<vmem>>, %arg4: memref<128x128xf32, #tpu.memory_space<vmem>>) attributes {dimension_semantics = [#tpu.dimension_semantics<parallel>], iteration_bounds = array<i64: 2>, scalar_prefetch = 0 : i64, scratch_operands = 0 : i64, tpu.core_type = #tpu.core_type<tc>, window_params = [{transform_indices = @transform_0, window_bounds = array<i64: 128, 128>}, {pipeline_mode = #tpu.pipeline_mode<synchronous>, transform_indices = @transform_1, window_bounds = array<i64: 128, 128>}, {pipeline_mode = #tpu.pipeline_mode<synchronous>, transform_indices = @transform_2, window_bounds = array<i64: 1, 128>}, {transform_indices = @transform_3, window_bounds = array<i64: 128, 128>}]} {
    %c0 = arith.constant 0 : index
    %c0_0 = arith.constant 0 : index
    %0 = vector.load %arg1[%c0, %c0_0] : memref<128x128xf32, #tpu.memory_space<vmem>>, vector<128x128xf32>
    %c0_1 = arith.constant 0 : index
    %c0_2 = arith.constant 0 : index
    %1 = vector.load %arg2[%c0_1, %c0_2] : memref<128x128xf32, #tpu.memory_space<vmem>>, vector<128x128xf32>
    %cst = arith.constant dense<0.000000e+00> : vector<128x128xf32>
    %2 = tpu.matmul %0, %1, %cst {dimension_numbers = #tpu.dot_dimension_numbers<[1], [0], [0], [1], [0, 0, 1, 1], [], []>} : vector<128x128xf32>, vector<128x128xf32>, vector<128x128xf32> -> vector<128x128xf32>
    %c0_3 = arith.constant 0 : index
    %c0_4 = arith.constant 0 : index
    %3 = vector.load %arg3[%c0_3, %c0_4] : memref<1x128xf32, #tpu.memory_space<vmem>>, vector<1x128xf32>
    %4 = vector.broadcast %3 : vector<1x128xf32> to vector<128x128xf32>
    %5 = arith.addf %2, %4 : vector<128x128xf32>
    %c0_5 = arith.constant 0 : index
    %c0_6 = arith.constant 0 : index
    %6 = vector.load %arg4[%c0_5, %c0_6] : memref<128x128xf32, #tpu.memory_space<vmem>>, vector<128x128xf32>
    tpu.vector_store %arg4[%c0_5, %c0_6], %5 {strides = array<i32>} : memref<128x128xf32, #tpu.memory_space<vmem>>, vector<128x128xf32>,
    return
  }
  func.func @transform_0(%arg0: i32) -> (i32, i32) {
    %c0_i32 = arith.constant 0 : i32
    %c0_i32_0 = arith.constant 0 : i32
    return %arg0, %c0_i32 : i32, i32
  }
  func.func @transform_1(%arg0: i32) -> (i32, i32) {
    %c0_i32 = arith.constant 0 : i32
    %c0_i32_0 = arith.constant 0 : i32
    %c0_i32_1 = arith.constant 0 : i32
    return %c0_i32, %c0_i32_0 : i32, i32
  }
  func.func @transform_2(%arg0: i32) -> (i32, i32) {
    %c0_i32 = arith.constant 0 : i32
    %c0_i32_0 = arith.constant 0 : i32
    %c0_i32_1 = arith.constant 0 : i32
    return %c0_i32, %c0_i32_0 : i32, i32
  }
  func.func @transform_3(%arg0: i32) -> (i32, i32) {
    %c0_i32 = arith.constant 0 : i32
    %c0_i32_0 = arith.constant 0 : i32
    return %arg0, %c0_i32 : i32, i32
  }
}

</mosaic_0001>

<bundles_post_ra>
// kernel: maxk_sage_forward.6
= control target key start
LH: loop header
LB: loop body
LE: loop exit
PB: predicated region body
PF: predicated region fallthrough
CT: control target
= control target key end

     0   :  { %s1259_s15 = smov 0   ;;  %s1955_s0 = inlined_call_operand.vmem [shape: f32[256,128], index: 0, kind: input, shape index: {}]   ;;  %s1956_s1 = inlined_call_operand.vmem [shape: f32[128,128], index: 1, kind: input, shape index: {}]   ;;  %s1957_s2 = inlined_call_operand.vmem [shape: f32[1,128], index: 2, kind: input, shape index: {}]   ;;  %s1958_s3 = inlined_call_operand.vmem [shape: f32[256,128], index: 3, kind: output, shape index: {0}]   ;;  %s1959_s4 = inlined_call_operand.vmem [shape: f32[256,128], index: 4, kind: output, shape index: {1}]  }
   0x1 LB: > { %s1052_s16 = sadd.s32 4294967295, %s1232_s15   ;;  %p1056_p0 = scmp.ge.s32.totalorder %s1232_s15, 1  ;;  %s1232_s15 = sphi %s1259_s15, %s15_s15  }
   0x2   : > { %p166_p1 = scmp.lt.s32.totalorder %s1232_s15, 3 }
   0x4   : > { %p167_p2 = pnand %p1056_p0, %p166_p1 }
   0x5   : > { %v231_v0 = vld [vmem:[%s1956_s1] sm:$0xff] (!%p167_p2)  ;;  %v232_v1 = vld [vmem:[%s1956_s1 + $0x8] sm:$0xff] (!%p167_p2)  ;;  %v233_v2 = vld [vmem:[%s1956_s1 + $0x10] sm:$0xff] (!%p167_p2)  ;;  %s1057_s23 = sshll.u32 (!%p167_p2), %s1052_s16, 4  ;;  %v415_v40 = vlaneseq (!%p167_p2) }
   0x6   : > { %170 = sbr.rel (%p167_p2) target bundleno = 1441 (0x5a1), region = 32  ;;  %v1154_v3 = vpack.c.bf16 (!%p167_p2), %v232_v1, %v231_v0  ;;  %v234_v4 = vld [vmem:[%s1956_s1 + $0x18] sm:$0xff] (!%p167_p2)  ;;  %p198_p3 = scmp.lt.s32.totalorder (!%p167_p2), %s1057_s23, 31  ;;  %v235_v6 = vld [vmem:[%s1956_s1 + $0x20] sm:$0xff] (!%p167_p2)  ;;  %v236_v7 = vld [vmem:[%s1956_s1 + $0x28] sm:$0xff] (!%p167_p2) }
   0x7   : > { %v1158_v5 = vpack.c.bf16 (!%p167_p2), %v234_v4, %v233_v2  ;;  %v1162_v8 = vpack.c.bf16 (!%p167_p2), %v236_v7, %v235_v6  ;;  %v237_v9 = vld [vmem:[%s1956_s1 + $0x30] sm:$0xff] (!%p167_p2)  ;;  %v238_v10 = vld [vmem:[%s1956_s1 + $0x38] sm:$0xff] (!%p167_p2)  ;;  %v239_v14 = vld [vmem:[%s1956_s1 + $0x40] sm:$0xff] (!%p167_p2)  ;;  %v1339_v41 = vand.u32 (!%p167_p2), 127, %v415_v40 }
   0x8   : > { %1155 = vmatprep.subr.bf16.mxu0 (!%p167_p2), %v1154_v3  ;;  %1186 = vmatprep.subr.bf16.mxu1 (!%p167_p2), %v1154_v3  ;;  %v1166_v13 = vpack.c.bf16 (!%p167_p2), %v238_v10, %v237_v9  ;;  %v240_v15 = vld [vmem:[%s1956_s1 + $0x48] sm:$0xff] (!%p167_p2)  ;;  %v241_v17 = vld [vmem:[%s1956_s1 + $0x50] sm:$0xff] (!%p167_p2)  ;;  %v242_v18 = vld [vmem:[%s1956_s1 + $0x58] sm:$0xff] (!%p167_p2) }
   0x9   : > { %1157 = vmatpush3.bf16.msra.mxu0 (!%p167_p2), %v1154_v3  ;;  %1194 = vmatpush3.bf16.msra.mxu1 (!%p167_p2), %v1154_v3  ;;  %v1170_v16 = vpack.c.bf16 (!%p167_p2), %v240_v15, %v239_v14  ;;  %v1174_v19 = vpack.c.bf16 (!%p167_p2), %v242_v18, %v241_v17  ;;  %v243_v20 = vld [vmem:[%s1956_s1 + $0x60] sm:$0xff] (!%p167_p2)  ;;  %v244_v21 = vld [vmem:[%s1956_s1 + $0x68] sm:$0xff] (!%p167_p2)  ;;  %v245_v23 = vld [vmem:[%s1956_s1 + $0x70] sm:$0xff] (!%p167_p2)  ;;  %vm417_vm0 = vcmp.lt.s32.totalorder (!%p167_p2), %v1339_v41, 64 }
   0xa   : > { %1159 = vmatprep.subr.bf16.mxu0 (!%p167_p2), %v1158_v5  ;;  %1187 = vmatprep.subr.bf16.mxu1 (!%p167_p2), %v1158_v5  ;;  %v1178_v22 = vpack.c.bf16 (!%p167_p2), %v244_v21, %v243_v20  ;;  %v246_v24 = vld [vmem:[%s1956_s1 + $0x78] sm:$0xff] (!%p167_p2)  ;;  %v1063_v42 = vld [vmem:[%s1957_s2] ss:$0 sm:$0xff] (!%p167_p2) }
   0xb   : > { %v1182_v25 = vpack.c.bf16 (!%p167_p2), %v246_v24, %v245_v23 }
   0xd   : > { %s1961_s23 = smov (!%p198_p3, %s1057_s23), 31  ;;  %1161 = vmatpush3.bf16.msra.mxu0 %v1158_v5  ;;  %1195 = vmatpush3.bf16.msra.mxu1 %v1158_v5 }
   0xe   : > { %s1285_s30 = sshll.u32 %s1961_s23, 3  ;;  %1163 = vmatprep.subr.bf16.mxu0 %v1162_v8  ;;  %1188 = vmatprep.subr.bf16.mxu1 %v1162_v8 }
   0xf   : > { %s1297_s11 = scalar_lea.vmem %s1955_s0, %s1285_s30  ;;  %s1348_s8 = scalar_lea.vmem %s1958_s3, %s1285_s30 }
  0x10   : > { %v215_v11 = vld [vmem:[%s1297_s11] sm:$0xff]  ;;  %v216_v26 = vld [vmem:[%s1297_s11 + $0x8] sm:$0xff]  ;;  %v217_v28 = vld [vmem:[%s1297_s11 + $0x10] sm:$0xff] }
  0x11   : > { %v223_v12 = vld [vmem:[%s1297_s11 + $0x40] sm:$0xff]  ;;  %1130 = vmatprep.mubr.f32.mxu0 %v215_v11  ;;  %1165 = vmatpush3.bf16.msra.mxu0 %v1162_v8  ;;  %v224_v27 = vld [vmem:[%s1297_s11 + $0x48] sm:$0xff]  ;;  %v225_v29 = vld [vmem:[%s1297_s11 + $0x50] sm:$0xff] }
  0x12   : > { %1142 = vmatprep.mubr.f32.mxu1 %v223_v12  ;;  %1196 = vmatpush3.bf16.msra.mxu1 %v1162_v8  ;;  %v218_v30 = vld [vmem:[%s1297_s11 + $0x18] sm:$0xff]  ;;  %v219_v32 = vld [vmem:[%s1297_s11 + $0x20] sm:$0xff]  ;;  %v220_v34 = vld [vmem:[%s1297_s11 + $0x28] sm:$0xff] }
  0x13   : > { %1167 = vmatprep.subr.bf16.mxu0 %v1166_v13  ;;  %1189 = vmatprep.subr.bf16.mxu1 %v1166_v13  ;;  %v226_v31 = vld [vmem:[%s1297_s11 + $0x58] sm:$0xff]  ;;  %v227_v33 = vld [vmem:[%s1297_s11 + $0x60] sm:$0xff]  ;;  %v228_v35 = vld [vmem:[%s1297_s11 + $0x68] sm:$0xff] }
  0x14   : > { %v221_v36 = vld [vmem:[%s1297_s11 + $0x30] sm:$0xff]  ;;  %v222_v38 = vld [vmem:[%s1297_s11 + $0x38] sm:$0xff] }
  0x15   : > { %1169 = vmatpush3.bf16.msra.mxu0 %v1166_v13  ;;  %v229_v37 = vld [vmem:[%s1297_s11 + $0x70] sm:$0xff]  ;;  %v230_v39 = vld [vmem:[%s1297_s11 + $0x78] sm:$0xff]  ;;  %s1918_s11 = scalar_lea.vmem %s1959_s4, %s1285_s30 }
  0x16   : > { %1197 = vmatpush3.bf16.msra.mxu1 %v1166_v13  ;;  %1171 = vmatprep.subr.bf16.mxu0 %v1170_v16 }
  0x17   : > { %1190 = vmatprep.subr.bf16.mxu1 %v1170_v16 }
  0x19   : > { %1173 = vmatpush3.bf16.msra.mxu0 %v1170_v16 }
  0x1a   : > { %1198 = vmatpush3.bf16.msra.mxu1 %v1170_v16  ;;  %1175 = vmatprep.subr.bf16.mxu0 %v1174_v19 }
  0x1b   : > { %1191 = vmatprep.subr.bf16.mxu1 %v1174_v19 }
  0x1d   : > { %1177 = vmatpush3.bf16.msra.mxu0 %v1174_v19 }
  0x1e   : > { %1199 = vmatpush3.bf16.msra.mxu1 %v1174_v19  ;;  %1179 = vmatprep.subr.bf16.mxu0 %v1178_v22 }
  0x1f   : > { %1192 = vmatprep.subr.bf16.mxu1 %v1178_v22 }
  0x21   : > { %1181 = vmatpush3.bf16.msra.mxu0 %v1178_v22 }
  0x22   : > { %1200 = vmatpush3.bf16.msra.mxu1 %v1178_v22  ;;  %1183 = vmatprep.subr.bf16.mxu0 %v1182_v25 }
  0x23   : > { %1193 = vmatprep.subr.bf16.mxu1 %v1182_v25 }
  0x25   : > { %1185 = vmatpush3.bf16.msra.mxu0 %v1182_v25 }
  0x26   : > { %1201 = vmatpush3.bf16.msra.mxu1 %v1182_v25 }
  0x28   : > { %1131 = vmatmul.mubr.f32.vlgmr.msra.gmra.mrb[0].mxu0 %v216_v26 }
  0x29   : > { %1143 = vmatmul.mubr.f32.vlgmr.msra.gmra.mrb[0].mxu1 %v224_v27  ;;  %1133 = vmatprep.mubr.f32.mxu0 %v217_v28 }
  0x2a   : > { %1145 = vmatprep.mubr.f32.mxu1 %v225_v29 }
  0x2c   : > { %1134 = vmatmul.mubr.f32.gmra.mrb[2].mxu0 %v218_v30 }
  0x2d   : > { %1146 = vmatmul.mubr.f32.gmra.mrb[2].mxu1 %v226_v31  ;;  %1136 = vmatprep.mubr.f32.mxu0 %v219_v32 }
  0x2e   : > { %1148 = vmatprep.mubr.f32.mxu1 %v227_v33 }
  0x30   : > { %1137 = vmatmul.mubr.f32.gmra.mrb[4].mxu0 %v220_v34 }
  0x31   : > { %1149 = vmatmul.mubr.f32.gmra.mrb[4].mxu1 %v228_v35  ;;  %1139 = vmatprep.mubr.f32.mxu0 %v221_v36 }
  0x32   : > { %1151 = vmatprep.mubr.f32.mxu1 %v229_v37 }
  0x34   : > { %1140 = vmatmul.mubr.f32.gmra.mrb[6].mxu0 %v222_v38 }
  0x35   : > { %1152 = vmatmul.mubr.f32.gmra.mrb[6].mxu1 %v230_v39 }
  0xfb   : > { %v1132_v43 = vpop.f32.mrb[0].mxu0 }
  0xfc   : > { %v1144_v44 = vpop.f32.mrb[0].mxu1  ;;  %v326_v45 = vadd.f32 %v1132_v43, %v1063_v42  ;;  %v320_v47 = vpop.f32.mrb[1].mxu0 }
  0xfd   : > { %v366_v46 = vadd.f32 %v1144_v44, %v1063_v42  ;;  %v360_v48 = vpop.f32.mrb[1].mxu1  ;;  %v321_v49 = vadd.f32 %v1063_v42, %v320_v47 }
  0xfe   : > { %v361_v50 = vadd.f32 %v1063_v42, %v360_v48  ;;  %400 = vst [vmem:[%s1348_s8 + $0x8] sm:$0xff] %v326_v45  ;;  %v1359_v52 = vsel %vm417_vm0, %v326_v45, -3.4028235e+38 }
  0xff   : > { %408 = vst [vmem:[%s1348_s8 + $0x48] sm:$0xff] %v366_v46  ;;  %v1355_v51 = vsel %vm417_vm0, %v366_v46, -3.4028235e+38  ;;  %399 = vst [vmem:[%s1348_s8] sm:$0xff] %v321_v49  ;;  %436 = vmax.xlane.f32.xlu0 %v1359_v52  ;;  %v1135_v53 = vpop.f32.mrb[2].mxu0  ;;  %v1373_v62 = vsel %vm417_vm0, %v321_v49, -3.4028235e+38 }
 0x100   : > { %407 = vst [vmem:[%s1348_s8 + $0x40] sm:$0xff] %v361_v50  ;;  %452 = vmax.xlane.f32.xlu1 %v1355_v51  ;;  %v1147_v54 = vpop.f32.mrb[2].mxu1  ;;  %v336_v55 = vadd.f32 %v1135_v53, %v1063_v42  ;;  %v330_v56 = vpop.f32.mrb[3].mxu0  ;;  %v426_v8 = vsel %vm417_vm0, %v361_v50, -3.4028235e+38 }
 0x101   : > { %v376_v57 = vadd.f32 %v1147_v54, %v1063_v42  ;;  %v370_v58 = vpop.f32.mrb[3].mxu1  ;;  %v331_v59 = vadd.f32 %v1063_v42, %v330_v56 }
 0x102   : > { %v371_v60 = vadd.f32 %v1063_v42, %v370_v58  ;;  %402 = vst [vmem:[%s1348_s8 + $0x18] sm:$0xff] %v336_v55  ;;  %v1369_v61 = vsel %vm417_vm0, %v336_v55, -3.4028235e+38 }
 0x103   : > { %410 = vst [vmem:[%s1348_s8 + $0x58] sm:$0xff] %v376_v57  ;;  %401 = vst [vmem:[%s1348_s8 + $0x10] sm:$0xff] %v331_v59  ;;  %434 = vmax.xlane.f32.xlu0 %v1373_v62  ;;  %v1138_v63 = vpop.f32.mrb[4].mxu0  ;;  %v1381_v1 = vsel %vm417_vm0, %v376_v57, -3.4028235e+38 }
 0x104   : > { %409 = vst [vmem:[%s1348_s8 + $0x50] sm:$0xff] %v371_v60  ;;  %440 = vmax.xlane.f32.xlu1 %v1369_v61  ;;  %v1150_v0 = vpop.f32.mrb[4].mxu1  ;;  %v346_v2 = vadd.f32 %v1138_v63, %v1063_v42  ;;  %v340_v3 = vpop.f32.mrb[5].mxu0  ;;  %v420_v17 = vsel %vm417_vm0, %v331_v59, -3.4028235e+38 }
 0x105   : > { %v386_v4 = vadd.f32 %v1150_v0, %v1063_v42  ;;  %v380_v5 = vpop.f32.mrb[5].mxu1  ;;  %v341_v6 = vadd.f32 %v1063_v42, %v340_v3  ;;  %v428_v18 = vsel %vm417_vm0, %v371_v60, -3.4028235e+38 }
 0x106   : > { %v381_v7 = vadd.f32 %v1063_v42, %v380_v5  ;;  %404 = vst [vmem:[%s1348_s8 + $0x28] sm:$0xff] %v346_v2  ;;  %v423_v19 = vsel %vm417_vm0, %v346_v2, -3.4028235e+38 }
 0x107   : > { %412 = vst [vmem:[%s1348_s8 + $0x68] sm:$0xff] %v386_v4  ;;  %450 = vmax.xlane.f32.xlu0 %v426_v8  ;;  %403 = vst [vmem:[%s1348_s8 + $0x20] sm:$0xff] %v341_v6  ;;  %v1141_v9 = vpop.f32.mrb[6].mxu0  ;;  %v422_v20 = vsel %vm417_vm0, %v341_v6, -3.4028235e+38 }
 0x108   : > { %456 = vmax.xlane.f32.xlu1 %v1381_v1  ;;  %411 = vst [vmem:[%s1348_s8 + $0x60] sm:$0xff] %v381_v7  ;;  %v1153_v10 = vpop.f32.mrb[6].mxu1  ;;  %v356_v11 = vadd.f32 %v1141_v9, %v1063_v42  ;;  %v350_v12 = vpop.f32.mrb[7].mxu0  ;;  %v431_v21 = vsel %vm417_vm0, %v386_v4, -3.4028235e+38 }
 0x109   : > { %v396_v13 = vadd.f32 %v1153_v10, %v1063_v42  ;;  %v390_v14 = vpop.f32.mrb[7].mxu1  ;;  %v351_v15 = vadd.f32 %v1063_v42, %v350_v12  ;;  %v430_v22 = vsel %vm417_vm0, %v381_v7, -3.4028235e+38 }
 0x10a   : > { %v391_v16 = vadd.f32 %v1063_v42, %v390_v14  ;;  %406 = vst [vmem:[%s1348_s8 + $0x38] sm:$0xff] %v356_v11  ;;  %v425_v23 = vsel %vm417_vm0, %v356_v11, -3.4028235e+38 }
 0x10b   : > { %414 = vst [vmem:[%s1348_s8 + $0x78] sm:$0xff] %v396_v13  ;;  %454 = vmax.xlane.f32.xlu0 %v428_v18  ;;  %405 = vst [vmem:[%s1348_s8 + $0x30] sm:$0xff] %v351_v15  ;;  %v1410_v24 = vsel %vm417_vm0, %v351_v15, -3.4028235e+38  ;;  %v433_v25 = vsel %vm417_vm0, %v396_v13, -3.4028235e+38 }
 0x10c   : > { %438 = vmax.xlane.f32.xlu1 %v420_v17  ;;  %413 = vst [vmem:[%s1348_s8 + $0x70] sm:$0xff] %v391_v16  ;;  %v1417_v26 = vsel %vm417_vm0, %v391_v16, -3.4028235e+38 }
 0x10f   : > { %442 = vmax.xlane.f32.xlu0 %v422_v20 }
 0x110   : > { %444 = vmax.xlane.f32.xlu1 %v423_v19 }
 0x113   : > { %458 = vmax.xlane.f32.xlu0 %v430_v22 }
 0x114   : > { %460 = vmax.xlane.f32.xlu1 %v431_v21 }
 0x117   : > { %446 = vmax.xlane.f32.xlu0 %v1410_v24 }
 0x118   : > { %448 = vmax.xlane.f32.xlu1 %v425_v23 }
 0x11b   : > { %462 = vmax.xlane.f32.xlu0 %v1417_v26 }
 0x11c   : > { %464 = vmax.xlane.f32.xlu1 %v433_v25 }
 0x18c   : > { %v437_v28 = vpop.xlane.xlu0 %436 }
 0x18d   : > { %v453_v27 = vpop.xlane.xlu1 %452  ;;  %vm467_vm1 = vcmp.eq.f32.partialorder %v1359_v52, %v437_v28 }
 0x18e   : > { %v1422_v29 = vsel %vm467_vm1, -3.4028235e+38, %v1359_v52  ;;  %vm475_vm2 = vcmp.eq.f32.partialorder %v1355_v51, %v453_v27 }
 0x18f   : > { %500 = vmax.xlane.f32.xlu1 %v1422_v29  ;;  %v1428_v32 = vsel %vm475_vm2, -3.4028235e+38, %v1355_v51 }
 0x190   : > { %v435_v31 = vpop.xlane.xlu0 %434 }
 0x191   : > { %v441_v30 = vpop.xlane.xlu1 %440  ;;  %vm466_vm3 = vcmp.eq.f32.partialorder %v1373_v62, %v435_v31 }
 0x192   : > { %v1431_v33 = vsel %vm466_vm3, -3.4028235e+38, %v1373_v62  ;;  %vm469_vm4 = vcmp.eq.f32.partialorder %v1369_v61, %v441_v30 }
 0x193   : > { %516 = vmax.xlane.f32.xlu1 %v1428_v32  ;;  %498 = vmax.xlane.f32.xlu0 %v1431_v33  ;;  %v1437_v36 = vsel %vm469_vm4, -3.4028235e+38, %v1369_v61 }
 0x194   : > { %v451_v35 = vpop.xlane.xlu0 %450 }
 0x195   : > { %v457_v34 = vpop.xlane.xlu1 %456  ;;  %vm474_vm5 = vcmp.eq.f32.partialorder %v426_v8, %v451_v35 }
 0x196   : > { %v1439_v37 = vsel %vm474_vm5, -3.4028235e+38, %v426_v8  ;;  %vm477_vm6 = vcmp.eq.f32.partialorder %v1381_v1, %v457_v34 }
 0x197   : > { %504 = vmax.xlane.f32.xlu1 %v1437_v36  ;;  %514 = vmax.xlane.f32.xlu0 %v1439_v37  ;;  %v1445_v40 = vsel %vm477_vm6, -3.4028235e+38, %v1381_v1 }
 0x198   : > { %v455_v39 = vpop.xlane.xlu0 %454 }
 0x199   : > { %v439_v38 = vpop.xlane.xlu1 %438  ;;  %vm476_vm8 = vcmp.eq.f32.partialorder %v428_v18, %v455_v39 }
 0x19a   : > { %vm468_vm7 = vcmp.eq.f32.partialorder %v420_v17, %v439_v38  ;;  %v1453_v45 = vsel %vm476_vm8, -3.4028235e+38, %v428_v18 }
 0x19b   : > { %v1447_v41 = vsel %vm468_vm7, -3.4028235e+38, %v420_v17  ;;  %520 = vmax.xlane.f32.xlu1 %v1445_v40 }
 0x19c   : > { %502 = vmax.xlane.f32.xlu0 %v1447_v41  ;;  %v443_v43 = vpop.xlane.xlu0 %442 }
 0x19d   : > { %v445_v42 = vpop.xlane.xlu1 %444  ;;  %vm470_vm10 = vcmp.eq.f32.partialorder %v422_v20, %v443_v43 }
 0x19e   : > { %vm471_vm9 = vcmp.eq.f32.partialorder %v423_v19, %v445_v42  ;;  %v1459_v49 = vsel %vm470_vm10, -3.4028235e+38, %v422_v20 }
 0x19f   : > { %v1451_v44 = vsel %vm471_vm9, -3.4028235e+38, %v423_v19 }
 0x1a0   : > { %508 = vmax.xlane.f32.xlu1 %v1451_v44  ;;  %518 = vmax.xlane.f32.xlu0 %v1453_v45  ;;  %v459_v47 = vpop.xlane.xlu0 %458 }
 0x1a1   : > { %v461_v46 = vpop.xlane.xlu1 %460  ;;  %vm478_vm12 = vcmp.eq.f32.partialorder %v430_v22, %v459_v47 }
 0x1a2   : > { %vm479_vm11 = vcmp.eq.f32.partialorder %v431_v21, %v461_v46  ;;  %v1465_v53 = vsel %vm478_vm12, -3.4028235e+38, %v430_v22 }
 0x1a3   : > { %v1457_v48 = vsel %vm479_vm11, -3.4028235e+38, %v431_v21 }
 0x1a4   : > { %524 = vmax.xlane.f32.xlu1 %v1457_v48  ;;  %506 = vmax.xlane.f32.xlu0 %v1459_v49  ;;  %v447_v51 = vpop.xlane.xlu0 %446 }
 0x1a5   : > { %v449_v50 = vpop.xlane.xlu1 %448  ;;  %vm472_vm14 = vcmp.eq.f32.partialorder %v1410_v24, %v447_v51 }
 0x1a6   : > { %vm473_vm13 = vcmp.eq.f32.partialorder %v425_v23, %v449_v50  ;;  %v1473_v57 = vsel %vm472_vm14, -3.4028235e+38, %v1410_v24 }
 0x1a7   : > { %v1463_v52 = vsel %vm473_vm13, -3.4028235e+38, %v425_v23 }
 0x1a8   : > { %512 = vmax.xlane.f32.xlu1 %v1463_v52  ;;  %522 = vmax.xlane.f32.xlu0 %v1465_v53  ;;  %v463_v55 = vpop.xlane.xlu0 %462 }
 0x1a9   : > { %v465_v54 = vpop.xlane.xlu1 %464  ;;  %vm480_vm0 = vcmp.eq.f32.partialorder %v1417_v26, %v463_v55 }
 0x1aa   : > { %vm481_vm15 = vcmp.eq.f32.partialorder %v433_v25, %v465_v54  ;;  %v1479_v58 = vsel %vm480_vm0, -3.4028235e+38, %v1417_v26 }
 0x1ab   : > { %v1470_v56 = vsel %vm481_vm15, -3.4028235e+38, %v433_v25 }
 0x1ac   : > { %528 = vmax.xlane.f32.xlu1 %v1470_v56  ;;  %510 = vmax.xlane.f32.xlu0 %v1473_v57 }
 0x1b0   : > { %526 = vmax.xlane.f32.xlu0 %v1479_v58 }
 0x21c   : > { %v501_v59 = vpop.xlane.xlu1 %500 }
 0x21d   : > { %vm531_vm1 = vcmp.eq.f32.partialorder %v1422_v29, %v501_v59 }
 0x21e   : > { %v1484_v60 = vsel %vm531_vm1, -3.4028235e+38, %v1422_v29 }
 0x21f   : > { %564 = vmax.xlane.f32.xlu1 %v1484_v60 }
 0x220   : > { %v517_v61 = vpop.xlane.xlu1 %516  ;;  %v499_v62 = vpop.xlane.xlu0 %498 }
 0x221   : > { %vm539_vm2 = vcmp.eq.f32.partialorder %v1428_v32, %v517_v61  ;;  %vm530_vm3 = vcmp.eq.f32.partialorder %v1431_v33, %v499_v62 }
 0x222   : > { %v1490_v63 = vsel %vm539_vm2, -3.4028235e+38, %v1428_v32  ;;  %v1493_v0 = vsel %vm530_vm3, -3.4028235e+38, %v1431_v33 }
 0x223   : > { %580 = vmax.xlane.f32.xlu1 %v1490_v63  ;;  %562 = vmax.xlane.f32.xlu0 %v1493_v0 }
 0x224   : > { %v505_v1 = vpop.xlane.xlu1 %504  ;;  %v515_v2 = vpop.xlane.xlu0 %514 }
 0x225   : > { %vm533_vm4 = vcmp.eq.f32.partialorder %v1437_v36, %v505_v1  ;;  %vm538_vm5 = vcmp.eq.f32.partialorder %v1439_v37, %v515_v2 }
 0x226   : > { %v1500_v3 = vsel %vm533_vm4, -3.4028235e+38, %v1437_v36  ;;  %v1503_v4 = vsel %vm538_vm5, -3.4028235e+38, %v1439_v37 }
 0x227   : > { %568 = vmax.xlane.f32.xlu1 %v1500_v3  ;;  %578 = vmax.xlane.f32.xlu0 %v1503_v4 }
 0x228   : > { %v521_v5 = vpop.xlane.xlu1 %520 }
 0x229   : > { %v503_v6 = vpop.xlane.xlu0 %502  ;;  %vm541_vm6 = vcmp.eq.f32.partialorder %v1445_v40, %v521_v5 }
 0x22a   : > { %vm532_vm7 = vcmp.eq.f32.partialorder %v1447_v41, %v503_v6  ;;  %v1510_v7 = vsel %vm541_vm6, -3.4028235e+38, %v1445_v40 }
 0x22b   : > { %v1513_v8 = vsel %vm532_vm7, -3.4028235e+38, %v1447_v41  ;;  %584 = vmax.xlane.f32.xlu1 %v1510_v7 }
 0x22c   : > { %566 = vmax.xlane.f32.xlu0 %v1513_v8 }
 0x22d   : > { %v509_v9 = vpop.xlane.xlu1 %508  ;;  %v519_v10 = vpop.xlane.xlu0 %518 }
 0x22e   : > { %vm535_vm8 = vcmp.eq.f32.partialorder %v1451_v44, %v509_v9  ;;  %vm540_vm9 = vcmp.eq.f32.partialorder %v1453_v45, %v519_v10 }
 0x22f   : > { %v1520_v11 = vsel %vm535_vm8, -3.4028235e+38, %v1451_v44  ;;  %v1523_v12 = vsel %vm540_vm9, -3.4028235e+38, %v1453_v45 }
 0x230   : > { %572 = vmax.xlane.f32.xlu1 %v1520_v11  ;;  %582 = vmax.xlane.f32.xlu0 %v1523_v12 }
 0x231   : > { %v525_v13 = vpop.xlane.xlu1 %524  ;;  %v507_v14 = vpop.xlane.xlu0 %506 }
 0x232   : > { %vm543_vm10 = vcmp.eq.f32.partialorder %v1457_v48, %v525_v13  ;;  %vm534_vm11 = vcmp.eq.f32.partialorder %v1459_v49, %v507_v14 }
 0x233   : > { %v1530_v15 = vsel %vm543_vm10, -3.4028235e+38, %v1457_v48  ;;  %v1533_v16 = vsel %vm534_vm11, -3.4028235e+38, %v1459_v49 }
 0x234   : > { %588 = vmax.xlane.f32.xlu1 %v1530_v15  ;;  %570 = vmax.xlane.f32.xlu0 %v1533_v16 }
 0x235   : > { %v513_v17 = vpop.xlane.xlu1 %512  ;;  %v523_v18 = vpop.xlane.xlu0 %522 }
 0x236   : > { %vm537_vm12 = vcmp.eq.f32.partialorder %v1463_v52, %v513_v17  ;;  %vm542_vm13 = vcmp.eq.f32.partialorder %v1465_v53, %v523_v18 }
 0x237   : > { %v1540_v19 = vsel %vm537_vm12, -3.4028235e+38, %v1463_v52  ;;  %v1543_v20 = vsel %vm542_vm13, -3.4028235e+38, %v1465_v53 }
 0x238   : > { %576 = vmax.xlane.f32.xlu1 %v1540_v19  ;;  %586 = vmax.xlane.f32.xlu0 %v1543_v20 }
 0x239   : > { %v529_v21 = vpop.xlane.xlu1 %528  ;;  %v511_v22 = vpop.xlane.xlu0 %510 }
 0x23a   : > { %vm545_vm14 = vcmp.eq.f32.partialorder %v1470_v56, %v529_v21  ;;  %vm536_vm15 = vcmp.eq.f32.partialorder %v1473_v57, %v511_v22 }
 0x23b   : > { %v1550_v23 = vsel %vm545_vm14, -3.4028235e+38, %v1470_v56  ;;  %v1553_v24 = vsel %vm536_vm15, -3.4028235e+38, %v1473_v57 }
 0x23c   : > { %592 = vmax.xlane.f32.xlu1 %v1550_v23  ;;  %574 = vmax.xlane.f32.xlu0 %v1553_v24 }
 0x23d   : > { %v527_v25 = vpop.xlane.xlu0 %526 }
 0x23e   : > { %vm544_vm0 = vcmp.eq.f32.partialorder %v1479_v58, %v527_v25 }
 0x23f   : > { %v1559_v26 = vsel %vm544_vm0, -3.4028235e+38, %v1479_v58 }
 0x240   : > { %590 = vmax.xlane.f32.xlu0 %v1559_v26 }
 0x2ac   : > { %v565_v27 = vpop.xlane.xlu1 %564 }
 0x2ad   : > { %vm595_vm1 = vcmp.eq.f32.partialorder %v1484_v60, %v565_v27 }
 0x2ae   : > { %v1564_v28 = vsel %vm595_vm1, -3.4028235e+38, %v1484_v60 }
 0x2af   : > { %628 = vmax.xlane.f32.xlu1 %v1564_v28 }
 0x2b0   : > { %v581_v29 = vpop.xlane.xlu1 %580  ;;  %v563_v30 = vpop.xlane.xlu0 %562 }
 0x2b1   : > { %vm603_vm2 = vcmp.eq.f32.partialorder %v1490_v63, %v581_v29  ;;  %vm594_vm3 = vcmp.eq.f32.partialorder %v1493_v0, %v563_v30 }
 0x2b2   : > { %v1570_v31 = vsel %vm603_vm2, -3.4028235e+38, %v1490_v63  ;;  %v1573_v32 = vsel %vm594_vm3, -3.4028235e+38, %v1493_v0 }
 0x2b3   : > { %644 = vmax.xlane.f32.xlu1 %v1570_v31  ;;  %626 = vmax.xlane.f32.xlu0 %v1573_v32 }
 0x2b4   : > { %v569_v33 = vpop.xlane.xlu1 %568  ;;  %v579_v34 = vpop.xlane.xlu0 %578 }
 0x2b5   : > { %vm597_vm4 = vcmp.eq.f32.partialorder %v1500_v3, %v569_v33  ;;  %vm602_vm5 = vcmp.eq.f32.partialorder %v1503_v4, %v579_v34 }
 0x2b6   : > { %v1580_v35 = vsel %vm597_vm4, -3.4028235e+38, %v1500_v3  ;;  %v1583_v36 = vsel %vm602_vm5, -3.4028235e+38, %v1503_v4 }
 0x2b7   : > { %632 = vmax.xlane.f32.xlu1 %v1580_v35  ;;  %642 = vmax.xlane.f32.xlu0 %v1583_v36 }
 0x2b8   : > { %v585_v37 = vpop.xlane.xlu1 %584 }
 0x2b9   : > { %v567_v38 = vpop.xlane.xlu0 %566  ;;  %vm605_vm6 = vcmp.eq.f32.partialorder %v1510_v7, %v585_v37 }
 0x2ba   : > { %vm596_vm7 = vcmp.eq.f32.partialorder %v1513_v8, %v567_v38  ;;  %v1590_v39 = vsel %vm605_vm6, -3.4028235e+38, %v1510_v7 }
 0x2bb   : > { %v1593_v40 = vsel %vm596_vm7, -3.4028235e+38, %v1513_v8  ;;  %648 = vmax.xlane.f32.xlu1 %v1590_v39 }
 0x2bc   : > { %630 = vmax.xlane.f32.xlu0 %v1593_v40 }
 0x2bd   : > { %v573_v41 = vpop.xlane.xlu1 %572  ;;  %v583_v42 = vpop.xlane.xlu0 %582 }
 0x2be   : > { %vm599_vm8 = vcmp.eq.f32.partialorder %v1520_v11, %v573_v41  ;;  %vm604_vm9 = vcmp.eq.f32.partialorder %v1523_v12, %v583_v42 }
 0x2bf   : > { %v1600_v43 = vsel %vm599_vm8, -3.4028235e+38, %v1520_v11  ;;  %v1603_v44 = vsel %vm604_vm9, -3.4028235e+38, %v1523_v12 }
 0x2c0   : > { %636 = vmax.xlane.f32.xlu1 %v1600_v43  ;;  %646 = vmax.xlane.f32.xlu0 %v1603_v44 }
 0x2c1   : > { %v589_v45 = vpop.xlane.xlu1 %588  ;;  %v571_v46 = vpop.xlane.xlu0 %570 }
 0x2c2   : > { %vm607_vm10 = vcmp.eq.f32.partialorder %v1530_v15, %v589_v45  ;;  %vm598_vm11 = vcmp.eq.f32.partialorder %v1533_v16, %v571_v46 }
 0x2c3   : > { %v1610_v47 = vsel %vm607_vm10, -3.4028235e+38, %v1530_v15  ;;  %v1613_v48 = vsel %vm598_vm11, -3.4028235e+38, %v1533_v16 }
 0x2c4   : > { %652 = vmax.xlane.f32.xlu1 %v1610_v47  ;;  %634 = vmax.xlane.f32.xlu0 %v1613_v48 }
 0x2c5   : > { %v577_v49 = vpop.xlane.xlu1 %576  ;;  %v587_v50 = vpop.xlane.xlu0 %586 }
 0x2c6   : > { %vm601_vm12 = vcmp.eq.f32.partialorder %v1540_v19, %v577_v49  ;;  %vm606_vm13 = vcmp.eq.f32.partialorder %v1543_v20, %v587_v50 }
 0x2c7   : > { %v1620_v51 = vsel %vm601_vm12, -3.4028235e+38, %v1540_v19  ;;  %v1623_v52 = vsel %vm606_vm13, -3.4028235e+38, %v1543_v20 }
 0x2c8   : > { %640 = vmax.xlane.f32.xlu1 %v1620_v51  ;;  %650 = vmax.xlane.f32.xlu0 %v1623_v52 }
 0x2c9   : > { %v593_v53 = vpop.xlane.xlu1 %592  ;;  %v575_v54 = vpop.xlane.xlu0 %574 }
 0x2ca   : > { %vm609_vm14 = vcmp.eq.f32.partialorder %v1550_v23, %v593_v53  ;;  %vm600_vm15 = vcmp.eq.f32.partialorder %v1553_v24, %v575_v54 }
 0x2cb   : > { %v1630_v55 = vsel %vm609_vm14, -3.4028235e+38, %v1550_v23  ;;  %v1633_v56 = vsel %vm600_vm15, -3.4028235e+38, %v1553_v24 }
 0x2cc   : > { %656 = vmax.xlane.f32.xlu1 %v1630_v55  ;;  %638 = vmax.xlane.f32.xlu0 %v1633_v56 }
 0x2cd   : > { %v591_v57 = vpop.xlane.xlu0 %590 }
 0x2ce   : > { %vm608_vm0 = vcmp.eq.f32.partialorder %v1559_v26, %v591_v57 }
 0x2cf   : > { %v1639_v58 = vsel %vm608_vm0, -3.4028235e+38, %v1559_v26 }
 0x2d0   : > { %654 = vmax.xlane.f32.xlu0 %v1639_v58 }
 0x33c   : > { %v629_v59 = vpop.xlane.xlu1 %628 }
 0x33d   : > { %vm659_vm1 = vcmp.eq.f32.partialorder %v1564_v28, %v629_v59 }
 0x33e   : > { %v1644_v60 = vsel %vm659_vm1, -3.4028235e+38, %v1564_v28 }
 0x33f   : > { %692 = vmax.xlane.f32.xlu1 %v1644_v60 }
 0x340   : > { %v645_v61 = vpop.xlane.xlu1 %644  ;;  %v627_v62 = vpop.xlane.xlu0 %626 }
 0x341   : > { %vm667_vm2 = vcmp.eq.f32.partialorder %v1570_v31, %v645_v61  ;;  %vm658_vm3 = vcmp.eq.f32.partialorder %v1573_v32, %v627_v62 }
 0x342   : > { %v1650_v63 = vsel %vm667_vm2, -3.4028235e+38, %v1570_v31  ;;  %v1653_v0 = vsel %vm658_vm3, -3.4028235e+38, %v1573_v32 }
 0x343   : > { %708 = vmax.xlane.f32.xlu1 %v1650_v63  ;;  %690 = vmax.xlane.f32.xlu0 %v1653_v0 }
 0x344   : > { %v633_v1 = vpop.xlane.xlu1 %632  ;;  %v643_v2 = vpop.xlane.xlu0 %642 }
 0x345   : > { %vm661_vm4 = vcmp.eq.f32.partialorder %v1580_v35, %v633_v1  ;;  %vm666_vm5 = vcmp.eq.f32.partialorder %v1583_v36, %v643_v2 }
 0x346   : > { %v1660_v3 = vsel %vm661_vm4, -3.4028235e+38, %v1580_v35  ;;  %v1663_v4 = vsel %vm666_vm5, -3.4028235e+38, %v1583_v36 }
 0x347   : > { %696 = vmax.xlane.f32.xlu1 %v1660_v3  ;;  %706 = vmax.xlane.f32.xlu0 %v1663_v4 }
 0x348   : > { %v649_v5 = vpop.xlane.xlu1 %648 }
 0x349   : > { %v631_v6 = vpop.xlane.xlu0 %630  ;;  %vm669_vm6 = vcmp.eq.f32.partialorder %v1590_v39, %v649_v5 }
 0x34a   : > { %vm660_vm7 = vcmp.eq.f32.partialorder %v1593_v40, %v631_v6  ;;  %v1670_v7 = vsel %vm669_vm6, -3.4028235e+38, %v1590_v39 }
 0x34b   : > { %v1673_v8 = vsel %vm660_vm7, -3.4028235e+38, %v1593_v40  ;;  %712 = vmax.xlane.f32.xlu1 %v1670_v7 }
 0x34c   : > { %694 = vmax.xlane.f32.xlu0 %v1673_v8 }
 0x34d   : > { %v637_v9 = vpop.xlane.xlu1 %636  ;;  %v647_v10 = vpop.xlane.xlu0 %646 }
 0x34e   : > { %vm663_vm8 = vcmp.eq.f32.partialorder %v1600_v43, %v637_v9  ;;  %vm668_vm9 = vcmp.eq.f32.partialorder %v1603_v44, %v647_v10 }
 0x34f   : > { %v1680_v11 = vsel %vm663_vm8, -3.4028235e+38, %v1600_v43  ;;  %v1683_v12 = vsel %vm668_vm9, -3.4028235e+38, %v1603_v44 }
 0x350   : > { %700 = vmax.xlane.f32.xlu1 %v1680_v11  ;;  %710 = vmax.xlane.f32.xlu0 %v1683_v12 }
 0x351   : > { %v653_v13 = vpop.xlane.xlu1 %652  ;;  %v635_v14 = vpop.xlane.xlu0 %634 }
 0x352   : > { %vm671_vm10 = vcmp.eq.f32.partialorder %v1610_v47, %v653_v13  ;;  %vm662_vm11 = vcmp.eq.f32.partialorder %v1613_v48, %v635_v14 }
 0x353   : > { %v1690_v15 = vsel %vm671_vm10, -3.4028235e+38, %v1610_v47  ;;  %v1693_v16 = vsel %vm662_vm11, -3.4028235e+38, %v1613_v48 }
 0x354   : > { %716 = vmax.xlane.f32.xlu1 %v1690_v15  ;;  %698 = vmax.xlane.f32.xlu0 %v1693_v16 }
 0x355   : > { %v641_v17 = vpop.xlane.xlu1 %640  ;;  %v651_v18 = vpop.xlane.xlu0 %650 }
 0x356   : > { %vm665_vm12 = vcmp.eq.f32.partialorder %v1620_v51, %v641_v17  ;;  %vm670_vm13 = vcmp.eq.f32.partialorder %v1623_v52, %v651_v18 }
 0x357   : > { %v1700_v19 = vsel %vm665_vm12, -3.4028235e+38, %v1620_v51  ;;  %v1703_v20 = vsel %vm670_vm13, -3.4028235e+38, %v1623_v52 }
 0x358   : > { %704 = vmax.xlane.f32.xlu1 %v1700_v19  ;;  %714 = vmax.xlane.f32.xlu0 %v1703_v20 }
 0x359   : > { %v657_v21 = vpop.xlane.xlu1 %656  ;;  %v639_v22 = vpop.xlane.xlu0 %638 }
 0x35a   : > { %vm673_vm14 = vcmp.eq.f32.partialorder %v1630_v55, %v657_v21  ;;  %vm664_vm15 = vcmp.eq.f32.partialorder %v1633_v56, %v639_v22 }
 0x35b   : > { %v1710_v23 = vsel %vm673_vm14, -3.4028235e+38, %v1630_v55  ;;  %v1713_v24 = vsel %vm664_vm15, -3.4028235e+38, %v1633_v56 }
 0x35c   : > { %720 = vmax.xlane.f32.xlu1 %v1710_v23  ;;  %702 = vmax.xlane.f32.xlu0 %v1713_v24 }
 0x35d   : > { %v655_v25 = vpop.xlane.xlu0 %654 }
 0x35e   : > { %vm672_vm0 = vcmp.eq.f32.partialorder %v1639_v58, %v655_v25 }
 0x35f   : > { %v1719_v26 = vsel %vm672_vm0, -3.4028235e+38, %v1639_v58 }
 0x360   : > { %718 = vmax.xlane.f32.xlu0 %v1719_v26 }
 0x3cc   : > { %v693_v27 = vpop.xlane.xlu1 %692 }
 0x3cd   : > { %vm723_vm1 = vcmp.eq.f32.partialorder %v1644_v60, %v693_v27 }
 0x3ce   : > { %v1724_v28 = vsel %vm723_vm1, -3.4028235e+38, %v1644_v60 }
 0x3cf   : > { %756 = vmax.xlane.f32.xlu1 %v1724_v28 }
 0x3d0   : > { %v709_v29 = vpop.xlane.xlu1 %708  ;;  %v691_v30 = vpop.xlane.xlu0 %690 }
 0x3d1   : > { %vm731_vm2 = vcmp.eq.f32.partialorder %v1650_v63, %v709_v29  ;;  %vm722_vm3 = vcmp.eq.f32.partialorder %v1653_v0, %v691_v30 }
 0x3d2   : > { %v1730_v31 = vsel %vm731_vm2, -3.4028235e+38, %v1650_v63  ;;  %v1733_v32 = vsel %vm722_vm3, -3.4028235e+38, %v1653_v0 }
 0x3d3   : > { %772 = vmax.xlane.f32.xlu1 %v1730_v31  ;;  %754 = vmax.xlane.f32.xlu0 %v1733_v32 }
 0x3d4   : > { %v697_v33 = vpop.xlane.xlu1 %696  ;;  %v707_v34 = vpop.xlane.xlu0 %706 }
 0x3d5   : > { %vm725_vm4 = vcmp.eq.f32.partialorder %v1660_v3, %v697_v33  ;;  %vm730_vm5 = vcmp.eq.f32.partialorder %v1663_v4, %v707_v34 }
 0x3d6   : > { %v1740_v35 = vsel %vm725_vm4, -3.4028235e+38, %v1660_v3  ;;  %v1743_v36 = vsel %vm730_vm5, -3.4028235e+38, %v1663_v4 }
 0x3d7   : > { %760 = vmax.xlane.f32.xlu1 %v1740_v35  ;;  %770 = vmax.xlane.f32.xlu0 %v1743_v36 }
 0x3d8   : > { %v713_v37 = vpop.xlane.xlu1 %712 }
 0x3d9   : > { %v695_v38 = vpop.xlane.xlu0 %694  ;;  %vm733_vm6 = vcmp.eq.f32.partialorder %v1670_v7, %v713_v37 }
 0x3da   : > { %vm724_vm7 = vcmp.eq.f32.partialorder %v1673_v8, %v695_v38  ;;  %v1750_v39 = vsel %vm733_vm6, -3.4028235e+38, %v1670_v7 }
 0x3db   : > { %v1753_v40 = vsel %vm724_vm7, -3.4028235e+38, %v1673_v8  ;;  %776 = vmax.xlane.f32.xlu1 %v1750_v39 }
 0x3dc   : > { %758 = vmax.xlane.f32.xlu0 %v1753_v40 }
 0x3dd   : > { %v701_v41 = vpop.xlane.xlu1 %700  ;;  %v711_v42 = vpop.xlane.xlu0 %710 }
 0x3de   : > { %vm727_vm8 = vcmp.eq.f32.partialorder %v1680_v11, %v701_v41  ;;  %vm732_vm9 = vcmp.eq.f32.partialorder %v1683_v12, %v711_v42 }
 0x3df   : > { %v1760_v43 = vsel %vm727_vm8, -3.4028235e+38, %v1680_v11  ;;  %v1763_v44 = vsel %vm732_vm9, -3.4028235e+38, %v1683_v12 }
 0x3e0   : > { %764 = vmax.xlane.f32.xlu1 %v1760_v43  ;;  %774 = vmax.xlane.f32.xlu0 %v1763_v44 }
 0x3e1   : > { %v717_v45 = vpop.xlane.xlu1 %716  ;;  %v699_v46 = vpop.xlane.xlu0 %698 }
 0x3e2   : > { %vm735_vm10 = vcmp.eq.f32.partialorder %v1690_v15, %v717_v45  ;;  %vm726_vm11 = vcmp.eq.f32.partialorder %v1693_v16, %v699_v46 }
 0x3e3   : > { %v1770_v47 = vsel %vm735_vm10, -3.4028235e+38, %v1690_v15  ;;  %v1773_v48 = vsel %vm726_vm11, -3.4028235e+38, %v1693_v16 }
 0x3e4   : > { %780 = vmax.xlane.f32.xlu1 %v1770_v47  ;;  %762 = vmax.xlane.f32.xlu0 %v1773_v48 }
 0x3e5   : > { %v705_v49 = vpop.xlane.xlu1 %704  ;;  %v715_v50 = vpop.xlane.xlu0 %714 }
 0x3e6   : > { %vm729_vm12 = vcmp.eq.f32.partialorder %v1700_v19, %v705_v49  ;;  %vm734_vm13 = vcmp.eq.f32.partialorder %v1703_v20, %v715_v50 }
 0x3e7   : > { %v1780_v51 = vsel %vm729_vm12, -3.4028235e+38, %v1700_v19  ;;  %v1783_v52 = vsel %vm734_vm13, -3.4028235e+38, %v1703_v20 }
 0x3e8   : > { %768 = vmax.xlane.f32.xlu1 %v1780_v51  ;;  %778 = vmax.xlane.f32.xlu0 %v1783_v52 }
 0x3e9   : > { %v721_v53 = vpop.xlane.xlu1 %720  ;;  %v703_v54 = vpop.xlane.xlu0 %702 }
 0x3ea   : > { %vm737_vm14 = vcmp.eq.f32.partialorder %v1710_v23, %v721_v53  ;;  %vm728_vm15 = vcmp.eq.f32.partialorder %v1713_v24, %v703_v54 }
 0x3eb   : > { %v1790_v55 = vsel %vm737_vm14, -3.4028235e+38, %v1710_v23  ;;  %v1793_v56 = vsel %vm728_vm15, -3.4028235e+38, %v1713_v24 }
 0x3ec   : > { %784 = vmax.xlane.f32.xlu1 %v1790_v55  ;;  %766 = vmax.xlane.f32.xlu0 %v1793_v56 }
 0x3ed   : > { %v719_v57 = vpop.xlane.xlu0 %718 }
 0x3ee   : > { %vm736_vm0 = vcmp.eq.f32.partialorder %v1719_v26, %v719_v57 }
 0x3ef   : > { %v1799_v58 = vsel %vm736_vm0, -3.4028235e+38, %v1719_v26 }
 0x3f0   : > { %782 = vmax.xlane.f32.xlu0 %v1799_v58 }
 0x45c   : > { %v757_v59 = vpop.xlane.xlu1 %756 }
 0x45d   : > { %vm787_vm1 = vcmp.eq.f32.partialorder %v1724_v28, %v757_v59 }
 0x45e   : > { %v1804_v60 = vsel %vm787_vm1, -3.4028235e+38, %v1724_v28 }
 0x45f   : > { %820 = vmax.xlane.f32.xlu1 %v1804_v60 }
 0x460   : > { %v773_v61 = vpop.xlane.xlu1 %772  ;;  %v755_v62 = vpop.xlane.xlu0 %754 }
 0x461   : > { %vm795_vm2 = vcmp.eq.f32.partialorder %v1730_v31, %v773_v61  ;;  %vm786_vm3 = vcmp.eq.f32.partialorder %v1733_v32, %v755_v62 }
 0x462   : > { %v1810_v63 = vsel %vm795_vm2, -3.4028235e+38, %v1730_v31  ;;  %v1813_v0 = vsel %vm786_vm3, -3.4028235e+38, %v1733_v32 }
 0x463   : > { %836 = vmax.xlane.f32.xlu1 %v1810_v63  ;;  %818 = vmax.xlane.f32.xlu0 %v1813_v0 }
 0x464   : > { %v761_v1 = vpop.xlane.xlu1 %760  ;;  %v771_v2 = vpop.xlane.xlu0 %770 }
 0x465   : > { %vm789_vm4 = vcmp.eq.f32.partialorder %v1740_v35, %v761_v1  ;;  %vm794_vm5 = vcmp.eq.f32.partialorder %v1743_v36, %v771_v2  ;;  %v1212_v1 = vld [vmem:[%s1348_s8] sm:$0xff] }
 0x466   : > { %v1820_v3 = vsel %vm789_vm4, -3.4028235e+38, %v1740_v35  ;;  %v1823_v4 = vsel %vm794_vm5, -3.4028235e+38, %v1743_v36 }
 0x467   : > { %824 = vmax.xlane.f32.xlu1 %v1820_v3  ;;  %834 = vmax.xlane.f32.xlu0 %v1823_v4 }
 0x468   : > { %v777_v5 = vpop.xlane.xlu1 %776 }
 0x469   : > { %v759_v6 = vpop.xlane.xlu0 %758  ;;  %vm797_vm6 = vcmp.eq.f32.partialorder %v1750_v39, %v777_v5 }
 0x46a   : > { %vm788_vm7 = vcmp.eq.f32.partialorder %v1753_v40, %v759_v6  ;;  %v1830_v7 = vsel %vm797_vm6, -3.4028235e+38, %v1750_v39  ;;  %v1213_v6 = vld [vmem:[%s1348_s8 + $0x18] sm:$0xff] }
 0x46b   : > { %v1833_v8 = vsel %vm788_vm7, -3.4028235e+38, %v1753_v40  ;;  %840 = vmax.xlane.f32.xlu1 %v1830_v7 }
 0x46c   : > { %822 = vmax.xlane.f32.xlu0 %v1833_v8 }
 0x46d   : > { %v765_v9 = vpop.xlane.xlu1 %764  ;;  %v775_v10 = vpop.xlane.xlu0 %774 }
 0x46e   : > { %vm791_vm8 = vcmp.eq.f32.partialorder %v1760_v43, %v765_v9  ;;  %vm796_vm9 = vcmp.eq.f32.partialorder %v1763_v44, %v775_v10 }
 0x46f   : > { %v1840_v11 = vsel %vm791_vm8, -3.4028235e+38, %v1760_v43  ;;  %v1843_v12 = vsel %vm796_vm9, -3.4028235e+38, %v1763_v44 }
 0x470   : > { %828 = vmax.xlane.f32.xlu1 %v1840_v11  ;;  %838 = vmax.xlane.f32.xlu0 %v1843_v12 }
 0x471   : > { %v781_v13 = vpop.xlane.xlu1 %780  ;;  %v763_v14 = vpop.xlane.xlu0 %762 }
 0x472   : > { %vm799_vm10 = vcmp.eq.f32.partialorder %v1770_v47, %v781_v13  ;;  %vm790_vm11 = vcmp.eq.f32.partialorder %v1773_v48, %v763_v14  ;;  %v1216_v13 = vld [vmem:[%s1348_s8 + $0x10] sm:$0xff] }
 0x473   : > { %v1850_v15 = vsel %vm799_vm10, -3.4028235e+38, %v1770_v47  ;;  %v1853_v16 = vsel %vm790_vm11, -3.4028235e+38, %v1773_v48 }
 0x474   : > { %844 = vmax.xlane.f32.xlu1 %v1850_v15  ;;  %826 = vmax.xlane.f32.xlu0 %v1853_v16 }
 0x475   : > { %v769_v17 = vpop.xlane.xlu1 %768  ;;  %v779_v18 = vpop.xlane.xlu0 %778 }
 0x476   : > { %vm793_vm12 = vcmp.eq.f32.partialorder %v1780_v51, %v769_v17  ;;  %vm798_vm13 = vcmp.eq.f32.partialorder %v1783_v52, %v779_v18  ;;  %v1217_v18 = vld [vmem:[%s1348_s8 + $0x28] sm:$0xff] }
 0x477   : > { %v1860_v19 = vsel %vm793_vm12, -3.4028235e+38, %v1780_v51  ;;  %v1863_v20 = vsel %vm798_vm13, -3.4028235e+38, %v1783_v52 }
 0x478   : > { %832 = vmax.xlane.f32.xlu1 %v1860_v19  ;;  %842 = vmax.xlane.f32.xlu0 %v1863_v20 }
 0x479   : > { %v785_v21 = vpop.xlane.xlu1 %784  ;;  %v767_v22 = vpop.xlane.xlu0 %766 }
 0x47a   : > { %vm801_vm14 = vcmp.eq.f32.partialorder %v1790_v55, %v785_v21  ;;  %vm792_vm15 = vcmp.eq.f32.partialorder %v1793_v56, %v767_v22 }
 0x47b   : > { %v1870_v23 = vsel %vm801_vm14, -3.4028235e+38, %v1790_v55  ;;  %v1873_v24 = vsel %vm792_vm15, -3.4028235e+38, %v1793_v56 }
 0x47c   : > { %848 = vmax.xlane.f32.xlu1 %v1870_v23  ;;  %830 = vmax.xlane.f32.xlu0 %v1873_v24 }
 0x47d   : > { %v783_v25 = vpop.xlane.xlu0 %782 }
 0x47e   : > { %vm800_vm0 = vcmp.eq.f32.partialorder %v1799_v58, %v783_v25  ;;  %v1220_v25 = vld [vmem:[%s1348_s8 + $0x20] sm:$0xff] }
 0x47f   : > { %v1879_v26 = vsel %vm800_vm0, -3.4028235e+38, %v1799_v58 }
 0x480   : > { %846 = vmax.xlane.f32.xlu0 %v1879_v26 }
 0x4ec   : > { %v821_v27 = vpop.xlane.xlu1 %820 }
 0x4ed   : > { %vm851_vm1 = vcmp.eq.f32.partialorder %v1804_v60, %v821_v27 }
 0x4ee   : > { %v867_v28 = vsel %vm851_vm1, -3.4028235e+38, %v1804_v60  ;;  %v1210_v60 = vld [vmem:[%s1348_s8 + $0x8] sm:$0xff] }
 0x4ef   : > { %884 = vmax.xlane.f32.xlu1 %v867_v28 }
 0x4f0   : > { %v837_v29 = vpop.xlane.xlu1 %836  ;;  %v819_v30 = vpop.xlane.xlu0 %818 }
 0x4f1   : > { %vm859_vm2 = vcmp.eq.f32.partialorder %v1810_v63, %v837_v29  ;;  %vm850_vm3 = vcmp.eq.f32.partialorder %v1813_v0, %v819_v30  ;;  %v1221_v30 = vld [vmem:[%s1348_s8 + $0x38] sm:$0xff] }
 0x4f2   : > { %v875_v31 = vsel %vm859_vm2, -3.4028235e+38, %v1810_v63  ;;  %v866_v32 = vsel %vm850_vm3, -3.4028235e+38, %v1813_v0  ;;  %v1211_v0 = vld [vmem:[%s1348_s8 + $0x48] sm:$0xff] }
 0x4f3   : > { %900 = vmax.xlane.f32.xlu1 %v875_v31  ;;  %882 = vmax.xlane.f32.xlu0 %v866_v32  ;;  %v1222_v31 = vld [vmem:[%s1348_s8 + $0x60] sm:$0xff] }
 0x4f4   : > { %v825_v33 = vpop.xlane.xlu1 %824  ;;  %v835_v34 = vpop.xlane.xlu0 %834 }
 0x4f5   : > { %vm853_vm4 = vcmp.eq.f32.partialorder %v1820_v3, %v825_v33  ;;  %vm858_vm5 = vcmp.eq.f32.partialorder %v1823_v4, %v835_v34 }
 0x4f6   : > { %v869_v35 = vsel %vm853_vm4, -3.4028235e+38, %v1820_v3  ;;  %v874_v36 = vsel %vm858_vm5, -3.4028235e+38, %v1823_v4 }
 0x4f7   : > { %888 = vmax.xlane.f32.xlu1 %v869_v35  ;;  %898 = vmax.xlane.f32.xlu0 %v874_v36  ;;  %v1223_v36 = vld [vmem:[%s1348_s8 + $0x78] sm:$0xff] }
 0x4f8   : > { %v841_v37 = vpop.xlane.xlu1 %840 }
 0x4f9   : > { %v823_v38 = vpop.xlane.xlu0 %822  ;;  %vm861_vm6 = vcmp.eq.f32.partialorder %v1830_v7, %v841_v37  ;;  %v1224_v37 = vld [vmem:[%s1348_s8 + $0x30] sm:$0xff] }
 0x4fa   : > { %vm852_vm7 = vcmp.eq.f32.partialorder %v1833_v8, %v823_v38  ;;  %v877_v39 = vsel %vm861_vm6, -3.4028235e+38, %v1830_v7  ;;  %v1214_v7 = vld [vmem:[%s1348_s8 + $0x40] sm:$0xff] }
 0x4fb   : > { %v868_v40 = vsel %vm852_vm7, -3.4028235e+38, %v1833_v8  ;;  %904 = vmax.xlane.f32.xlu1 %v877_v39 }
 0x4fc   : > { %886 = vmax.xlane.f32.xlu0 %v868_v40 }
 0x4fd   : > { %v829_v41 = vpop.xlane.xlu1 %828  ;;  %v839_v42 = vpop.xlane.xlu0 %838 }
 0x4fe   : > { %vm855_vm8 = vcmp.eq.f32.partialorder %v1840_v11, %v829_v41  ;;  %vm860_vm9 = vcmp.eq.f32.partialorder %v1843_v12, %v839_v42  ;;  %v1225_v41 = vld [vmem:[%s1348_s8 + $0x70] sm:$0xff] }
 0x4ff   : > { %v871_v43 = vsel %vm855_vm8, -3.4028235e+38, %v1840_v11  ;;  %v876_v44 = vsel %vm860_vm9, -3.4028235e+38, %v1843_v12  ;;  %v1215_v12 = vld [vmem:[%s1348_s8 + $0x58] sm:$0xff] }
 0x500   : > { %892 = vmax.xlane.f32.xlu1 %v871_v43  ;;  %902 = vmax.xlane.f32.xlu0 %v876_v44 }
 0x501   : > { %v845_v45 = vpop.xlane.xlu1 %844  ;;  %v827_v46 = vpop.xlane.xlu0 %826 }
 0x502   : > { %vm863_vm10 = vcmp.eq.f32.partialorder %v1850_v15, %v845_v45  ;;  %vm854_vm11 = vcmp.eq.f32.partialorder %v1853_v16, %v827_v46 }
 0x503   : > { %v879_v47 = vsel %vm863_vm10, -3.4028235e+38, %v1850_v15  ;;  %v870_v48 = vsel %vm854_vm11, -3.4028235e+38, %v1853_v16 }
 0x504   : > { %908 = vmax.xlane.f32.xlu1 %v879_v47  ;;  %890 = vmax.xlane.f32.xlu0 %v870_v48 }
 0x505   : > { %v833_v49 = vpop.xlane.xlu1 %832  ;;  %v843_v50 = vpop.xlane.xlu0 %842 }
 0x506   : > { %vm857_vm12 = vcmp.eq.f32.partialorder %v1860_v19, %v833_v49  ;;  %vm862_vm13 = vcmp.eq.f32.partialorder %v1863_v20, %v843_v50 }
 0x507   : > { %v873_v51 = vsel %vm857_vm12, -3.4028235e+38, %v1860_v19  ;;  %v878_v52 = vsel %vm862_vm13, -3.4028235e+38, %v1863_v20  ;;  %v1218_v19 = vld [vmem:[%s1348_s8 + $0x50] sm:$0xff] }
 0x508   : > { %896 = vmax.xlane.f32.xlu1 %v873_v51  ;;  %906 = vmax.xlane.f32.xlu0 %v878_v52 }
 0x509   : > { %v849_v53 = vpop.xlane.xlu1 %848  ;;  %v831_v54 = vpop.xlane.xlu0 %830 }
 0x50a   : > { %vm865_vm14 = vcmp.eq.f32.partialorder %v1870_v23, %v849_v53  ;;  %vm856_vm15 = vcmp.eq.f32.partialorder %v1873_v24, %v831_v54 }
 0x50b   : > { %v881_v55 = vsel %vm865_vm14, -3.4028235e+38, %v1870_v23  ;;  %v872_v56 = vsel %vm856_vm15, -3.4028235e+38, %v1873_v24  ;;  %v1219_v24 = vld [vmem:[%s1348_s8 + $0x68] sm:$0xff] }
 0x50c   : > { %912 = vmax.xlane.f32.xlu1 %v881_v55  ;;  %894 = vmax.xlane.f32.xlu0 %v872_v56 }
 0x50d   : > { %v847_v57 = vpop.xlane.xlu0 %846 }
 0x50e   : > { %vm864_vm0 = vcmp.eq.f32.partialorder %v1879_v26, %v847_v57 }
 0x50f   : > { %v880_v58 = vsel %vm864_vm0, -3.4028235e+38, %v1879_v26 }
 0x510   : > { %910 = vmax.xlane.f32.xlu0 %v880_v58 }
 0x57c   : > { %v885_v59 = vpop.xlane.xlu1 %884 }
 0x57d   : > { %vm915_vm1 = vcmp.ge.f32.partialorder %v1210_v60, %v885_v59 }
 0x57e   : > { %v931_v61 = vsel %vm915_vm1, %v1210_v60, 0.0 }
 0x57f   : > { %947 = vst [vmem:[%s1918_s11 + $0x8] sm:$0xff] %v931_v61 }
 0x580   : > { %v901_v62 = vpop.xlane.xlu1 %900  ;;  %v883_v63 = vpop.xlane.xlu0 %882 }
 0x581   : > { %vm923_vm2 = vcmp.ge.f32.partialorder %v1211_v0, %v901_v62  ;;  %vm914_vm3 = vcmp.ge.f32.partialorder %v1212_v1, %v883_v63 }
 0x582   : > { %v939_v2 = vsel %vm923_vm2, %v1211_v0, 0.0  ;;  %v930_v3 = vsel %vm914_vm3, %v1212_v1, 0.0 }
 0x583   : > { %955 = vst [vmem:[%s1918_s11 + $0x48] sm:$0xff] %v939_v2  ;;  %946 = vst [vmem:[%s1918_s11] sm:$0xff] %v930_v3 }
 0x584   : > { %v889_v4 = vpop.xlane.xlu1 %888  ;;  %v899_v5 = vpop.xlane.xlu0 %898 }
 0x585   : > { %vm917_vm4 = vcmp.ge.f32.partialorder %v1213_v6, %v889_v4  ;;  %vm922_vm5 = vcmp.ge.f32.partialorder %v1214_v7, %v899_v5 }
 0x586   : > { %v933_v8 = vsel %vm917_vm4, %v1213_v6, 0.0  ;;  %v938_v9 = vsel %vm922_vm5, %v1214_v7, 0.0 }
 0x587   : > { %949 = vst [vmem:[%s1918_s11 + $0x18] sm:$0xff] %v933_v8  ;;  %954 = vst [vmem:[%s1918_s11 + $0x40] sm:$0xff] %v938_v9 }
 0x588   : > { %v905_v10 = vpop.xlane.xlu1 %904 }
 0x589   : > { %v887_v11 = vpop.xlane.xlu0 %886  ;;  %vm925_vm6 = vcmp.ge.f32.partialorder %v1215_v12, %v905_v10 }
 0x58a   : > { %vm916_vm7 = vcmp.ge.f32.partialorder %v1216_v13, %v887_v11  ;;  %v941_v14 = vsel %vm925_vm6, %v1215_v12, 0.0 }
 0x58b   : > { %v932_v15 = vsel %vm916_vm7, %v1216_v13, 0.0  ;;  %957 = vst [vmem:[%s1918_s11 + $0x58] sm:$0xff] %v941_v14 }
 0x58c   : > { %948 = vst [vmem:[%s1918_s11 + $0x10] sm:$0xff] %v932_v15 }
 0x58d   : > { %v893_v16 = vpop.xlane.xlu1 %892  ;;  %v903_v17 = vpop.xlane.xlu0 %902 }
 0x58e   : > { %vm919_vm8 = vcmp.ge.f32.partialorder %v1217_v18, %v893_v16  ;;  %vm924_vm9 = vcmp.ge.f32.partialorder %v1218_v19, %v903_v17 }
 0x58f   : > { %v935_v20 = vsel %vm919_vm8, %v1217_v18, 0.0  ;;  %v940_v21 = vsel %vm924_vm9, %v1218_v19, 0.0 }
 0x590   : > { %951 = vst [vmem:[%s1918_s11 + $0x28] sm:$0xff] %v935_v20  ;;  %956 = vst [vmem:[%s1918_s11 + $0x50] sm:$0xff] %v940_v21 }
 0x591   : > { %v909_v22 = vpop.xlane.xlu1 %908  ;;  %v891_v23 = vpop.xlane.xlu0 %890 }
 0x592   : > { %vm927_vm10 = vcmp.ge.f32.partialorder %v1219_v24, %v909_v22  ;;  %vm918_vm11 = vcmp.ge.f32.partialorder %v1220_v25, %v891_v23 }
 0x593   : > { %v943_v26 = vsel %vm927_vm10, %v1219_v24, 0.0  ;;  %v934_v27 = vsel %vm918_vm11, %v1220_v25, 0.0 }
 0x594   : > { %959 = vst [vmem:[%s1918_s11 + $0x68] sm:$0xff] %v943_v26  ;;  %950 = vst [vmem:[%s1918_s11 + $0x20] sm:$0xff] %v934_v27 }
 0x595   : > { %v897_v28 = vpop.xlane.xlu1 %896  ;;  %v907_v29 = vpop.xlane.xlu0 %906 }
 0x596   : > { %vm921_vm12 = vcmp.ge.f32.partialorder %v1221_v30, %v897_v28  ;;  %vm926_vm13 = vcmp.ge.f32.partialorder %v1222_v31, %v907_v29 }
 0x597   : > { %v937_v32 = vsel %vm921_vm12, %v1221_v30, 0.0  ;;  %v942_v33 = vsel %vm926_vm13, %v1222_v31, 0.0 }
 0x598   : > { %953 = vst [vmem:[%s1918_s11 + $0x38] sm:$0xff] %v937_v32  ;;  %958 = vst [vmem:[%s1918_s11 + $0x60] sm:$0xff] %v942_v33 }
 0x599   : > { %v913_v34 = vpop.xlane.xlu1 %912  ;;  %v895_v35 = vpop.xlane.xlu0 %894 }
 0x59a   : > { %vm929_vm14 = vcmp.ge.f32.partialorder %v1223_v36, %v913_v34  ;;  %vm920_vm15 = vcmp.ge.f32.partialorder %v1224_v37, %v895_v35 }
 0x59b   : > { %v945_v38 = vsel %vm929_vm14, %v1223_v36, 0.0  ;;  %v936_v39 = vsel %vm920_vm15, %v1224_v37, 0.0 }
 0x59c   : > { %961 = vst [vmem:[%s1918_s11 + $0x78] sm:$0xff] %v945_v38  ;;  %952 = vst [vmem:[%s1918_s11 + $0x30] sm:$0xff] %v936_v39 }
 0x59d   : > { %v911_v40 = vpop.xlane.xlu0 %910 }
 0x59e   : > { %vm928_vm0 = vcmp.ge.f32.partialorder %v1225_v41, %v911_v40 }
 0x59f   : > { %v944_v42 = vsel %vm928_vm0, %v1225_v41, 0.0 }
 0x5a0   : > { %960 = vst [vmem:[%s1918_s11 + $0x70] sm:$0xff] %v944_v42 }
 0x5a1 PF: > { %s15_s15 = sadd.s32 1, %s1232_s15  }
 0x5a2   : > { %p12_p4 = scmp.ge.s32.totalorder %s15_s15, 4  }
 0x5a4   :  { %14 = sbr.rel (!%p12_p4) target bundleno = 1 (0x1), region = 74 }

// kernel: maxk_sage_forward.8
= control target key start
LH: loop header
LB: loop body
LE: loop exit
PB: predicated region body
PF: predicated region fallthrough
CT: control target
= control target key end

     0   :  { %s1672_s21 = smov 0   ;;  %s2491_s0 = inlined_call_operand.vmem [shape: f32[256,128], index: 0, kind: input, shape index: {}]   ;;  %s2492_s1 = inlined_call_operand.vmem [shape: f32[256,128], index: 1, kind: input, shape index: {}]   ;;  %s2493_s2 = inlined_call_operand.vmem [shape: f32[128,128], index: 2, kind: input, shape index: {}]   ;;  %s2494_s3 = inlined_call_operand.vmem [shape: f32[128,128], index: 3, kind: input, shape index: {}]   ;;  %s2495_s4 = inlined_call_operand.vmem [shape: f32[1,128], index: 4, kind: input, shape index: {}]   ;;  %s2496_s5 = inlined_call_operand.vmem [shape: f32[256,128], index: 5, kind: output, shape index: {0}]   ;;  %s2497_s6 = inlined_call_operand.vmem [shape: f32[256,128], index: 6, kind: output, shape index: {1}]  }
   0x1 LB: > { %s1333_s22 = sadd.s32 4294967295, %s1635_s21   ;;  %p1337_p0 = scmp.ge.s32.totalorder %s1635_s21, 1  ;;  %s1635_s21 = sphi %s1672_s21, %s17_s21  }
   0x2   : > { %p227_p1 = scmp.lt.s32.totalorder %s1635_s21, 3 }
   0x4   : > { %p228_p2 = pnand %p1337_p0, %p227_p1 }
   0x5   : > { %v339_v0 = vld [vmem:[%s2494_s3] sm:$0xff] (!%p228_p2)  ;;  %v340_v1 = vld [vmem:[%s2494_s3 + $0x8] sm:$0xff] (!%p228_p2)  ;;  %s1338_s29 = sshll.u32 (!%p228_p2), %s1333_s22, 4  ;;  %v341_v5 = vld [vmem:[%s2494_s3 + $0x10] sm:$0xff] (!%p228_p2) }
   0x6   : > { %231 = sbr.rel (%p228_p2) target bundleno = 1443 (0x5a3), region = 40  ;;  %v307_v2 = vld [vmem:[%s2493_s2] sm:$0xff] (!%p228_p2)  ;;  %v1525_v3 = vpack.c.bf16 (!%p228_p2), %v340_v1, %v339_v0  ;;  %v308_v4 = vld [vmem:[%s2493_s2 + $0x8] sm:$0xff] (!%p228_p2)  ;;  %v342_v6 = vld [vmem:[%s2494_s3 + $0x18] sm:$0xff] (!%p228_p2)  ;;  %p268_p3 = scmp.lt.s32.totalorder (!%p228_p2), %s1338_s29, 31 }
   0x7   : > { %v1557_v7 = vpack.c.bf16 (!%p228_p2), %v308_v4, %v307_v2  ;;  %v1529_v8 = vpack.c.bf16 (!%p228_p2), %v342_v6, %v341_v5  ;;  %v309_v9 = vld [vmem:[%s2493_s2 + $0x10] sm:$0xff] (!%p228_p2)  ;;  %v310_v10 = vld [vmem:[%s2493_s2 + $0x18] sm:$0xff] (!%p228_p2)  ;;  %v343_v11 = vld [vmem:[%s2494_s3 + $0x20] sm:$0xff] (!%p228_p2) }
   0x8   : > { %1526 = vmatprep.subr.bf16.mxu1 (!%p228_p2), %v1525_v3  ;;  %v1561_v12 = vpack.c.bf16 (!%p228_p2), %v310_v10, %v309_v9  ;;  %v344_v13 = vld [vmem:[%s2494_s3 + $0x28] sm:$0xff] (!%p228_p2)  ;;  %v311_v14 = vld [vmem:[%s2493_s2 + $0x20] sm:$0xff] (!%p228_p2)  ;;  %v345_v18 = vld [vmem:[%s2494_s3 + $0x30] sm:$0xff] (!%p228_p2) }
   0x9   : > { %v312_v15 = vld [vmem:[%s2493_s2 + $0x28] sm:$0xff] (!%p228_p2)  ;;  %1558 = vmatprep.subr.bf16.mxu0 (!%p228_p2), %v1557_v7  ;;  %1528 = vmatpush3.bf16.msra.mxu1 (!%p228_p2), %v1525_v3  ;;  %v1533_v16 = vpack.c.bf16 (!%p228_p2), %v344_v13, %v343_v11  ;;  %v346_v19 = vld [vmem:[%s2494_s3 + $0x38] sm:$0xff] (!%p228_p2)  ;;  %v313_v20 = vld [vmem:[%s2493_s2 + $0x30] sm:$0xff] (!%p228_p2) }
   0xa   : > { %1560 = vmatpush3.bf16.msra.mxu0 (!%p228_p2), %v1557_v7  ;;  %1530 = vmatprep.subr.bf16.mxu1 (!%p228_p2), %v1529_v8  ;;  %v1565_v17 = vpack.c.bf16 (!%p228_p2), %v312_v15, %v311_v14  ;;  %v314_v21 = vld [vmem:[%s2493_s2 + $0x38] sm:$0xff] (!%p228_p2)  ;;  %v1537_v22 = vpack.c.bf16 (!%p228_p2), %v346_v19, %v345_v18  ;;  %v347_v24 = vld [vmem:[%s2494_s3 + $0x40] sm:$0xff] (!%p228_p2)  ;;  %v348_v25 = vld [vmem:[%s2494_s3 + $0x48] sm:$0xff] (!%p228_p2) }
   0xb   : > { %1562 = vmatprep.subr.bf16.mxu0 (!%p228_p2), %v1561_v12  ;;  %v1569_v23 = vpack.c.bf16 (!%p228_p2), %v314_v21, %v313_v20  ;;  %v315_v27 = vld [vmem:[%s2493_s2 + $0x40] sm:$0xff] (!%p228_p2)  ;;  %v316_v28 = vld [vmem:[%s2493_s2 + $0x48] sm:$0xff] (!%p228_p2)  ;;  %v1541_v30 = vpack.c.bf16 (!%p228_p2), %v348_v25, %v347_v24  ;;  %v349_v32 = vld [vmem:[%s2494_s3 + $0x50] sm:$0xff] (!%p228_p2) }
   0xc   : > { %v1573_v31 = vpack.c.bf16 (!%p228_p2), %v316_v28, %v315_v27  ;;  %v350_v33 = vld [vmem:[%s2494_s3 + $0x58] sm:$0xff] (!%p228_p2)  ;;  %v317_v34 = vld [vmem:[%s2493_s2 + $0x50] sm:$0xff] (!%p228_p2)  ;;  %v351_v38 = vld [vmem:[%s2494_s3 + $0x60] sm:$0xff] (!%p228_p2) }
   0xd   : > { %s2499_s29 = smov (!%p268_p3, %s1338_s29), 31  ;;  %1532 = vmatpush3.bf16.msra.mxu1 %v1529_v8  ;;  %v318_v35 = vld [vmem:[%s2493_s2 + $0x58] sm:$0xff]  ;;  %v1545_v36 = vpack.c.bf16 %v350_v33, %v349_v32  ;;  %v352_v39 = vld [vmem:[%s2494_s3 + $0x68] sm:$0xff]  ;;  %v319_v40 = vld [vmem:[%s2493_s2 + $0x60] sm:$0xff] }
   0xe   : > { %s1716_s25 = sshll.u32 %s2499_s29, 3  ;;  %1564 = vmatpush3.bf16.msra.mxu0 %v1561_v12  ;;  %1534 = vmatprep.subr.bf16.mxu1 %v1533_v16  ;;  %v1577_v37 = vpack.c.bf16 %v318_v35, %v317_v34  ;;  %v320_v41 = vld [vmem:[%s2493_s2 + $0x68] sm:$0xff]  ;;  %v1549_v42 = vpack.c.bf16 %v352_v39, %v351_v38  ;;  %v353_v44 = vld [vmem:[%s2494_s3 + $0x70] sm:$0xff]  ;;  %v354_v45 = vld [vmem:[%s2494_s3 + $0x78] sm:$0xff] }
   0xf   : > { %s1734_s12 = scalar_lea.vmem %s2492_s1, %s1716_s25  ;;  %s1740_s15 = scalar_lea.vmem %s2491_s0, %s1716_s25  ;;  %1566 = vmatprep.subr.bf16.mxu0 %v1565_v17  ;;  %v1581_v43 = vpack.c.bf16 %v320_v41, %v319_v40  ;;  %v321_v46 = vld [vmem:[%s2493_s2 + $0x70] sm:$0xff]  ;;  %v322_v47 = vld [vmem:[%s2493_s2 + $0x78] sm:$0xff]  ;;  %v1553_v48 = vpack.c.bf16 %v354_v45, %v353_v44  ;;  %v1827_v20 = vld [vmem:[%s2495_s4] ss:$0 sm:$0xff] }
  0x10   : > { %v323_v26 = vld [vmem:[%s1734_s12] sm:$0xff]  ;;  %v1585_v49 = vpack.c.bf16 %v322_v47, %v321_v46  ;;  %v324_v50 = vld [vmem:[%s1734_s12 + $0x8] sm:$0xff]  ;;  %v325_v52 = vld [vmem:[%s1734_s12 + $0x10] sm:$0xff]  ;;  %s2454_s11 = scalar_lea.vmem %s2497_s6, %s1716_s25 }
  0x11   : > { %1445 = vmatprep.mubr.f32.mxu1 %v323_v26  ;;  %v291_v29 = vld [vmem:[%s1740_s15] sm:$0xff]  ;;  %1536 = vmatpush3.bf16.msra.mxu1 %v1533_v16  ;;  %v292_v51 = vld [vmem:[%s1740_s15 + $0x8] sm:$0xff]  ;;  %v293_v53 = vld [vmem:[%s1740_s15 + $0x10] sm:$0xff]  ;;  %v684_v16 = vlaneseq }
  0x12   : > { %1501 = vmatprep.mubr.f32.mxu0 %v291_v29  ;;  %1568 = vmatpush3.bf16.msra.mxu0 %v1565_v17  ;;  %v326_v54 = vld [vmem:[%s1734_s12 + $0x18] sm:$0xff]  ;;  %v327_v56 = vld [vmem:[%s1734_s12 + $0x20] sm:$0xff]  ;;  %v328_v58 = vld [vmem:[%s1734_s12 + $0x28] sm:$0xff] }
  0x13   : > { %1538 = vmatprep.subr.bf16.mxu1 %v1537_v22  ;;  %1570 = vmatprep.subr.bf16.mxu0 %v1569_v23  ;;  %v294_v55 = vld [vmem:[%s1740_s15 + $0x18] sm:$0xff]  ;;  %v295_v57 = vld [vmem:[%s1740_s15 + $0x20] sm:$0xff]  ;;  %v296_v59 = vld [vmem:[%s1740_s15 + $0x28] sm:$0xff]  ;;  %v1822_v17 = vand.u32 127, %v684_v16 }
  0x14   : > { %v329_v60 = vld [vmem:[%s1734_s12 + $0x30] sm:$0xff]  ;;  %v330_v62 = vld [vmem:[%s1734_s12 + $0x38] sm:$0xff]  ;;  %v331_v0 = vld [vmem:[%s1734_s12 + $0x40] sm:$0xff] }
  0x15   : > { %1540 = vmatpush3.bf16.msra.mxu1 %v1537_v22  ;;  %v297_v61 = vld [vmem:[%s1740_s15 + $0x30] sm:$0xff]  ;;  %v298_v63 = vld [vmem:[%s1740_s15 + $0x38] sm:$0xff]  ;;  %v299_v1 = vld [vmem:[%s1740_s15 + $0x40] sm:$0xff]  ;;  %vm686_vm0 = vcmp.lt.s32.totalorder %v1822_v17, 64 }
  0x16   : > { %1572 = vmatpush3.bf16.msra.mxu0 %v1569_v23  ;;  %1542 = vmatprep.subr.bf16.mxu1 %v1541_v30  ;;  %v332_v2 = vld [vmem:[%s1734_s12 + $0x48] sm:$0xff]  ;;  %v333_v4 = vld [vmem:[%s1734_s12 + $0x50] sm:$0xff]  ;;  %v334_v6 = vld [vmem:[%s1734_s12 + $0x58] sm:$0xff] }
  0x17   : > { %1574 = vmatprep.subr.bf16.mxu0 %v1573_v31  ;;  %v300_v3 = vld [vmem:[%s1740_s15 + $0x48] sm:$0xff]  ;;  %v301_v5 = vld [vmem:[%s1740_s15 + $0x50] sm:$0xff]  ;;  %v302_v7 = vld [vmem:[%s1740_s15 + $0x58] sm:$0xff] }
  0x18   : > { %v335_v8 = vld [vmem:[%s1734_s12 + $0x60] sm:$0xff]  ;;  %v336_v10 = vld [vmem:[%s1734_s12 + $0x68] sm:$0xff]  ;;  %v337_v12 = vld [vmem:[%s1734_s12 + $0x70] sm:$0xff] }
  0x19   : > { %1544 = vmatpush3.bf16.msra.mxu1 %v1541_v30  ;;  %v303_v9 = vld [vmem:[%s1740_s15 + $0x60] sm:$0xff]  ;;  %v304_v11 = vld [vmem:[%s1740_s15 + $0x68] sm:$0xff]  ;;  %v305_v13 = vld [vmem:[%s1740_s15 + $0x70] sm:$0xff] }
  0x1a   : > { %1576 = vmatpush3.bf16.msra.mxu0 %v1573_v31  ;;  %1546 = vmatprep.subr.bf16.mxu1 %v1545_v36  ;;  %v338_v14 = vld [vmem:[%s1734_s12 + $0x78] sm:$0xff]  ;;  %s1833_s12 = scalar_lea.vmem %s2496_s5, %s1716_s25 }
  0x1b   : > { %1578 = vmatprep.subr.bf16.mxu0 %v1577_v37  ;;  %v306_v15 = vld [vmem:[%s1740_s15 + $0x78] sm:$0xff] }
  0x1d   : > { %1548 = vmatpush3.bf16.msra.mxu1 %v1545_v36 }
  0x1e   : > { %1580 = vmatpush3.bf16.msra.mxu0 %v1577_v37  ;;  %1550 = vmatprep.subr.bf16.mxu1 %v1549_v42 }
  0x1f   : > { %1582 = vmatprep.subr.bf16.mxu0 %v1581_v43 }
  0x21   : > { %1552 = vmatpush3.bf16.msra.mxu1 %v1549_v42 }
  0x22   : > { %1584 = vmatpush3.bf16.msra.mxu0 %v1581_v43  ;;  %1554 = vmatprep.subr.bf16.mxu1 %v1553_v48 }
  0x23   : > { %1586 = vmatprep.subr.bf16.mxu0 %v1585_v49 }
  0x25   : > { %1556 = vmatpush3.bf16.msra.mxu1 %v1553_v48 }
  0x26   : > { %1588 = vmatpush3.bf16.msra.mxu0 %v1585_v49 }
  0x28   : > { %1446 = vmatmul.mubr.f32.vlgmr.msra.gmra.mrb[0].mxu1 %v324_v50 }
  0x29   : > { %1502 = vmatmul.mubr.f32.vlgmr.msra.gmra.mrb[0].mxu0 %v292_v51  ;;  %1448 = vmatprep.mubr.f32.mxu1 %v325_v52 }
  0x2a   : > { %1504 = vmatprep.mubr.f32.mxu0 %v293_v53 }
  0x2c   : > { %1449 = vmatmul.mubr.f32.gmra.mrb[2].mxu1 %v326_v54 }
  0x2d   : > { %1505 = vmatmul.mubr.f32.gmra.mrb[2].mxu0 %v294_v55  ;;  %1451 = vmatprep.mubr.f32.mxu1 %v327_v56 }
  0x2e   : > { %1507 = vmatprep.mubr.f32.mxu0 %v295_v57 }
  0x30   : > { %1452 = vmatmul.mubr.f32.gmra.mrb[4].mxu1 %v328_v58 }
  0x31   : > { %1508 = vmatmul.mubr.f32.gmra.mrb[4].mxu0 %v296_v59  ;;  %1454 = vmatprep.mubr.f32.mxu1 %v329_v60 }
  0x32   : > { %1510 = vmatprep.mubr.f32.mxu0 %v297_v61 }
  0x34   : > { %1455 = vmatmul.mubr.f32.gmra.mrb[6].mxu1 %v330_v62 }
  0x35   : > { %1511 = vmatmul.mubr.f32.gmra.mrb[6].mxu0 %v298_v63  ;;  %1457 = vmatprep.mubr.f32.mxu1 %v331_v0 }
  0x36   : > { %1513 = vmatprep.mubr.f32.mxu0 %v299_v1 }
  0x38   : > { %1458 = vmatmul.mubr.f32.gmra.mrb[8].mxu1 %v332_v2 }
  0x39   : > { %1514 = vmatmul.mubr.f32.gmra.mrb[8].mxu0 %v300_v3  ;;  %1460 = vmatprep.mubr.f32.mxu1 %v333_v4 }
  0x3a   : > { %1516 = vmatprep.mubr.f32.mxu0 %v301_v5 }
  0x3c   : > { %1461 = vmatmul.mubr.f32.gmra.mrb[10].mxu1 %v334_v6 }
  0x3d   : > { %1517 = vmatmul.mubr.f32.gmra.mrb[10].mxu0 %v302_v7  ;;  %1463 = vmatprep.mubr.f32.mxu1 %v335_v8 }
  0x3e   : > { %1519 = vmatprep.mubr.f32.mxu0 %v303_v9 }
  0x40   : > { %1464 = vmatmul.mubr.f32.gmra.mrb[12].mxu1 %v336_v10 }
  0x41   : > { %1520 = vmatmul.mubr.f32.gmra.mrb[12].mxu0 %v304_v11  ;;  %1466 = vmatprep.mubr.f32.mxu1 %v337_v12 }
  0x42   : > { %1522 = vmatprep.mubr.f32.mxu0 %v305_v13 }
  0x44   : > { %1467 = vmatmul.mubr.f32.gmra.mrb[14].mxu1 %v338_v14 }
  0x45   : > { %1523 = vmatmul.mubr.f32.gmra.mrb[14].mxu0 %v306_v15 }
  0xfb   : > { %v1447_v18 = vpop.f32.mrb[0].mxu1 }
  0xfc   : > { %v1503_v19 = vpop.f32.mrb[0].mxu0  ;;  %v421_v21 = vpop.f32.mrb[1].mxu1 }
  0xfd   : > { %v572_v22 = vadd.f32 %v1503_v19, %v1447_v18  ;;  %v566_v23 = vpop.f32.mrb[1].mxu0 }
  0xfe   : > { %v567_v24 = vadd.f32 %v566_v23, %v421_v21 }
  0xff   : > { %v653_v25 = vadd.f32 %v1827_v20, %v572_v22  ;;  %v1450_v26 = vpop.f32.mrb[2].mxu1 }
 0x100   : > { %v652_v27 = vadd.f32 %v1827_v20, %v567_v24  ;;  %v1506_v28 = vpop.f32.mrb[2].mxu0  ;;  %v431_v29 = vpop.f32.mrb[3].mxu1 }
 0x101   : > { %669 = vst [vmem:[%s1833_s12 + $0x8] sm:$0xff] %v653_v25  ;;  %v582_v30 = vadd.f32 %v1506_v28, %v1450_v26  ;;  %v576_v31 = vpop.f32.mrb[3].mxu0  ;;  %v1841_v32 = vsel %vm686_vm0, %v653_v25, -3.4028235e+38 }
 0x102   : > { %668 = vst [vmem:[%s1833_s12] sm:$0xff] %v652_v27  ;;  %v577_v33 = vadd.f32 %v576_v31, %v431_v29  ;;  %705 = vmax.xlane.f32.xlu0 %v1841_v32  ;;  %v1854_v42 = vsel %vm686_vm0, %v652_v27, -3.4028235e+38 }
 0x103   : > { %v655_v34 = vadd.f32 %v1827_v20, %v582_v30  ;;  %v1453_v35 = vpop.f32.mrb[4].mxu1 }
 0x104   : > { %v654_v36 = vadd.f32 %v1827_v20, %v577_v33  ;;  %v1509_v37 = vpop.f32.mrb[4].mxu0  ;;  %v441_v38 = vpop.f32.mrb[5].mxu1 }
 0x105   : > { %671 = vst [vmem:[%s1833_s12 + $0x18] sm:$0xff] %v655_v34  ;;  %v592_v39 = vadd.f32 %v1509_v37, %v1453_v35  ;;  %v586_v40 = vpop.f32.mrb[5].mxu0  ;;  %v1850_v41 = vsel %vm686_vm0, %v655_v34, -3.4028235e+38 }
 0x106   : > { %670 = vst [vmem:[%s1833_s12 + $0x10] sm:$0xff] %v654_v36  ;;  %v587_v43 = vadd.f32 %v586_v40, %v441_v38  ;;  %709 = vmax.xlane.f32.xlu1 %v1850_v41  ;;  %703 = vmax.xlane.f32.xlu0 %v1854_v42  ;;  %v1864_v51 = vsel %vm686_vm0, %v654_v36, -3.4028235e+38 }
 0x107   : > { %v657_v44 = vadd.f32 %v1827_v20, %v592_v39  ;;  %v1456_v45 = vpop.f32.mrb[6].mxu1 }
 0x108   : > { %v656_v46 = vadd.f32 %v1827_v20, %v587_v43  ;;  %v1512_v47 = vpop.f32.mrb[6].mxu0  ;;  %v451_v48 = vpop.f32.mrb[7].mxu1 }
 0x109   : > { %673 = vst [vmem:[%s1833_s12 + $0x28] sm:$0xff] %v657_v44  ;;  %v602_v49 = vadd.f32 %v1512_v47, %v1456_v45  ;;  %v596_v50 = vpop.f32.mrb[7].mxu0  ;;  %v1876_v56 = vsel %vm686_vm0, %v657_v44, -3.4028235e+38 }
 0x10a   : > { %672 = vst [vmem:[%s1833_s12 + $0x20] sm:$0xff] %v656_v46  ;;  %v597_v52 = vadd.f32 %v596_v50, %v451_v48  ;;  %707 = vmax.xlane.f32.xlu1 %v1864_v51  ;;  %v1870_v53 = vsel %vm686_vm0, %v656_v46, -3.4028235e+38 }
 0x10b   : > { %v659_v54 = vadd.f32 %v1827_v20, %v602_v49  ;;  %711 = vmax.xlane.f32.xlu0 %v1870_v53  ;;  %v1459_v55 = vpop.f32.mrb[8].mxu1 }
 0x10c   : > { %v658_v57 = vadd.f32 %v1827_v20, %v597_v52  ;;  %v1515_v58 = vpop.f32.mrb[8].mxu0  ;;  %v461_v59 = vpop.f32.mrb[9].mxu1 }
 0x10d   : > { %675 = vst [vmem:[%s1833_s12 + $0x38] sm:$0xff] %v659_v54  ;;  %v612_v60 = vadd.f32 %v1515_v58, %v1459_v55  ;;  %v606_v61 = vpop.f32.mrb[9].mxu0  ;;  %v1890_v2 = vsel %vm686_vm0, %v659_v54, -3.4028235e+38 }
 0x10e   : > { %674 = vst [vmem:[%s1833_s12 + $0x30] sm:$0xff] %v658_v57  ;;  %v607_v62 = vadd.f32 %v606_v61, %v461_v59  ;;  %713 = vmax.xlane.f32.xlu1 %v1876_v56  ;;  %v1884_v63 = vsel %vm686_vm0, %v658_v57, -3.4028235e+38 }
 0x10f   : > { %v661_v0 = vadd.f32 %v1827_v20, %v612_v60  ;;  %715 = vmax.xlane.f32.xlu0 %v1884_v63  ;;  %v1462_v1 = vpop.f32.mrb[10].mxu1 }
 0x110   : > { %v660_v3 = vadd.f32 %v1827_v20, %v607_v62  ;;  %v1518_v4 = vpop.f32.mrb[10].mxu0  ;;  %v471_v5 = vpop.f32.mrb[11].mxu1 }
 0x111   : > { %677 = vst [vmem:[%s1833_s12 + $0x48] sm:$0xff] %v661_v0  ;;  %v622_v6 = vadd.f32 %v1518_v4, %v1462_v1  ;;  %v616_v7 = vpop.f32.mrb[11].mxu0  ;;  %v1904_v12 = vsel %vm686_vm0, %v661_v0, -3.4028235e+38 }
 0x112   : > { %676 = vst [vmem:[%s1833_s12 + $0x40] sm:$0xff] %v660_v3  ;;  %v617_v8 = vadd.f32 %v616_v7, %v471_v5  ;;  %717 = vmax.xlane.f32.xlu1 %v1890_v2  ;;  %v1898_v9 = vsel %vm686_vm0, %v660_v3, -3.4028235e+38 }
 0x113   : > { %v663_v10 = vadd.f32 %v1827_v20, %v622_v6  ;;  %719 = vmax.xlane.f32.xlu0 %v1898_v9  ;;  %v1465_v11 = vpop.f32.mrb[12].mxu1 }
 0x114   : > { %v662_v13 = vadd.f32 %v1827_v20, %v617_v8  ;;  %v1521_v14 = vpop.f32.mrb[12].mxu0  ;;  %v481_v15 = vpop.f32.mrb[13].mxu1 }
 0x115   : > { %679 = vst [vmem:[%s1833_s12 + $0x58] sm:$0xff] %v663_v10  ;;  %v632_v16 = vadd.f32 %v1521_v14, %v1465_v11  ;;  %v626_v18 = vpop.f32.mrb[13].mxu0  ;;  %v1918_v24 = vsel %vm686_vm0, %v663_v10, -3.4028235e+38 }
 0x116   : > { %678 = vst [vmem:[%s1833_s12 + $0x50] sm:$0xff] %v662_v13  ;;  %v627_v19 = vadd.f32 %v626_v18, %v481_v15  ;;  %721 = vmax.xlane.f32.xlu1 %v1904_v12  ;;  %v1912_v21 = vsel %vm686_vm0, %v662_v13, -3.4028235e+38 }
 0x117   : > { %v665_v22 = vadd.f32 %v1827_v20, %v632_v16  ;;  %723 = vmax.xlane.f32.xlu0 %v1912_v21  ;;  %v1468_v23 = vpop.f32.mrb[14].mxu1 }
 0x118   : > { %v664_v25 = vadd.f32 %v1827_v20, %v627_v19  ;;  %v1524_v26 = vpop.f32.mrb[14].mxu0  ;;  %v491_v27 = vpop.f32.mrb[15].mxu1 }
 0x119   : > { %681 = vst [vmem:[%s1833_s12 + $0x68] sm:$0xff] %v665_v22  ;;  %v642_v28 = vadd.f32 %v1524_v26, %v1468_v23  ;;  %v636_v29 = vpop.f32.mrb[15].mxu0  ;;  %v700_v34 = vsel %vm686_vm0, %v665_v22, -3.4028235e+38 }
 0x11a   : > { %680 = vst [vmem:[%s1833_s12 + $0x60] sm:$0xff] %v664_v25  ;;  %v637_v30 = vadd.f32 %v636_v29, %v491_v27  ;;  %725 = vmax.xlane.f32.xlu1 %v1918_v24  ;;  %v1926_v31 = vsel %vm686_vm0, %v664_v25, -3.4028235e+38 }
 0x11b   : > { %v667_v33 = vadd.f32 %v1827_v20, %v642_v28  ;;  %727 = vmax.xlane.f32.xlu0 %v1926_v31 }
 0x11c   : > { %v666_v35 = vadd.f32 %v1827_v20, %v637_v30 }
 0x11d   : > { %683 = vst [vmem:[%s1833_s12 + $0x78] sm:$0xff] %v667_v33  ;;  %v702_v37 = vsel %vm686_vm0, %v667_v33, -3.4028235e+38 }
 0x11e   : > { %682 = vst [vmem:[%s1833_s12 + $0x70] sm:$0xff] %v666_v35  ;;  %729 = vmax.xlane.f32.xlu1 %v700_v34  ;;  %v1937_v36 = vsel %vm686_vm0, %v666_v35, -3.4028235e+38 }
 0x11f   : > { %731 = vmax.xlane.f32.xlu0 %v1937_v36 }
 0x122   : > { %733 = vmax.xlane.f32.xlu1 %v702_v37 }
 0x18f   : > { %v706_v38 = vpop.xlane.xlu0 %705 }
 0x190   : > { %vm736_vm1 = vcmp.eq.f32.partialorder %v1841_v32, %v706_v38 }
 0x191   : > { %v1944_v39 = vsel %vm736_vm1, -3.4028235e+38, %v1841_v32 }
 0x192   : > { %769 = vmax.xlane.f32.xlu1 %v1944_v39 }
 0x193   : > { %v710_v20 = vpop.xlane.xlu1 %709  ;;  %v704_v40 = vpop.xlane.xlu0 %703 }
 0x194   : > { %vm738_vm2 = vcmp.eq.f32.partialorder %v1850_v41, %v710_v20  ;;  %vm735_vm3 = vcmp.eq.f32.partialorder %v1854_v42, %v704_v40 }
 0x195   : > { %v1950_v43 = vsel %vm738_vm2, -3.4028235e+38, %v1850_v41  ;;  %v1953_v17 = vsel %vm735_vm3, -3.4028235e+38, %v1854_v42 }
 0x196   : > { %773 = vmax.xlane.f32.xlu1 %v1950_v43  ;;  %767 = vmax.xlane.f32.xlu0 %v1953_v17 }
 0x197   : > { %v708_v32 = vpop.xlane.xlu1 %707 }
 0x198   : > { %vm737_vm4 = vcmp.eq.f32.partialorder %v1864_v51, %v708_v32  ;;  %v712_v44 = vpop.xlane.xlu0 %711 }
 0x199   : > { %v1959_v45 = vsel %vm737_vm4, -3.4028235e+38, %v1864_v51  ;;  %vm739_vm5 = vcmp.eq.f32.partialorder %v1870_v53, %v712_v44 }
 0x19a   : > { %771 = vmax.xlane.f32.xlu0 %v1959_v45  ;;  %v1968_v47 = vsel %vm739_vm5, -3.4028235e+38, %v1870_v53 }
 0x19b   : > { %v714_v41 = vpop.xlane.xlu1 %713 }
 0x19c   : > { %vm740_vm6 = vcmp.eq.f32.partialorder %v1876_v56, %v714_v41  ;;  %v716_v42 = vpop.xlane.xlu0 %715 }
 0x19d   : > { %v1965_v46 = vsel %vm740_vm6, -3.4028235e+38, %v1876_v56  ;;  %vm741_vm7 = vcmp.eq.f32.partialorder %v1884_v63, %v716_v42 }
 0x19e   : > { %777 = vmax.xlane.f32.xlu1 %v1965_v46  ;;  %775 = vmax.xlane.f32.xlu0 %v1968_v47  ;;  %v1978_v51 = vsel %vm741_vm7, -3.4028235e+38, %v1884_v63 }
 0x19f   : > { %v718_v48 = vpop.xlane.xlu1 %717 }
 0x1a0   : > { %vm742_vm8 = vcmp.eq.f32.partialorder %v1890_v2, %v718_v48  ;;  %v720_v49 = vpop.xlane.xlu0 %719 }
 0x1a1   : > { %v1975_v50 = vsel %vm742_vm8, -3.4028235e+38, %v1890_v2  ;;  %vm743_vm9 = vcmp.eq.f32.partialorder %v1898_v9, %v720_v49 }
 0x1a2   : > { %781 = vmax.xlane.f32.xlu1 %v1975_v50  ;;  %779 = vmax.xlane.f32.xlu0 %v1978_v51  ;;  %v1988_v55 = vsel %vm743_vm9, -3.4028235e+38, %v1898_v9 }
 0x1a3   : > { %v722_v52 = vpop.xlane.xlu1 %721 }
 0x1a4   : > { %vm744_vm10 = vcmp.eq.f32.partialorder %v1904_v12, %v722_v52  ;;  %v724_v53 = vpop.xlane.xlu0 %723 }
 0x1a5   : > { %v1985_v54 = vsel %vm744_vm10, -3.4028235e+38, %v1904_v12  ;;  %vm745_vm11 = vcmp.eq.f32.partialorder %v1912_v21, %v724_v53 }
 0x1a6   : > { %785 = vmax.xlane.f32.xlu1 %v1985_v54  ;;  %783 = vmax.xlane.f32.xlu0 %v1988_v55  ;;  %v1998_v59 = vsel %vm745_vm11, -3.4028235e+38, %v1912_v21 }
 0x1a7   : > { %v726_v56 = vpop.xlane.xlu1 %725 }
 0x1a8   : > { %vm746_vm12 = vcmp.eq.f32.partialorder %v1918_v24, %v726_v56  ;;  %v728_v57 = vpop.xlane.xlu0 %727 }
 0x1a9   : > { %v1995_v58 = vsel %vm746_vm12, -3.4028235e+38, %v1918_v24  ;;  %vm747_vm13 = vcmp.eq.f32.partialorder %v1926_v31, %v728_v57 }
 0x1aa   : > { %789 = vmax.xlane.f32.xlu1 %v1995_v58  ;;  %787 = vmax.xlane.f32.xlu0 %v1998_v59  ;;  %v2006_v63 = vsel %vm747_vm13, -3.4028235e+38, %v1926_v31 }
 0x1ab   : > { %v730_v60 = vpop.xlane.xlu1 %729 }
 0x1ac   : > { %vm748_vm14 = vcmp.eq.f32.partialorder %v700_v34, %v730_v60  ;;  %v732_v61 = vpop.xlane.xlu0 %731 }
 0x1ad   : > { %v2003_v62 = vsel %vm748_vm14, -3.4028235e+38, %v700_v34  ;;  %vm749_vm15 = vcmp.eq.f32.partialorder %v1937_v36, %v732_v61 }
 0x1ae   : > { %793 = vmax.xlane.f32.xlu1 %v2003_v62  ;;  %791 = vmax.xlane.f32.xlu0 %v2006_v63  ;;  %v2014_v2 = vsel %vm749_vm15, -3.4028235e+38, %v1937_v36 }
 0x1af   : > { %v734_v0 = vpop.xlane.xlu1 %733 }
 0x1b0   : > { %vm750_vm0 = vcmp.eq.f32.partialorder %v702_v37, %v734_v0 }
 0x1b1   : > { %v2011_v1 = vsel %vm750_vm0, -3.4028235e+38, %v702_v37 }
 0x1b2   : > { %797 = vmax.xlane.f32.xlu1 %v2011_v1  ;;  %795 = vmax.xlane.f32.xlu0 %v2014_v2 }
 0x21f   : > { %v770_v3 = vpop.xlane.xlu1 %769 }
 0x220   : > { %vm800_vm1 = vcmp.eq.f32.partialorder %v1944_v39, %v770_v3 }
 0x221   : > { %v2020_v4 = vsel %vm800_vm1, -3.4028235e+38, %v1944_v39 }
 0x222   : > { %833 = vmax.xlane.f32.xlu1 %v2020_v4 }
 0x223   : > { %v774_v5 = vpop.xlane.xlu1 %773  ;;  %v768_v6 = vpop.xlane.xlu0 %767 }
 0x224   : > { %vm802_vm2 = vcmp.eq.f32.partialorder %v1950_v43, %v774_v5  ;;  %vm799_vm3 = vcmp.eq.f32.partialorder %v1953_v17, %v768_v6 }
 0x225   : > { %v2026_v7 = vsel %vm802_vm2, -3.4028235e+38, %v1950_v43  ;;  %v2029_v8 = vsel %vm799_vm3, -3.4028235e+38, %v1953_v17 }
 0x226   : > { %837 = vmax.xlane.f32.xlu1 %v2026_v7  ;;  %831 = vmax.xlane.f32.xlu0 %v2029_v8 }
 0x227   : > { %v772_v9 = vpop.xlane.xlu0 %771 }
 0x228   : > { %vm801_vm4 = vcmp.eq.f32.partialorder %v1959_v45, %v772_v9 }
 0x229   : > { %v2035_v10 = vsel %vm801_vm4, -3.4028235e+38, %v1959_v45 }
 0x22a   : > { %835 = vmax.xlane.f32.xlu0 %v2035_v10 }
 0x22b   : > { %v778_v11 = vpop.xlane.xlu1 %777  ;;  %v776_v12 = vpop.xlane.xlu0 %775 }
 0x22c   : > { %vm804_vm5 = vcmp.eq.f32.partialorder %v1965_v46, %v778_v11  ;;  %vm803_vm6 = vcmp.eq.f32.partialorder %v1968_v47, %v776_v12 }
 0x22d   : > { %v2041_v13 = vsel %vm804_vm5, -3.4028235e+38, %v1965_v46  ;;  %v2044_v14 = vsel %vm803_vm6, -3.4028235e+38, %v1968_v47 }
 0x22e   : > { %841 = vmax.xlane.f32.xlu1 %v2041_v13  ;;  %839 = vmax.xlane.f32.xlu0 %v2044_v14 }
 0x22f   : > { %v782_v15 = vpop.xlane.xlu1 %781  ;;  %v780_v16 = vpop.xlane.xlu0 %779 }
 0x230   : > { %vm806_vm7 = vcmp.eq.f32.partialorder %v1975_v50, %v782_v15  ;;  %vm805_vm8 = vcmp.eq.f32.partialorder %v1978_v51, %v780_v16 }
 0x231   : > { %v2051_v18 = vsel %vm806_vm7, -3.4028235e+38, %v1975_v50  ;;  %v2054_v19 = vsel %vm805_vm8, -3.4028235e+38, %v1978_v51 }
 0x232   : > { %845 = vmax.xlane.f32.xlu1 %v2051_v18  ;;  %843 = vmax.xlane.f32.xlu0 %v2054_v19 }
 0x233   : > { %v786_v21 = vpop.xlane.xlu1 %785  ;;  %v784_v22 = vpop.xlane.xlu0 %783 }
 0x234   : > { %vm808_vm9 = vcmp.eq.f32.partialorder %v1985_v54, %v786_v21  ;;  %vm807_vm10 = vcmp.eq.f32.partialorder %v1988_v55, %v784_v22 }
 0x235   : > { %v2061_v23 = vsel %vm808_vm9, -3.4028235e+38, %v1985_v54  ;;  %v2064_v24 = vsel %vm807_vm10, -3.4028235e+38, %v1988_v55 }
 0x236   : > { %849 = vmax.xlane.f32.xlu1 %v2061_v23  ;;  %847 = vmax.xlane.f32.xlu0 %v2064_v24 }
 0x237   : > { %v790_v25 = vpop.xlane.xlu1 %789  ;;  %v788_v26 = vpop.xlane.xlu0 %787 }
 0x238   : > { %vm810_vm11 = vcmp.eq.f32.partialorder %v1995_v58, %v790_v25  ;;  %vm809_vm12 = vcmp.eq.f32.partialorder %v1998_v59, %v788_v26 }
 0x239   : > { %v2071_v27 = vsel %vm810_vm11, -3.4028235e+38, %v1995_v58  ;;  %v2074_v28 = vsel %vm809_vm12, -3.4028235e+38, %v1998_v59 }
 0x23a   : > { %853 = vmax.xlane.f32.xlu1 %v2071_v27  ;;  %851 = vmax.xlane.f32.xlu0 %v2074_v28 }
 0x23b   : > { %v794_v29 = vpop.xlane.xlu1 %793  ;;  %v792_v30 = vpop.xlane.xlu0 %791 }
 0x23c   : > { %vm812_vm13 = vcmp.eq.f32.partialorder %v2003_v62, %v794_v29  ;;  %vm811_vm14 = vcmp.eq.f32.partialorder %v2006_v63, %v792_v30 }
 0x23d   : > { %v2081_v31 = vsel %vm812_vm13, -3.4028235e+38, %v2003_v62  ;;  %v2084_v33 = vsel %vm811_vm14, -3.4028235e+38, %v2006_v63 }
 0x23e   : > { %857 = vmax.xlane.f32.xlu1 %v2081_v31  ;;  %855 = vmax.xlane.f32.xlu0 %v2084_v33 }
 0x23f   : > { %v798_v34 = vpop.xlane.xlu1 %797  ;;  %v796_v35 = vpop.xlane.xlu0 %795 }
 0x240   : > { %vm814_vm15 = vcmp.eq.f32.partialorder %v2011_v1, %v798_v34  ;;  %vm813_vm0 = vcmp.eq.f32.partialorder %v2014_v2, %v796_v35 }
 0x241   : > { %v2091_v36 = vsel %vm814_vm15, -3.4028235e+38, %v2011_v1  ;;  %v2094_v37 = vsel %vm813_vm0, -3.4028235e+38, %v2014_v2 }
 0x242   : > { %861 = vmax.xlane.f32.xlu1 %v2091_v36  ;;  %859 = vmax.xlane.f32.xlu0 %v2094_v37 }
 0x2af   : > { %v834_v38 = vpop.xlane.xlu1 %833 }
 0x2b0   : > { %vm864_vm1 = vcmp.eq.f32.partialorder %v2020_v4, %v834_v38 }
 0x2b1   : > { %v2100_v39 = vsel %vm864_vm1, -3.4028235e+38, %v2020_v4 }
 0x2b2   : > { %897 = vmax.xlane.f32.xlu1 %v2100_v39 }
 0x2b3   : > { %v838_v20 = vpop.xlane.xlu1 %837  ;;  %v832_v40 = vpop.xlane.xlu0 %831 }
 0x2b4   : > { %vm866_vm2 = vcmp.eq.f32.partialorder %v2026_v7, %v838_v20  ;;  %vm863_vm3 = vcmp.eq.f32.partialorder %v2029_v8, %v832_v40 }
 0x2b5   : > { %v2106_v43 = vsel %vm866_vm2, -3.4028235e+38, %v2026_v7  ;;  %v2109_v17 = vsel %vm863_vm3, -3.4028235e+38, %v2029_v8 }
 0x2b6   : > { %901 = vmax.xlane.f32.xlu1 %v2106_v43  ;;  %895 = vmax.xlane.f32.xlu0 %v2109_v17 }
 0x2b7   : > { %v836_v32 = vpop.xlane.xlu0 %835 }
 0x2b8   : > { %vm865_vm4 = vcmp.eq.f32.partialorder %v2035_v10, %v836_v32 }
 0x2b9   : > { %v2115_v44 = vsel %vm865_vm4, -3.4028235e+38, %v2035_v10 }
 0x2ba   : > { %899 = vmax.xlane.f32.xlu0 %v2115_v44 }
 0x2bb   : > { %v842_v45 = vpop.xlane.xlu1 %841  ;;  %v840_v41 = vpop.xlane.xlu0 %839 }
 0x2bc   : > { %vm868_vm5 = vcmp.eq.f32.partialorder %v2041_v13, %v842_v45  ;;  %vm867_vm6 = vcmp.eq.f32.partialorder %v2044_v14, %v840_v41 }
 0x2bd   : > { %v2121_v42 = vsel %vm868_vm5, -3.4028235e+38, %v2041_v13  ;;  %v2124_v46 = vsel %vm867_vm6, -3.4028235e+38, %v2044_v14 }
 0x2be   : > { %905 = vmax.xlane.f32.xlu1 %v2121_v42  ;;  %903 = vmax.xlane.f32.xlu0 %v2124_v46 }
 0x2bf   : > { %v846_v47 = vpop.xlane.xlu1 %845  ;;  %v844_v48 = vpop.xlane.xlu0 %843 }
 0x2c0   : > { %vm870_vm7 = vcmp.eq.f32.partialorder %v2051_v18, %v846_v47  ;;  %vm869_vm8 = vcmp.eq.f32.partialorder %v2054_v19, %v844_v48 }
 0x2c1   : > { %v2131_v49 = vsel %vm870_vm7, -3.4028235e+38, %v2051_v18  ;;  %v2134_v50 = vsel %vm869_vm8, -3.4028235e+38, %v2054_v19 }
 0x2c2   : > { %909 = vmax.xlane.f32.xlu1 %v2131_v49  ;;  %907 = vmax.xlane.f32.xlu0 %v2134_v50 }
 0x2c3   : > { %v850_v51 = vpop.xlane.xlu1 %849  ;;  %v848_v52 = vpop.xlane.xlu0 %847 }
 0x2c4   : > { %vm872_vm9 = vcmp.eq.f32.partialorder %v2061_v23, %v850_v51  ;;  %vm871_vm10 = vcmp.eq.f32.partialorder %v2064_v24, %v848_v52 }
 0x2c5   : > { %v2141_v53 = vsel %vm872_vm9, -3.4028235e+38, %v2061_v23  ;;  %v2144_v54 = vsel %vm871_vm10, -3.4028235e+38, %v2064_v24 }
 0x2c6   : > { %913 = vmax.xlane.f32.xlu1 %v2141_v53  ;;  %911 = vmax.xlane.f32.xlu0 %v2144_v54 }
 0x2c7   : > { %v854_v55 = vpop.xlane.xlu1 %853  ;;  %v852_v56 = vpop.xlane.xlu0 %851 }
 0x2c8   : > { %vm874_vm11 = vcmp.eq.f32.partialorder %v2071_v27, %v854_v55  ;;  %vm873_vm12 = vcmp.eq.f32.partialorder %v2074_v28, %v852_v56 }
 0x2c9   : > { %v2151_v57 = vsel %vm874_vm11, -3.4028235e+38, %v2071_v27  ;;  %v2154_v58 = vsel %vm873_vm12, -3.4028235e+38, %v2074_v28 }
 0x2ca   : > { %917 = vmax.xlane.f32.xlu1 %v2151_v57  ;;  %915 = vmax.xlane.f32.xlu0 %v2154_v58 }
 0x2cb   : > { %v858_v59 = vpop.xlane.xlu1 %857  ;;  %v856_v60 = vpop.xlane.xlu0 %855 }
 0x2cc   : > { %vm876_vm13 = vcmp.eq.f32.partialorder %v2081_v31, %v858_v59  ;;  %vm875_vm14 = vcmp.eq.f32.partialorder %v2084_v33, %v856_v60 }
 0x2cd   : > { %v2161_v61 = vsel %vm876_vm13, -3.4028235e+38, %v2081_v31  ;;  %v2164_v62 = vsel %vm875_vm14, -3.4028235e+38, %v2084_v33 }
 0x2ce   : > { %921 = vmax.xlane.f32.xlu1 %v2161_v61  ;;  %919 = vmax.xlane.f32.xlu0 %v2164_v62 }
 0x2cf   : > { %v862_v63 = vpop.xlane.xlu1 %861  ;;  %v860_v0 = vpop.xlane.xlu0 %859 }
 0x2d0   : > { %vm878_vm15 = vcmp.eq.f32.partialorder %v2091_v36, %v862_v63  ;;  %vm877_vm0 = vcmp.eq.f32.partialorder %v2094_v37, %v860_v0 }
 0x2d1   : > { %v2171_v1 = vsel %vm878_vm15, -3.4028235e+38, %v2091_v36  ;;  %v2174_v2 = vsel %vm877_vm0, -3.4028235e+38, %v2094_v37 }
 0x2d2   : > { %925 = vmax.xlane.f32.xlu1 %v2171_v1  ;;  %923 = vmax.xlane.f32.xlu0 %v2174_v2 }
 0x33f   : > { %v898_v3 = vpop.xlane.xlu1 %897 }
 0x340   : > { %vm928_vm1 = vcmp.eq.f32.partialorder %v2100_v39, %v898_v3 }
 0x341   : > { %v2180_v4 = vsel %vm928_vm1, -3.4028235e+38, %v2100_v39 }
 0x342   : > { %961 = vmax.xlane.f32.xlu1 %v2180_v4 }
 0x343   : > { %v902_v5 = vpop.xlane.xlu1 %901  ;;  %v896_v6 = vpop.xlane.xlu0 %895 }
 0x344   : > { %vm930_vm2 = vcmp.eq.f32.partialorder %v2106_v43, %v902_v5  ;;  %vm927_vm3 = vcmp.eq.f32.partialorder %v2109_v17, %v896_v6 }
 0x345   : > { %v2186_v7 = vsel %vm930_vm2, -3.4028235e+38, %v2106_v43  ;;  %v2189_v8 = vsel %vm927_vm3, -3.4028235e+38, %v2109_v17 }
 0x346   : > { %965 = vmax.xlane.f32.xlu1 %v2186_v7  ;;  %959 = vmax.xlane.f32.xlu0 %v2189_v8 }
 0x347   : > { %v900_v9 = vpop.xlane.xlu0 %899 }
 0x348   : > { %vm929_vm4 = vcmp.eq.f32.partialorder %v2115_v44, %v900_v9 }
 0x349   : > { %v2195_v10 = vsel %vm929_vm4, -3.4028235e+38, %v2115_v44 }
 0x34a   : > { %963 = vmax.xlane.f32.xlu0 %v2195_v10 }
 0x34b   : > { %v906_v11 = vpop.xlane.xlu1 %905  ;;  %v904_v12 = vpop.xlane.xlu0 %903 }
 0x34c   : > { %vm932_vm5 = vcmp.eq.f32.partialorder %v2121_v42, %v906_v11  ;;  %vm931_vm6 = vcmp.eq.f32.partialorder %v2124_v46, %v904_v12 }
 0x34d   : > { %v2201_v13 = vsel %vm932_vm5, -3.4028235e+38, %v2121_v42  ;;  %v2204_v14 = vsel %vm931_vm6, -3.4028235e+38, %v2124_v46 }
 0x34e   : > { %969 = vmax.xlane.f32.xlu1 %v2201_v13  ;;  %967 = vmax.xlane.f32.xlu0 %v2204_v14 }
 0x34f   : > { %v910_v15 = vpop.xlane.xlu1 %909  ;;  %v908_v16 = vpop.xlane.xlu0 %907 }
 0x350   : > { %vm934_vm7 = vcmp.eq.f32.partialorder %v2131_v49, %v910_v15  ;;  %vm933_vm8 = vcmp.eq.f32.partialorder %v2134_v50, %v908_v16 }
 0x351   : > { %v2211_v18 = vsel %vm934_vm7, -3.4028235e+38, %v2131_v49  ;;  %v2214_v19 = vsel %vm933_vm8, -3.4028235e+38, %v2134_v50 }
 0x352   : > { %973 = vmax.xlane.f32.xlu1 %v2211_v18  ;;  %971 = vmax.xlane.f32.xlu0 %v2214_v19 }
 0x353   : > { %v914_v21 = vpop.xlane.xlu1 %913  ;;  %v912_v22 = vpop.xlane.xlu0 %911 }
 0x354   : > { %vm936_vm9 = vcmp.eq.f32.partialorder %v2141_v53, %v914_v21  ;;  %vm935_vm10 = vcmp.eq.f32.partialorder %v2144_v54, %v912_v22 }
 0x355   : > { %v2221_v23 = vsel %vm936_vm9, -3.4028235e+38, %v2141_v53  ;;  %v2224_v24 = vsel %vm935_vm10, -3.4028235e+38, %v2144_v54 }
 0x356   : > { %977 = vmax.xlane.f32.xlu1 %v2221_v23  ;;  %975 = vmax.xlane.f32.xlu0 %v2224_v24 }
 0x357   : > { %v918_v25 = vpop.xlane.xlu1 %917  ;;  %v916_v26 = vpop.xlane.xlu0 %915 }
 0x358   : > { %vm938_vm11 = vcmp.eq.f32.partialorder %v2151_v57, %v918_v25  ;;  %vm937_vm12 = vcmp.eq.f32.partialorder %v2154_v58, %v916_v26 }
 0x359   : > { %v2231_v27 = vsel %vm938_vm11, -3.4028235e+38, %v2151_v57  ;;  %v2234_v28 = vsel %vm937_vm12, -3.4028235e+38, %v2154_v58 }
 0x35a   : > { %981 = vmax.xlane.f32.xlu1 %v2231_v27  ;;  %979 = vmax.xlane.f32.xlu0 %v2234_v28 }
 0x35b   : > { %v922_v29 = vpop.xlane.xlu1 %921  ;;  %v920_v30 = vpop.xlane.xlu0 %919 }
 0x35c   : > { %vm940_vm13 = vcmp.eq.f32.partialorder %v2161_v61, %v922_v29  ;;  %vm939_vm14 = vcmp.eq.f32.partialorder %v2164_v62, %v920_v30 }
 0x35d   : > { %v2241_v31 = vsel %vm940_vm13, -3.4028235e+38, %v2161_v61  ;;  %v2244_v33 = vsel %vm939_vm14, -3.4028235e+38, %v2164_v62 }
 0x35e   : > { %985 = vmax.xlane.f32.xlu1 %v2241_v31  ;;  %983 = vmax.xlane.f32.xlu0 %v2244_v33 }
 0x35f   : > { %v926_v34 = vpop.xlane.xlu1 %925  ;;  %v924_v35 = vpop.xlane.xlu0 %923 }
 0x360   : > { %vm942_vm15 = vcmp.eq.f32.partialorder %v2171_v1, %v926_v34  ;;  %vm941_vm0 = vcmp.eq.f32.partialorder %v2174_v2, %v924_v35 }
 0x361   : > { %v2251_v36 = vsel %vm942_vm15, -3.4028235e+38, %v2171_v1  ;;  %v2254_v37 = vsel %vm941_vm0, -3.4028235e+38, %v2174_v2 }
 0x362   : > { %989 = vmax.xlane.f32.xlu1 %v2251_v36  ;;  %987 = vmax.xlane.f32.xlu0 %v2254_v37 }
 0x3cf   : > { %v962_v38 = vpop.xlane.xlu1 %961 }
 0x3d0   : > { %vm992_vm1 = vcmp.eq.f32.partialorder %v2180_v4, %v962_v38 }
 0x3d1   : > { %v2260_v39 = vsel %vm992_vm1, -3.4028235e+38, %v2180_v4 }
 0x3d2   : > { %1025 = vmax.xlane.f32.xlu1 %v2260_v39 }
 0x3d3   : > { %v966_v20 = vpop.xlane.xlu1 %965  ;;  %v960_v40 = vpop.xlane.xlu0 %959 }
 0x3d4   : > { %vm994_vm2 = vcmp.eq.f32.partialorder %v2186_v7, %v966_v20  ;;  %vm991_vm3 = vcmp.eq.f32.partialorder %v2189_v8, %v960_v40 }
 0x3d5   : > { %v2266_v43 = vsel %vm994_vm2, -3.4028235e+38, %v2186_v7  ;;  %v2269_v17 = vsel %vm991_vm3, -3.4028235e+38, %v2189_v8 }
 0x3d6   : > { %1029 = vmax.xlane.f32.xlu1 %v2266_v43  ;;  %1023 = vmax.xlane.f32.xlu0 %v2269_v17 }
 0x3d7   : > { %v964_v32 = vpop.xlane.xlu0 %963 }
 0x3d8   : > { %vm993_vm4 = vcmp.eq.f32.partialorder %v2195_v10, %v964_v32 }
 0x3d9   : > { %v2275_v44 = vsel %vm993_vm4, -3.4028235e+38, %v2195_v10 }
 0x3da   : > { %1027 = vmax.xlane.f32.xlu0 %v2275_v44 }
 0x3db   : > { %v970_v45 = vpop.xlane.xlu1 %969  ;;  %v968_v41 = vpop.xlane.xlu0 %967 }
 0x3dc   : > { %vm996_vm5 = vcmp.eq.f32.partialorder %v2201_v13, %v970_v45  ;;  %vm995_vm6 = vcmp.eq.f32.partialorder %v2204_v14, %v968_v41 }
 0x3dd   : > { %v2281_v42 = vsel %vm996_vm5, -3.4028235e+38, %v2201_v13  ;;  %v2284_v46 = vsel %vm995_vm6, -3.4028235e+38, %v2204_v14 }
 0x3de   : > { %1033 = vmax.xlane.f32.xlu1 %v2281_v42  ;;  %1031 = vmax.xlane.f32.xlu0 %v2284_v46 }
 0x3df   : > { %v974_v47 = vpop.xlane.xlu1 %973  ;;  %v972_v48 = vpop.xlane.xlu0 %971 }
 0x3e0   : > { %vm998_vm7 = vcmp.eq.f32.partialorder %v2211_v18, %v974_v47  ;;  %vm997_vm8 = vcmp.eq.f32.partialorder %v2214_v19, %v972_v48 }
 0x3e1   : > { %v2291_v49 = vsel %vm998_vm7, -3.4028235e+38, %v2211_v18  ;;  %v2294_v50 = vsel %vm997_vm8, -3.4028235e+38, %v2214_v19 }
 0x3e2   : > { %1037 = vmax.xlane.f32.xlu1 %v2291_v49  ;;  %1035 = vmax.xlane.f32.xlu0 %v2294_v50 }
 0x3e3   : > { %v978_v51 = vpop.xlane.xlu1 %977  ;;  %v976_v52 = vpop.xlane.xlu0 %975 }
 0x3e4   : > { %vm1000_vm9 = vcmp.eq.f32.partialorder %v2221_v23, %v978_v51  ;;  %vm999_vm10 = vcmp.eq.f32.partialorder %v2224_v24, %v976_v52 }
 0x3e5   : > { %v2301_v53 = vsel %vm1000_vm9, -3.4028235e+38, %v2221_v23  ;;  %v2304_v54 = vsel %vm999_vm10, -3.4028235e+38, %v2224_v24 }
 0x3e6   : > { %1041 = vmax.xlane.f32.xlu1 %v2301_v53  ;;  %1039 = vmax.xlane.f32.xlu0 %v2304_v54 }
 0x3e7   : > { %v982_v55 = vpop.xlane.xlu1 %981  ;;  %v980_v56 = vpop.xlane.xlu0 %979 }
 0x3e8   : > { %vm1002_vm11 = vcmp.eq.f32.partialorder %v2231_v27, %v982_v55  ;;  %vm1001_vm12 = vcmp.eq.f32.partialorder %v2234_v28, %v980_v56 }
 0x3e9   : > { %v2311_v57 = vsel %vm1002_vm11, -3.4028235e+38, %v2231_v27  ;;  %v2314_v58 = vsel %vm1001_vm12, -3.4028235e+38, %v2234_v28 }
 0x3ea   : > { %1045 = vmax.xlane.f32.xlu1 %v2311_v57  ;;  %1043 = vmax.xlane.f32.xlu0 %v2314_v58 }
 0x3eb   : > { %v986_v59 = vpop.xlane.xlu1 %985  ;;  %v984_v60 = vpop.xlane.xlu0 %983 }
 0x3ec   : > { %vm1004_vm13 = vcmp.eq.f32.partialorder %v2241_v31, %v986_v59  ;;  %vm1003_vm14 = vcmp.eq.f32.partialorder %v2244_v33, %v984_v60 }
 0x3ed   : > { %v2321_v61 = vsel %vm1004_vm13, -3.4028235e+38, %v2241_v31  ;;  %v2324_v62 = vsel %vm1003_vm14, -3.4028235e+38, %v2244_v33 }
 0x3ee   : > { %1049 = vmax.xlane.f32.xlu1 %v2321_v61  ;;  %1047 = vmax.xlane.f32.xlu0 %v2324_v62 }
 0x3ef   : > { %v990_v63 = vpop.xlane.xlu1 %989  ;;  %v988_v0 = vpop.xlane.xlu0 %987 }
 0x3f0   : > { %vm1006_vm15 = vcmp.eq.f32.partialorder %v2251_v36, %v990_v63  ;;  %vm1005_vm0 = vcmp.eq.f32.partialorder %v2254_v37, %v988_v0 }
 0x3f1   : > { %v2331_v1 = vsel %vm1006_vm15, -3.4028235e+38, %v2251_v36  ;;  %v2334_v2 = vsel %vm1005_vm0, -3.4028235e+38, %v2254_v37 }
 0x3f2   : > { %1053 = vmax.xlane.f32.xlu1 %v2331_v1  ;;  %1051 = vmax.xlane.f32.xlu0 %v2334_v2 }
 0x45f   : > { %v1026_v3 = vpop.xlane.xlu1 %1025 }
 0x460   : > { %vm1056_vm1 = vcmp.eq.f32.partialorder %v2260_v39, %v1026_v3 }
 0x461   : > { %v2340_v4 = vsel %vm1056_vm1, -3.4028235e+38, %v2260_v39 }
 0x462   : > { %1089 = vmax.xlane.f32.xlu1 %v2340_v4 }
 0x463   : > { %v1030_v5 = vpop.xlane.xlu1 %1029  ;;  %v1024_v6 = vpop.xlane.xlu0 %1023 }
 0x464   : > { %vm1058_vm2 = vcmp.eq.f32.partialorder %v2266_v43, %v1030_v5  ;;  %vm1055_vm3 = vcmp.eq.f32.partialorder %v2269_v17, %v1024_v6 }
 0x465   : > { %v2346_v7 = vsel %vm1058_vm2, -3.4028235e+38, %v2266_v43  ;;  %v2349_v8 = vsel %vm1055_vm3, -3.4028235e+38, %v2269_v17 }
 0x466   : > { %1093 = vmax.xlane.f32.xlu1 %v2346_v7  ;;  %1087 = vmax.xlane.f32.xlu0 %v2349_v8 }
 0x467   : > { %v1028_v9 = vpop.xlane.xlu0 %1027 }
 0x468   : > { %vm1057_vm4 = vcmp.eq.f32.partialorder %v2275_v44, %v1028_v9  ;;  %v1615_v9 = vld [vmem:[%s1833_s12] sm:$0xff] }
 0x469   : > { %v2355_v10 = vsel %vm1057_vm4, -3.4028235e+38, %v2275_v44 }
 0x46a   : > { %1091 = vmax.xlane.f32.xlu0 %v2355_v10 }
 0x46b   : > { %v1034_v11 = vpop.xlane.xlu1 %1033  ;;  %v1032_v12 = vpop.xlane.xlu0 %1031 }
 0x46c   : > { %vm1060_vm5 = vcmp.eq.f32.partialorder %v2281_v42, %v1034_v11  ;;  %vm1059_vm6 = vcmp.eq.f32.partialorder %v2284_v46, %v1032_v12 }
 0x46d   : > { %v2361_v13 = vsel %vm1060_vm5, -3.4028235e+38, %v2281_v42  ;;  %v2364_v14 = vsel %vm1059_vm6, -3.4028235e+38, %v2284_v46 }
 0x46e   : > { %1097 = vmax.xlane.f32.xlu1 %v2361_v13  ;;  %1095 = vmax.xlane.f32.xlu0 %v2364_v14 }
 0x46f   : > { %v1038_v15 = vpop.xlane.xlu1 %1037  ;;  %v1036_v16 = vpop.xlane.xlu0 %1035 }
 0x470   : > { %vm1062_vm7 = vcmp.eq.f32.partialorder %v2291_v49, %v1038_v15  ;;  %vm1061_vm8 = vcmp.eq.f32.partialorder %v2294_v50, %v1036_v16 }
 0x471   : > { %v2371_v18 = vsel %vm1062_vm7, -3.4028235e+38, %v2291_v49  ;;  %v2374_v19 = vsel %vm1061_vm8, -3.4028235e+38, %v2294_v50 }
 0x472   : > { %1101 = vmax.xlane.f32.xlu1 %v2371_v18  ;;  %1099 = vmax.xlane.f32.xlu0 %v2374_v19 }
 0x473   : > { %v1042_v21 = vpop.xlane.xlu1 %1041  ;;  %v1040_v22 = vpop.xlane.xlu0 %1039 }
 0x474   : > { %vm1064_vm9 = vcmp.eq.f32.partialorder %v2301_v53, %v1042_v21  ;;  %vm1063_vm10 = vcmp.eq.f32.partialorder %v2304_v54, %v1040_v22 }
 0x475   : > { %v2381_v23 = vsel %vm1064_vm9, -3.4028235e+38, %v2301_v53  ;;  %v2384_v24 = vsel %vm1063_vm10, -3.4028235e+38, %v2304_v54 }
 0x476   : > { %1105 = vmax.xlane.f32.xlu1 %v2381_v23  ;;  %1103 = vmax.xlane.f32.xlu0 %v2384_v24 }
 0x477   : > { %v1046_v25 = vpop.xlane.xlu1 %1045  ;;  %v1044_v26 = vpop.xlane.xlu0 %1043 }
 0x478   : > { %vm1066_vm11 = vcmp.eq.f32.partialorder %v2311_v57, %v1046_v25  ;;  %vm1065_vm12 = vcmp.eq.f32.partialorder %v2314_v58, %v1044_v26  ;;  %v1619_v25 = vld [vmem:[%s1833_s12 + $0x38] sm:$0xff]  ;;  %v1620_v26 = vld [vmem:[%s1833_s12 + $0x30] sm:$0xff] }
 0x479   : > { %v2391_v27 = vsel %vm1066_vm11, -3.4028235e+38, %v2311_v57  ;;  %v2394_v28 = vsel %vm1065_vm12, -3.4028235e+38, %v2314_v58 }
 0x47a   : > { %1109 = vmax.xlane.f32.xlu1 %v2391_v27  ;;  %1107 = vmax.xlane.f32.xlu0 %v2394_v28 }
 0x47b   : > { %v1050_v29 = vpop.xlane.xlu1 %1049  ;;  %v1048_v30 = vpop.xlane.xlu0 %1047 }
 0x47c   : > { %vm1068_vm13 = vcmp.eq.f32.partialorder %v2321_v61, %v1050_v29  ;;  %vm1067_vm14 = vcmp.eq.f32.partialorder %v2324_v62, %v1048_v30 }
 0x47d   : > { %v2401_v31 = vsel %vm1068_vm13, -3.4028235e+38, %v2321_v61  ;;  %v2404_v33 = vsel %vm1067_vm14, -3.4028235e+38, %v2324_v62 }
 0x47e   : > { %1113 = vmax.xlane.f32.xlu1 %v2401_v31  ;;  %1111 = vmax.xlane.f32.xlu0 %v2404_v33 }
 0x47f   : > { %v1054_v34 = vpop.xlane.xlu1 %1053  ;;  %v1052_v35 = vpop.xlane.xlu0 %1051 }
 0x480   : > { %vm1070_vm15 = vcmp.eq.f32.partialorder %v2331_v1, %v1054_v34  ;;  %vm1069_vm0 = vcmp.eq.f32.partialorder %v2334_v2, %v1052_v35 }
 0x481   : > { %v2411_v36 = vsel %vm1070_vm15, -3.4028235e+38, %v2331_v1  ;;  %v2414_v37 = vsel %vm1069_vm0, -3.4028235e+38, %v2334_v2 }
 0x482   : > { %1117 = vmax.xlane.f32.xlu1 %v2411_v36  ;;  %1115 = vmax.xlane.f32.xlu0 %v2414_v37 }
 0x4ef   : > { %v1090_v38 = vpop.xlane.xlu1 %1089 }
 0x4f0   : > { %vm1120_vm1 = vcmp.eq.f32.partialorder %v2340_v4, %v1090_v38  ;;  %v1623_v38 = vld [vmem:[%s1833_s12 + $0x58] sm:$0xff] }
 0x4f1   : > { %v1136_v39 = vsel %vm1120_vm1, -3.4028235e+38, %v2340_v4  ;;  %v1613_v4 = vld [vmem:[%s1833_s12 + $0x8] sm:$0xff] }
 0x4f2   : > { %1153 = vmax.xlane.f32.xlu1 %v1136_v39  ;;  %v1624_v39 = vld [vmem:[%s1833_s12 + $0x50] sm:$0xff] }
 0x4f3   : > { %v1094_v20 = vpop.xlane.xlu1 %1093  ;;  %v1088_v40 = vpop.xlane.xlu0 %1087 }
 0x4f4   : > { %vm1122_vm2 = vcmp.eq.f32.partialorder %v2346_v7, %v1094_v20  ;;  %vm1119_vm3 = vcmp.eq.f32.partialorder %v2349_v8, %v1088_v40 }
 0x4f5   : > { %v1138_v43 = vsel %vm1122_vm2, -3.4028235e+38, %v2346_v7  ;;  %v1135_v17 = vsel %vm1119_vm3, -3.4028235e+38, %v2349_v8  ;;  %v1614_v8 = vld [vmem:[%s1833_s12 + $0x18] sm:$0xff] }
 0x4f6   : > { %1157 = vmax.xlane.f32.xlu1 %v1138_v43  ;;  %1151 = vmax.xlane.f32.xlu0 %v1135_v17 }
 0x4f7   : > { %v1092_v32 = vpop.xlane.xlu0 %1091 }
 0x4f8   : > { %vm1121_vm4 = vcmp.eq.f32.partialorder %v2355_v10, %v1092_v32  ;;  %v1625_v32 = vld [vmem:[%s1833_s12 + $0x68] sm:$0xff] }
 0x4f9   : > { %v1137_v44 = vsel %vm1121_vm4, -3.4028235e+38, %v2355_v10 }
 0x4fa   : > { %1155 = vmax.xlane.f32.xlu0 %v1137_v44  ;;  %v1626_v44 = vld [vmem:[%s1833_s12 + $0x60] sm:$0xff] }
 0x4fb   : > { %v1098_v45 = vpop.xlane.xlu1 %1097  ;;  %v1096_v41 = vpop.xlane.xlu0 %1095 }
 0x4fc   : > { %vm1124_vm5 = vcmp.eq.f32.partialorder %v2361_v13, %v1098_v45  ;;  %vm1123_vm6 = vcmp.eq.f32.partialorder %v2364_v14, %v1096_v41 }
 0x4fd   : > { %v1140_v42 = vsel %vm1124_vm5, -3.4028235e+38, %v2361_v13  ;;  %v1139_v46 = vsel %vm1123_vm6, -3.4028235e+38, %v2364_v14  ;;  %v1616_v13 = vld [vmem:[%s1833_s12 + $0x10] sm:$0xff] }
 0x4fe   : > { %1161 = vmax.xlane.f32.xlu1 %v1140_v42  ;;  %1159 = vmax.xlane.f32.xlu0 %v1139_v46 }
 0x4ff   : > { %v1102_v47 = vpop.xlane.xlu1 %1101  ;;  %v1100_v48 = vpop.xlane.xlu0 %1099 }
 0x500   : > { %vm1126_vm7 = vcmp.eq.f32.partialorder %v2371_v18, %v1102_v47  ;;  %vm1125_vm8 = vcmp.eq.f32.partialorder %v2374_v19, %v1100_v48  ;;  %v1627_v47 = vld [vmem:[%s1833_s12 + $0x78] sm:$0xff]  ;;  %v1628_v48 = vld [vmem:[%s1833_s12 + $0x70] sm:$0xff] }
 0x501   : > { %v1142_v49 = vsel %vm1126_vm7, -3.4028235e+38, %v2371_v18  ;;  %v1141_v50 = vsel %vm1125_vm8, -3.4028235e+38, %v2374_v19  ;;  %v1617_v18 = vld [vmem:[%s1833_s12 + $0x28] sm:$0xff]  ;;  %v1618_v19 = vld [vmem:[%s1833_s12 + $0x20] sm:$0xff] }
 0x502   : > { %1165 = vmax.xlane.f32.xlu1 %v1142_v49  ;;  %1163 = vmax.xlane.f32.xlu0 %v1141_v50 }
 0x503   : > { %v1106_v51 = vpop.xlane.xlu1 %1105  ;;  %v1104_v52 = vpop.xlane.xlu0 %1103 }
 0x504   : > { %vm1128_vm9 = vcmp.eq.f32.partialorder %v2381_v23, %v1106_v51  ;;  %vm1127_vm10 = vcmp.eq.f32.partialorder %v2384_v24, %v1104_v52 }
 0x505   : > { %v1144_v53 = vsel %vm1128_vm9, -3.4028235e+38, %v2381_v23  ;;  %v1143_v54 = vsel %vm1127_vm10, -3.4028235e+38, %v2384_v24 }
 0x506   : > { %1169 = vmax.xlane.f32.xlu1 %v1144_v53  ;;  %1167 = vmax.xlane.f32.xlu0 %v1143_v54 }
 0x507   : > { %v1110_v55 = vpop.xlane.xlu1 %1109  ;;  %v1108_v56 = vpop.xlane.xlu0 %1107 }
 0x508   : > { %vm1130_vm11 = vcmp.eq.f32.partialorder %v2391_v27, %v1110_v55  ;;  %vm1129_vm12 = vcmp.eq.f32.partialorder %v2394_v28, %v1108_v56 }
 0x509   : > { %v1146_v57 = vsel %vm1130_vm11, -3.4028235e+38, %v2391_v27  ;;  %v1145_v58 = vsel %vm1129_vm12, -3.4028235e+38, %v2394_v28 }
 0x50a   : > { %1173 = vmax.xlane.f32.xlu1 %v1146_v57  ;;  %1171 = vmax.xlane.f32.xlu0 %v1145_v58 }
 0x50b   : > { %v1114_v59 = vpop.xlane.xlu1 %1113  ;;  %v1112_v60 = vpop.xlane.xlu0 %1111 }
 0x50c   : > { %vm1132_vm13 = vcmp.eq.f32.partialorder %v2401_v31, %v1114_v59  ;;  %vm1131_vm14 = vcmp.eq.f32.partialorder %v2404_v33, %v1112_v60 }
 0x50d   : > { %v1148_v61 = vsel %vm1132_vm13, -3.4028235e+38, %v2401_v31  ;;  %v1147_v62 = vsel %vm1131_vm14, -3.4028235e+38, %v2404_v33  ;;  %v1621_v31 = vld [vmem:[%s1833_s12 + $0x48] sm:$0xff]  ;;  %v1622_v33 = vld [vmem:[%s1833_s12 + $0x40] sm:$0xff] }
 0x50e   : > { %1177 = vmax.xlane.f32.xlu1 %v1148_v61  ;;  %1175 = vmax.xlane.f32.xlu0 %v1147_v62 }
 0x50f   : > { %v1118_v63 = vpop.xlane.xlu1 %1117  ;;  %v1116_v0 = vpop.xlane.xlu0 %1115 }
 0x510   : > { %vm1134_vm15 = vcmp.eq.f32.partialorder %v2411_v36, %v1118_v63  ;;  %vm1133_vm0 = vcmp.eq.f32.partialorder %v2414_v37, %v1116_v0 }
 0x511   : > { %v1150_v1 = vsel %vm1134_vm15, -3.4028235e+38, %v2411_v36  ;;  %v1149_v2 = vsel %vm1133_vm0, -3.4028235e+38, %v2414_v37 }
 0x512   : > { %1181 = vmax.xlane.f32.xlu1 %v1150_v1  ;;  %1179 = vmax.xlane.f32.xlu0 %v1149_v2 }
 0x57f   : > { %v1154_v3 = vpop.xlane.xlu1 %1153 }
 0x580   : > { %vm1184_vm1 = vcmp.ge.f32.partialorder %v1613_v4, %v1154_v3 }
 0x581   : > { %v1200_v5 = vsel %vm1184_vm1, %v1613_v4, 0.0 }
 0x582   : > { %1216 = vst [vmem:[%s2454_s11 + $0x8] sm:$0xff] %v1200_v5 }
 0x583   : > { %v1158_v6 = vpop.xlane.xlu1 %1157  ;;  %v1152_v7 = vpop.xlane.xlu0 %1151 }
 0x584   : > { %vm1186_vm2 = vcmp.ge.f32.partialorder %v1614_v8, %v1158_v6  ;;  %vm1183_vm3 = vcmp.ge.f32.partialorder %v1615_v9, %v1152_v7 }
 0x585   : > { %v1202_v10 = vsel %vm1186_vm2, %v1614_v8, 0.0  ;;  %v1199_v11 = vsel %vm1183_vm3, %v1615_v9, 0.0 }
 0x586   : > { %1218 = vst [vmem:[%s2454_s11 + $0x18] sm:$0xff] %v1202_v10  ;;  %1215 = vst [vmem:[%s2454_s11] sm:$0xff] %v1199_v11 }
 0x587   : > { %v1156_v12 = vpop.xlane.xlu0 %1155 }
 0x588   : > { %vm1185_vm4 = vcmp.ge.f32.partialorder %v1616_v13, %v1156_v12 }
 0x589   : > { %v1201_v14 = vsel %vm1185_vm4, %v1616_v13, 0.0 }
 0x58a   : > { %1217 = vst [vmem:[%s2454_s11 + $0x10] sm:$0xff] %v1201_v14 }
 0x58b   : > { %v1162_v15 = vpop.xlane.xlu1 %1161  ;;  %v1160_v16 = vpop.xlane.xlu0 %1159 }
 0x58c   : > { %vm1188_vm5 = vcmp.ge.f32.partialorder %v1617_v18, %v1162_v15  ;;  %vm1187_vm6 = vcmp.ge.f32.partialorder %v1618_v19, %v1160_v16 }
 0x58d   : > { %v1204_v21 = vsel %vm1188_vm5, %v1617_v18, 0.0  ;;  %v1203_v22 = vsel %vm1187_vm6, %v1618_v19, 0.0 }
 0x58e   : > { %1220 = vst [vmem:[%s2454_s11 + $0x28] sm:$0xff] %v1204_v21  ;;  %1219 = vst [vmem:[%s2454_s11 + $0x20] sm:$0xff] %v1203_v22 }
 0x58f   : > { %v1166_v23 = vpop.xlane.xlu1 %1165  ;;  %v1164_v24 = vpop.xlane.xlu0 %1163 }
 0x590   : > { %vm1190_vm7 = vcmp.ge.f32.partialorder %v1619_v25, %v1166_v23  ;;  %vm1189_vm8 = vcmp.ge.f32.partialorder %v1620_v26, %v1164_v24 }
 0x591   : > { %v1206_v27 = vsel %vm1190_vm7, %v1619_v25, 0.0  ;;  %v1205_v28 = vsel %vm1189_vm8, %v1620_v26, 0.0 }
 0x592   : > { %1222 = vst [vmem:[%s2454_s11 + $0x38] sm:$0xff] %v1206_v27  ;;  %1221 = vst [vmem:[%s2454_s11 + $0x30] sm:$0xff] %v1205_v28 }
 0x593   : > { %v1170_v29 = vpop.xlane.xlu1 %1169  ;;  %v1168_v30 = vpop.xlane.xlu0 %1167 }
 0x594   : > { %vm1192_vm9 = vcmp.ge.f32.partialorder %v1621_v31, %v1170_v29  ;;  %vm1191_vm10 = vcmp.ge.f32.partialorder %v1622_v33, %v1168_v30 }
 0x595   : > { %v1208_v34 = vsel %vm1192_vm9, %v1621_v31, 0.0  ;;  %v1207_v35 = vsel %vm1191_vm10, %v1622_v33, 0.0 }
 0x596   : > { %1224 = vst [vmem:[%s2454_s11 + $0x48] sm:$0xff] %v1208_v34  ;;  %1223 = vst [vmem:[%s2454_s11 + $0x40] sm:$0xff] %v1207_v35 }
 0x597   : > { %v1174_v36 = vpop.xlane.xlu1 %1173  ;;  %v1172_v37 = vpop.xlane.xlu0 %1171 }
 0x598   : > { %vm1194_vm11 = vcmp.ge.f32.partialorder %v1623_v38, %v1174_v36  ;;  %vm1193_vm12 = vcmp.ge.f32.partialorder %v1624_v39, %v1172_v37 }
 0x599   : > { %v1210_v20 = vsel %vm1194_vm11, %v1623_v38, 0.0  ;;  %v1209_v40 = vsel %vm1193_vm12, %v1624_v39, 0.0 }
 0x59a   : > { %1226 = vst [vmem:[%s2454_s11 + $0x58] sm:$0xff] %v1210_v20  ;;  %1225 = vst [vmem:[%s2454_s11 + $0x50] sm:$0xff] %v1209_v40 }
 0x59b   : > { %v1178_v43 = vpop.xlane.xlu1 %1177  ;;  %v1176_v17 = vpop.xlane.xlu0 %1175 }
 0x59c   : > { %vm1196_vm13 = vcmp.ge.f32.partialorder %v1625_v32, %v1178_v43  ;;  %vm1195_vm14 = vcmp.ge.f32.partialorder %v1626_v44, %v1176_v17 }
 0x59d   : > { %v1212_v45 = vsel %vm1196_vm13, %v1625_v32, 0.0  ;;  %v1211_v41 = vsel %vm1195_vm14, %v1626_v44, 0.0 }
 0x59e   : > { %1228 = vst [vmem:[%s2454_s11 + $0x68] sm:$0xff] %v1212_v45  ;;  %1227 = vst [vmem:[%s2454_s11 + $0x60] sm:$0xff] %v1211_v41 }
 0x59f   : > { %v1182_v42 = vpop.xlane.xlu1 %1181  ;;  %v1180_v46 = vpop.xlane.xlu0 %1179 }
 0x5a0   : > { %vm1198_vm15 = vcmp.ge.f32.partialorder %v1627_v47, %v1182_v42  ;;  %vm1197_vm0 = vcmp.ge.f32.partialorder %v1628_v48, %v1180_v46 }
 0x5a1   : > { %v1214_v49 = vsel %vm1198_vm15, %v1627_v47, 0.0  ;;  %v1213_v50 = vsel %vm1197_vm0, %v1628_v48, 0.0 }
 0x5a2   : > { %1230 = vst [vmem:[%s2454_s11 + $0x78] sm:$0xff] %v1214_v49  ;;  %1229 = vst [vmem:[%s2454_s11 + $0x70] sm:$0xff] %v1213_v50 }
 0x5a3 PF: > { %s17_s21 = sadd.s32 1, %s1635_s21  }
 0x5a4   : > { %p14_p4 = scmp.ge.s32.totalorder %s17_s21, 4  }
 0x5a6   :  { %16 = sbr.rel (!%p14_p4) target bundleno = 1 (0x1), region = 85 }

// kernel: maxk_sage_forward.10
= control target key start
LH: loop header
LB: loop body
LE: loop exit
PB: predicated region body
PF: predicated region fallthrough
CT: control target
= control target key end

     0   :  { %s1027_s18 = smov 0   ;;  %s1223_s0 = inlined_call_operand.vmem [shape: f32[256,128], index: 0, kind: input, shape index: {}]   ;;  %s1224_s1 = inlined_call_operand.vmem [shape: f32[256,128], index: 1, kind: input, shape index: {}]   ;;  %s1225_s2 = inlined_call_operand.vmem [shape: f32[128,128], index: 2, kind: input, shape index: {}]   ;;  %s1226_s3 = inlined_call_operand.vmem [shape: f32[128,128], index: 3, kind: input, shape index: {}]   ;;  %s1227_s4 = inlined_call_operand.vmem [shape: f32[1,128], index: 4, kind: input, shape index: {}]   ;;  %s1228_s5 = inlined_call_operand.vmem [shape: f32[256,128], index: 5, kind: output, shape index: {}]  }
   0x1 LB: > { %s711_s19 = sadd.s32 4294967295, %s995_s18   ;;  %p715_p0 = scmp.ge.s32.totalorder %s995_s18, 1  ;;  %s995_s18 = sphi %s1027_s18, %s15_s18  }
   0x2   : > { %p199_p1 = scmp.lt.s32.totalorder %s995_s18, 3 }
   0x4   : > { %p200_p2 = pnand %p715_p0, %p199_p1 }
   0x5   : > { %v298_v0 = vld [vmem:[%s1226_s3] sm:$0xff] (!%p200_p2)  ;;  %v299_v1 = vld [vmem:[%s1226_s3 + $0x8] sm:$0xff] (!%p200_p2)  ;;  %s716_s26 = sshll.u32 (!%p200_p2), %s711_s19, 4  ;;  %v300_v5 = vld [vmem:[%s1226_s3 + $0x10] sm:$0xff] (!%p200_p2) }
   0x6   : > { %203 = sbr.rel (%p200_p2) target bundleno = 287 (0x11f), region = 40  ;;  %v266_v2 = vld [vmem:[%s1225_s2] sm:$0xff] (!%p200_p2)  ;;  %v901_v3 = vpack.c.bf16 (!%p200_p2), %v299_v1, %v298_v0  ;;  %v267_v4 = vld [vmem:[%s1225_s2 + $0x8] sm:$0xff] (!%p200_p2)  ;;  %v301_v6 = vld [vmem:[%s1226_s3 + $0x18] sm:$0xff] (!%p200_p2)  ;;  %p233_p3 = scmp.lt.s32.totalorder (!%p200_p2), %s716_s26, 31 }
   0x7   : > { %v933_v7 = vpack.c.bf16 (!%p200_p2), %v267_v4, %v266_v2  ;;  %v905_v8 = vpack.c.bf16 (!%p200_p2), %v301_v6, %v300_v5  ;;  %v268_v9 = vld [vmem:[%s1225_s2 + $0x10] sm:$0xff] (!%p200_p2)  ;;  %v269_v10 = vld [vmem:[%s1225_s2 + $0x18] sm:$0xff] (!%p200_p2)  ;;  %v302_v11 = vld [vmem:[%s1226_s3 + $0x20] sm:$0xff] (!%p200_p2) }
   0x8   : > { %902 = vmatprep.subr.bf16.mxu1 (!%p200_p2), %v901_v3  ;;  %v937_v12 = vpack.c.bf16 (!%p200_p2), %v269_v10, %v268_v9  ;;  %v303_v13 = vld [vmem:[%s1226_s3 + $0x28] sm:$0xff] (!%p200_p2)  ;;  %v270_v14 = vld [vmem:[%s1225_s2 + $0x20] sm:$0xff] (!%p200_p2)  ;;  %v304_v18 = vld [vmem:[%s1226_s3 + $0x30] sm:$0xff] (!%p200_p2) }
   0x9   : > { %v271_v15 = vld [vmem:[%s1225_s2 + $0x28] sm:$0xff] (!%p200_p2)  ;;  %934 = vmatprep.subr.bf16.mxu0 (!%p200_p2), %v933_v7  ;;  %904 = vmatpush3.bf16.msra.mxu1 (!%p200_p2), %v901_v3  ;;  %v909_v16 = vpack.c.bf16 (!%p200_p2), %v303_v13, %v302_v11  ;;  %v305_v19 = vld [vmem:[%s1226_s3 + $0x38] sm:$0xff] (!%p200_p2)  ;;  %v272_v20 = vld [vmem:[%s1225_s2 + $0x30] sm:$0xff] (!%p200_p2) }
   0xa   : > { %936 = vmatpush3.bf16.msra.mxu0 (!%p200_p2), %v933_v7  ;;  %906 = vmatprep.subr.bf16.mxu1 (!%p200_p2), %v905_v8  ;;  %v941_v17 = vpack.c.bf16 (!%p200_p2), %v271_v15, %v270_v14  ;;  %v273_v21 = vld [vmem:[%s1225_s2 + $0x38] sm:$0xff] (!%p200_p2)  ;;  %v913_v22 = vpack.c.bf16 (!%p200_p2), %v305_v19, %v304_v18  ;;  %v306_v24 = vld [vmem:[%s1226_s3 + $0x40] sm:$0xff] (!%p200_p2)  ;;  %v307_v25 = vld [vmem:[%s1226_s3 + $0x48] sm:$0xff] (!%p200_p2) }
   0xb   : > { %938 = vmatprep.subr.bf16.mxu0 (!%p200_p2), %v937_v12  ;;  %v945_v23 = vpack.c.bf16 (!%p200_p2), %v273_v21, %v272_v20  ;;  %v274_v27 = vld [vmem:[%s1225_s2 + $0x40] sm:$0xff] (!%p200_p2)  ;;  %v275_v28 = vld [vmem:[%s1225_s2 + $0x48] sm:$0xff] (!%p200_p2)  ;;  %v917_v30 = vpack.c.bf16 (!%p200_p2), %v307_v25, %v306_v24  ;;  %v308_v32 = vld [vmem:[%s1226_s3 + $0x50] sm:$0xff] (!%p200_p2) }
   0xc   : > { %v949_v31 = vpack.c.bf16 (!%p200_p2), %v275_v28, %v274_v27  ;;  %v309_v33 = vld [vmem:[%s1226_s3 + $0x58] sm:$0xff] (!%p200_p2)  ;;  %v276_v34 = vld [vmem:[%s1225_s2 + $0x50] sm:$0xff] (!%p200_p2)  ;;  %v310_v38 = vld [vmem:[%s1226_s3 + $0x60] sm:$0xff] (!%p200_p2) }
   0xd   : > { %s1230_s26 = smov (!%p233_p3, %s716_s26), 31  ;;  %908 = vmatpush3.bf16.msra.mxu1 %v905_v8  ;;  %v277_v35 = vld [vmem:[%s1225_s2 + $0x58] sm:$0xff]  ;;  %v921_v36 = vpack.c.bf16 %v309_v33, %v308_v32  ;;  %v311_v39 = vld [vmem:[%s1226_s3 + $0x68] sm:$0xff]  ;;  %v278_v40 = vld [vmem:[%s1225_s2 + $0x60] sm:$0xff] }
   0xe   : > { %s1071_s21 = sshll.u32 %s1230_s26, 3  ;;  %940 = vmatpush3.bf16.msra.mxu0 %v937_v12  ;;  %910 = vmatprep.subr.bf16.mxu1 %v909_v16  ;;  %v953_v37 = vpack.c.bf16 %v277_v35, %v276_v34  ;;  %v279_v41 = vld [vmem:[%s1225_s2 + $0x68] sm:$0xff]  ;;  %v925_v42 = vpack.c.bf16 %v311_v39, %v310_v38  ;;  %v312_v44 = vld [vmem:[%s1226_s3 + $0x70] sm:$0xff]  ;;  %v313_v45 = vld [vmem:[%s1226_s3 + $0x78] sm:$0xff] }
   0xf   : > { %s1089_s7 = scalar_lea.vmem %s1224_s1, %s1071_s21  ;;  %s1095_s10 = scalar_lea.vmem %s1223_s0, %s1071_s21  ;;  %942 = vmatprep.subr.bf16.mxu0 %v941_v17  ;;  %v957_v43 = vpack.c.bf16 %v279_v41, %v278_v40  ;;  %v280_v46 = vld [vmem:[%s1225_s2 + $0x70] sm:$0xff]  ;;  %v281_v47 = vld [vmem:[%s1225_s2 + $0x78] sm:$0xff]  ;;  %v929_v48 = vpack.c.bf16 %v313_v45, %v312_v44  ;;  %v1180_v18 = vld [vmem:[%s1227_s4] ss:$0 sm:$0xff] }
  0x10   : > { %v282_v26 = vld [vmem:[%s1089_s7] sm:$0xff]  ;;  %v961_v49 = vpack.c.bf16 %v281_v47, %v280_v46  ;;  %v283_v50 = vld [vmem:[%s1089_s7 + $0x8] sm:$0xff]  ;;  %v284_v52 = vld [vmem:[%s1089_s7 + $0x10] sm:$0xff]  ;;  %s1186_s29 = scalar_lea.vmem %s1228_s5, %s1071_s21 }
  0x11   : > { %821 = vmatprep.mubr.f32.mxu1 %v282_v26  ;;  %v250_v29 = vld [vmem:[%s1095_s10] sm:$0xff]  ;;  %912 = vmatpush3.bf16.msra.mxu1 %v909_v16  ;;  %v251_v51 = vld [vmem:[%s1095_s10 + $0x8] sm:$0xff]  ;;  %v252_v53 = vld [vmem:[%s1095_s10 + $0x10] sm:$0xff] }
  0x12   : > { %877 = vmatprep.mubr.f32.mxu0 %v250_v29  ;;  %944 = vmatpush3.bf16.msra.mxu0 %v941_v17  ;;  %v285_v54 = vld [vmem:[%s1089_s7 + $0x18] sm:$0xff]  ;;  %v286_v56 = vld [vmem:[%s1089_s7 + $0x20] sm:$0xff]  ;;  %v287_v58 = vld [vmem:[%s1089_s7 + $0x28] sm:$0xff] }
  0x13   : > { %914 = vmatprep.subr.bf16.mxu1 %v913_v22  ;;  %946 = vmatprep.subr.bf16.mxu0 %v945_v23  ;;  %v253_v55 = vld [vmem:[%s1095_s10 + $0x18] sm:$0xff]  ;;  %v254_v57 = vld [vmem:[%s1095_s10 + $0x20] sm:$0xff]  ;;  %v255_v59 = vld [vmem:[%s1095_s10 + $0x28] sm:$0xff] }
  0x14   : > { %v288_v60 = vld [vmem:[%s1089_s7 + $0x30] sm:$0xff]  ;;  %v289_v62 = vld [vmem:[%s1089_s7 + $0x38] sm:$0xff]  ;;  %v290_v0 = vld [vmem:[%s1089_s7 + $0x40] sm:$0xff] }
  0x15   : > { %916 = vmatpush3.bf16.msra.mxu1 %v913_v22  ;;  %v256_v61 = vld [vmem:[%s1095_s10 + $0x30] sm:$0xff]  ;;  %v257_v63 = vld [vmem:[%s1095_s10 + $0x38] sm:$0xff]  ;;  %v258_v1 = vld [vmem:[%s1095_s10 + $0x40] sm:$0xff] }
  0x16   : > { %948 = vmatpush3.bf16.msra.mxu0 %v945_v23  ;;  %918 = vmatprep.subr.bf16.mxu1 %v917_v30  ;;  %v291_v2 = vld [vmem:[%s1089_s7 + $0x48] sm:$0xff]  ;;  %v292_v4 = vld [vmem:[%s1089_s7 + $0x50] sm:$0xff]  ;;  %v293_v6 = vld [vmem:[%s1089_s7 + $0x58] sm:$0xff] }
  0x17   : > { %950 = vmatprep.subr.bf16.mxu0 %v949_v31  ;;  %v259_v3 = vld [vmem:[%s1095_s10 + $0x48] sm:$0xff]  ;;  %v260_v5 = vld [vmem:[%s1095_s10 + $0x50] sm:$0xff]  ;;  %v261_v7 = vld [vmem:[%s1095_s10 + $0x58] sm:$0xff] }
  0x18   : > { %v294_v8 = vld [vmem:[%s1089_s7 + $0x60] sm:$0xff]  ;;  %v295_v10 = vld [vmem:[%s1089_s7 + $0x68] sm:$0xff]  ;;  %v296_v12 = vld [vmem:[%s1089_s7 + $0x70] sm:$0xff] }
  0x19   : > { %920 = vmatpush3.bf16.msra.mxu1 %v917_v30  ;;  %v262_v9 = vld [vmem:[%s1095_s10 + $0x60] sm:$0xff]  ;;  %v263_v11 = vld [vmem:[%s1095_s10 + $0x68] sm:$0xff]  ;;  %v264_v13 = vld [vmem:[%s1095_s10 + $0x70] sm:$0xff] }
  0x1a   : > { %952 = vmatpush3.bf16.msra.mxu0 %v949_v31  ;;  %922 = vmatprep.subr.bf16.mxu1 %v921_v36  ;;  %v297_v14 = vld [vmem:[%s1089_s7 + $0x78] sm:$0xff] }
  0x1b   : > { %954 = vmatprep.subr.bf16.mxu0 %v953_v37  ;;  %v265_v15 = vld [vmem:[%s1095_s10 + $0x78] sm:$0xff] }
  0x1d   : > { %924 = vmatpush3.bf16.msra.mxu1 %v921_v36 }
  0x1e   : > { %956 = vmatpush3.bf16.msra.mxu0 %v953_v37  ;;  %926 = vmatprep.subr.bf16.mxu1 %v925_v42 }
  0x1f   : > { %958 = vmatprep.subr.bf16.mxu0 %v957_v43 }
  0x21   : > { %928 = vmatpush3.bf16.msra.mxu1 %v925_v42 }
  0x22   : > { %960 = vmatpush3.bf16.msra.mxu0 %v957_v43  ;;  %930 = vmatprep.subr.bf16.mxu1 %v929_v48 }
  0x23   : > { %962 = vmatprep.subr.bf16.mxu0 %v961_v49 }
  0x25   : > { %932 = vmatpush3.bf16.msra.mxu1 %v929_v48 }
  0x26   : > { %964 = vmatpush3.bf16.msra.mxu0 %v961_v49 }
  0x28   : > { %822 = vmatmul.mubr.f32.vlgmr.msra.gmra.mrb[0].mxu1 %v283_v50 }
  0x29   : > { %878 = vmatmul.mubr.f32.vlgmr.msra.gmra.mrb[0].mxu0 %v251_v51  ;;  %824 = vmatprep.mubr.f32.mxu1 %v284_v52 }
  0x2a   : > { %880 = vmatprep.mubr.f32.mxu0 %v252_v53 }
  0x2c   : > { %825 = vmatmul.mubr.f32.gmra.mrb[2].mxu1 %v285_v54 }
  0x2d   : > { %881 = vmatmul.mubr.f32.gmra.mrb[2].mxu0 %v253_v55  ;;  %827 = vmatprep.mubr.f32.mxu1 %v286_v56 }
  0x2e   : > { %883 = vmatprep.mubr.f32.mxu0 %v254_v57 }
  0x30   : > { %828 = vmatmul.mubr.f32.gmra.mrb[4].mxu1 %v287_v58 }
  0x31   : > { %884 = vmatmul.mubr.f32.gmra.mrb[4].mxu0 %v255_v59  ;;  %830 = vmatprep.mubr.f32.mxu1 %v288_v60 }
  0x32   : > { %886 = vmatprep.mubr.f32.mxu0 %v256_v61 }
  0x34   : > { %831 = vmatmul.mubr.f32.gmra.mrb[6].mxu1 %v289_v62 }
  0x35   : > { %887 = vmatmul.mubr.f32.gmra.mrb[6].mxu0 %v257_v63  ;;  %833 = vmatprep.mubr.f32.mxu1 %v290_v0 }
  0x36   : > { %889 = vmatprep.mubr.f32.mxu0 %v258_v1 }
  0x38   : > { %834 = vmatmul.mubr.f32.gmra.mrb[8].mxu1 %v291_v2 }
  0x39   : > { %890 = vmatmul.mubr.f32.gmra.mrb[8].mxu0 %v259_v3  ;;  %836 = vmatprep.mubr.f32.mxu1 %v292_v4 }
  0x3a   : > { %892 = vmatprep.mubr.f32.mxu0 %v260_v5 }
  0x3c   : > { %837 = vmatmul.mubr.f32.gmra.mrb[10].mxu1 %v293_v6 }
  0x3d   : > { %893 = vmatmul.mubr.f32.gmra.mrb[10].mxu0 %v261_v7  ;;  %839 = vmatprep.mubr.f32.mxu1 %v294_v8 }
  0x3e   : > { %895 = vmatprep.mubr.f32.mxu0 %v262_v9 }
  0x40   : > { %840 = vmatmul.mubr.f32.gmra.mrb[12].mxu1 %v295_v10 }
  0x41   : > { %896 = vmatmul.mubr.f32.gmra.mrb[12].mxu0 %v263_v11  ;;  %842 = vmatprep.mubr.f32.mxu1 %v296_v12 }
  0x42   : > { %898 = vmatprep.mubr.f32.mxu0 %v264_v13 }
  0x44   : > { %843 = vmatmul.mubr.f32.gmra.mrb[14].mxu1 %v297_v14 }
  0x45   : > { %899 = vmatmul.mubr.f32.gmra.mrb[14].mxu0 %v265_v15 }
  0xfb   : > { %v823_v16 = vpop.f32.mrb[0].mxu1 }
  0xfc   : > { %v879_v17 = vpop.f32.mrb[0].mxu0  ;;  %v380_v19 = vpop.f32.mrb[1].mxu1 }
  0xfd   : > { %v531_v20 = vadd.f32 %v879_v17, %v823_v16  ;;  %v525_v21 = vpop.f32.mrb[1].mxu0 }
  0xfe   : > { %v526_v22 = vadd.f32 %v525_v21, %v380_v19 }
  0xff   : > { %v612_v23 = vadd.f32 %v1180_v18, %v531_v20  ;;  %v826_v24 = vpop.f32.mrb[2].mxu1 }
 0x100   : > { %v611_v25 = vadd.f32 %v1180_v18, %v526_v22  ;;  %v882_v26 = vpop.f32.mrb[2].mxu0  ;;  %v390_v27 = vpop.f32.mrb[3].mxu1 }
 0x101   : > { %628 = vst [vmem:[%s1186_s29 + $0x8] sm:$0xff] %v612_v23  ;;  %v541_v28 = vadd.f32 %v882_v26, %v826_v24  ;;  %v535_v29 = vpop.f32.mrb[3].mxu0 }
 0x102   : > { %627 = vst [vmem:[%s1186_s29] sm:$0xff] %v611_v25  ;;  %v536_v30 = vadd.f32 %v535_v29, %v390_v27 }
 0x103   : > { %v614_v31 = vadd.f32 %v1180_v18, %v541_v28  ;;  %v829_v32 = vpop.f32.mrb[4].mxu1 }
 0x104   : > { %v613_v33 = vadd.f32 %v1180_v18, %v536_v30  ;;  %v885_v34 = vpop.f32.mrb[4].mxu0  ;;  %v400_v35 = vpop.f32.mrb[5].mxu1 }
 0x105   : > { %630 = vst [vmem:[%s1186_s29 + $0x18] sm:$0xff] %v614_v31  ;;  %v551_v36 = vadd.f32 %v885_v34, %v829_v32  ;;  %v545_v37 = vpop.f32.mrb[5].mxu0 }
 0x106   : > { %629 = vst [vmem:[%s1186_s29 + $0x10] sm:$0xff] %v613_v33  ;;  %v546_v38 = vadd.f32 %v545_v37, %v400_v35 }
 0x107   : > { %v616_v39 = vadd.f32 %v1180_v18, %v551_v36  ;;  %v832_v40 = vpop.f32.mrb[6].mxu1 }
 0x108   : > { %v615_v41 = vadd.f32 %v1180_v18, %v546_v38  ;;  %v888_v42 = vpop.f32.mrb[6].mxu0  ;;  %v410_v43 = vpop.f32.mrb[7].mxu1 }
 0x109   : > { %632 = vst [vmem:[%s1186_s29 + $0x28] sm:$0xff] %v616_v39  ;;  %v561_v44 = vadd.f32 %v888_v42, %v832_v40  ;;  %v555_v45 = vpop.f32.mrb[7].mxu0 }
 0x10a   : > { %631 = vst [vmem:[%s1186_s29 + $0x20] sm:$0xff] %v615_v41  ;;  %v556_v46 = vadd.f32 %v555_v45, %v410_v43 }
 0x10b   : > { %v618_v47 = vadd.f32 %v1180_v18, %v561_v44  ;;  %v835_v48 = vpop.f32.mrb[8].mxu1 }
 0x10c   : > { %v617_v49 = vadd.f32 %v1180_v18, %v556_v46  ;;  %v891_v50 = vpop.f32.mrb[8].mxu0  ;;  %v420_v51 = vpop.f32.mrb[9].mxu1 }
 0x10d   : > { %634 = vst [vmem:[%s1186_s29 + $0x38] sm:$0xff] %v618_v47  ;;  %v571_v52 = vadd.f32 %v891_v50, %v835_v48  ;;  %v565_v53 = vpop.f32.mrb[9].mxu0 }
 0x10e   : > { %633 = vst [vmem:[%s1186_s29 + $0x30] sm:$0xff] %v617_v49  ;;  %v566_v54 = vadd.f32 %v565_v53, %v420_v51 }
 0x10f   : > { %v620_v55 = vadd.f32 %v1180_v18, %v571_v52  ;;  %v838_v56 = vpop.f32.mrb[10].mxu1 }
 0x110   : > { %v619_v57 = vadd.f32 %v1180_v18, %v566_v54  ;;  %v894_v58 = vpop.f32.mrb[10].mxu0  ;;  %v430_v59 = vpop.f32.mrb[11].mxu1 }
 0x111   : > { %636 = vst [vmem:[%s1186_s29 + $0x48] sm:$0xff] %v620_v55  ;;  %v581_v60 = vadd.f32 %v894_v58, %v838_v56  ;;  %v575_v61 = vpop.f32.mrb[11].mxu0 }
 0x112   : > { %635 = vst [vmem:[%s1186_s29 + $0x40] sm:$0xff] %v619_v57  ;;  %v576_v62 = vadd.f32 %v575_v61, %v430_v59 }
 0x113   : > { %v622_v63 = vadd.f32 %v1180_v18, %v581_v60  ;;  %v841_v0 = vpop.f32.mrb[12].mxu1 }
 0x114   : > { %v621_v1 = vadd.f32 %v1180_v18, %v576_v62  ;;  %v897_v2 = vpop.f32.mrb[12].mxu0  ;;  %v440_v3 = vpop.f32.mrb[13].mxu1 }
 0x115   : > { %638 = vst [vmem:[%s1186_s29 + $0x58] sm:$0xff] %v622_v63  ;;  %v591_v4 = vadd.f32 %v897_v2, %v841_v0  ;;  %v585_v5 = vpop.f32.mrb[13].mxu0 }
 0x116   : > { %637 = vst [vmem:[%s1186_s29 + $0x50] sm:$0xff] %v621_v1  ;;  %v586_v6 = vadd.f32 %v585_v5, %v440_v3 }
 0x117   : > { %v624_v7 = vadd.f32 %v1180_v18, %v591_v4  ;;  %v844_v8 = vpop.f32.mrb[14].mxu1 }
 0x118   : > { %v623_v9 = vadd.f32 %v1180_v18, %v586_v6  ;;  %v900_v10 = vpop.f32.mrb[14].mxu0  ;;  %v450_v11 = vpop.f32.mrb[15].mxu1 }
 0x119   : > { %640 = vst [vmem:[%s1186_s29 + $0x68] sm:$0xff] %v624_v7  ;;  %v601_v12 = vadd.f32 %v900_v10, %v844_v8  ;;  %v595_v13 = vpop.f32.mrb[15].mxu0 }
 0x11a   : > { %639 = vst [vmem:[%s1186_s29 + $0x60] sm:$0xff] %v623_v9  ;;  %v596_v14 = vadd.f32 %v595_v13, %v450_v11 }
 0x11b   : > { %v626_v15 = vadd.f32 %v1180_v18, %v601_v12 }
 0x11c   : > { %v625_v16 = vadd.f32 %v1180_v18, %v596_v14 }
 0x11d   : > { %642 = vst [vmem:[%s1186_s29 + $0x78] sm:$0xff] %v626_v15 }
 0x11e   : > { %641 = vst [vmem:[%s1186_s29 + $0x70] sm:$0xff] %v625_v16 }
 0x11f PF: > { %s15_s18 = sadd.s32 1, %s995_s18  }
 0x120   : > { %p12_p4 = scmp.ge.s32.totalorder %s15_s18, 4  }
 0x122   :  { %14 = sbr.rel (!%p12_p4) target bundleno = 1 (0x1), region = 73 }

// kernel: maxk_sage_forward.7
= control target key start
LH: loop header
LB: loop body
LE: loop exit
PB: predicated region body
PF: predicated region fallthrough
CT: control target
= control target key end

     0   :  { %s1178_s12 = smov 0   ;;  %s1180_s13 = smov 0   ;;  %s1421_s0 = inlined_call_operand.vmem [shape: bf16[256,256], index: 0, kind: input, shape index: {}]   ;;  %s1422_s1 = inlined_call_operand.vmem [shape: f32[256,128], index: 1, kind: input, shape index: {}]   ;;  %s1423_s2 = inlined_call_operand.vmem [shape: f32[256,1], index: 2, kind: input, shape index: {}]   ;;  %s1424_s3 = inlined_call_operand.vmem [shape: f32[256,128], index: 3, kind: output, shape index: {}]  }
   0x1   :  { %s1182_s14 = smov 0   ;;  %s1184_s15 = smov 0  }
   0x2   :  { %s1186_s16 = smov 0   ;;  %s1188_s17 = smov 0  }
   0x3   :  { %s1190_s18 = smov 0  }
   0x4 LB: > { %s22_s19 = sadd.s32 1, %s1146_s16  ;;  %s25_s20 = sadd.s32 1, %s1150_s17  ;;  %s1154_s18 = sphi %s1190_s18, %s13_s18   ;;  %s1150_s17 = sphi %s1188_s17, %s1430_s17   ;;  %s1146_s16 = sphi %s1186_s16, %s1429_s16   ;;  %s1142_s15 = sphi %s1184_s15, %s1428_s15   ;;  %s1138_s14 = sphi %s1182_s14, %s1427_s14   ;;  %s1134_s13 = sphi %s1180_s13, %s1426_s13   ;;  %s1130_s12 = sphi %s1178_s12, %s1425_s12  }
   0x5   : > { %p23_p0 = scmp.ge.s32.totalorder %s22_s19, 2  ;;  %p41_p1 = scmp.ne.s32.totalorder %s1134_s13, %s1130_s12 }
   0x6   : > { %p42_p2 = scmp.eq.s32.totalorder %s1154_s18, 0  ;;  %s34_s24 = sadd.s32 1, %s1134_s13 }
   0x7   : > { %s1432_s19 = smov (%p23_p0, %s22_s19), 0  ;;  %s1434_s20 = smov (!%p23_p0, %s25_s20), %s1150_s17 }
   0x8   : > { %p43_p3 = por %p42_p2, %p41_p1  ;;  %p27_p4 = scmp.ge.s32.totalorder %s1434_s20, 2 }
   0x9   : > { %s30_s21 = ssub.s32 %s1146_s16, %s1432_s19  ;;  %p847_p6 = scmp.ge.s32.totalorder %s1154_s18, 4 }
   0xa   : > { %s1436_s20 = smov (%p27_p4, %s1434_s20), 0 }
   0xb   : > { %s29_s22 = ssub.s32 %s1150_s17, %s1436_s20  ;;  %145 = sbr.rel (%p847_p6) target bundleno = 34 (0x22), region = 16 }
   0xc   : > { %s31_s23 = sor.u32 %s30_s21, %s29_s22 }
   0xd   : > { %p32_p5 = scmp.eq.s32.totalorder %s31_s23, 0 }
   0xf   : > { %s1229_s25 = scalar_select %p32_p5, %s1134_s13, %s34_s24  }
  0x12   : > { %148 = sbr.rel (!%p43_p3) target bundleno = 34 (0x22), region = 20  ;;  %s150_s26 = sand.u32 (%p43_p3), 1, %s1134_s13  }
  0x13   : > { %s864_s27 = sshll.u32 (%p43_p3), %s1150_s17, 5  ;;  %s848_s28 = sshll.u32 (%p43_p3), %s150_s26, 6 }
  0x14   : > { %s155_s29 = sadd.s32 (%p43_p3), %s1146_s16, %s864_s27  ;;  %s152_s7 = scalar_lea.vmem (%p43_p3), [#allocation2], %s848_s28 }
  0x15   : > { %s851_s30 = sshll.u32 (%p43_p3), %s155_s29, 2 }
  0x16   : > { %s1238_s6 = scalar_lea.vmem (%p43_p3), %s1421_s0, %s851_s30 }
  0x17   : > { %v173_v0 = vld [vmem:[%s1238_s6] sm:$0xf] (%p43_p3)  ;;  %v175_v1 = vld [vmem:[%s1238_s6 + $0x8] sm:$0xf] (%p43_p3)  ;;  %v177_v2 = vld [vmem:[%s1238_s6 + $0x10] sm:$0xf] (%p43_p3) }
  0x18   : > { %174 = vst [vmem:[%s152_s7] sm:$0xf] (%p43_p3), %v173_v0  ;;  %176 = vst [vmem:[%s152_s7 + $0x4] sm:$0xf] (%p43_p3), %v175_v1  ;;  %v179_v3 = vld [vmem:[%s1238_s6 + $0x18] sm:$0xf] (%p43_p3) }
  0x19   : > { %178 = vst [vmem:[%s152_s7 + $0x8] sm:$0xf] %v177_v2  ;;  %v181_v4 = vld [vmem:[%s1238_s6 + $0x20] sm:$0xf]  ;;  %v183_v5 = vld [vmem:[%s1238_s6 + $0x28] sm:$0xf] }
  0x1a   : > { %180 = vst [vmem:[%s152_s7 + $0xc] sm:$0xf] %v179_v3  ;;  %182 = vst [vmem:[%s152_s7 + $0x10] sm:$0xf] %v181_v4  ;;  %v185_v6 = vld [vmem:[%s1238_s6 + $0x30] sm:$0xf] }
  0x1b   : > { %184 = vst [vmem:[%s152_s7 + $0x14] sm:$0xf] %v183_v5  ;;  %v187_v7 = vld [vmem:[%s1238_s6 + $0x38] sm:$0xf]  ;;  %v189_v8 = vld [vmem:[%s1238_s6 + $0x40] sm:$0xf] }
  0x1c   : > { %186 = vst [vmem:[%s152_s7 + $0x18] sm:$0xf] %v185_v6  ;;  %188 = vst [vmem:[%s152_s7 + $0x1c] sm:$0xf] %v187_v7  ;;  %v191_v9 = vld [vmem:[%s1238_s6 + $0x48] sm:$0xf] }
  0x1d   : > { %190 = vst [vmem:[%s152_s7 + $0x20] sm:$0xf] %v189_v8  ;;  %v193_v10 = vld [vmem:[%s1238_s6 + $0x50] sm:$0xf]  ;;  %v195_v11 = vld [vmem:[%s1238_s6 + $0x58] sm:$0xf] }
  0x1e   : > { %192 = vst [vmem:[%s152_s7 + $0x24] sm:$0xf] %v191_v9  ;;  %194 = vst [vmem:[%s152_s7 + $0x28] sm:$0xf] %v193_v10  ;;  %v197_v12 = vld [vmem:[%s1238_s6 + $0x60] sm:$0xf] }
  0x1f   : > { %196 = vst [vmem:[%s152_s7 + $0x2c] sm:$0xf] %v195_v11  ;;  %v199_v13 = vld [vmem:[%s1238_s6 + $0x68] sm:$0xf]  ;;  %v201_v14 = vld [vmem:[%s1238_s6 + $0x70] sm:$0xf] }
  0x20   : > { %198 = vst [vmem:[%s152_s7 + $0x30] sm:$0xf] %v197_v12  ;;  %200 = vst [vmem:[%s152_s7 + $0x34] sm:$0xf] %v199_v13  ;;  %v203_v15 = vld [vmem:[%s1238_s6 + $0x78] sm:$0xf] }
  0x21   : > { %202 = vst [vmem:[%s152_s7 + $0x38] sm:$0xf] %v201_v14  ;;  %204 = vst [vmem:[%s152_s7 + $0x3c] sm:$0xf] %v203_v15 }
  0x22 PF: > { %p852_p7 = scmp.ge.s32.totalorder %s1154_s18, 1  ;;  %p276_p8 = scmp.lt.s32.totalorder %s1154_s18, 5 }
  0x24   : > { %p277_p9 = pnand %p852_p7, %p276_p8 }
  0x25   : > { %s283_s8 = sand.u32 (!%p277_p9), 1, %s1130_s12   ;;  %s854_s9 = sshll.u32 (!%p277_p9), %s1138_s14, 4 }
  0x26   : > { %280 = sbr.rel (%p277_p9) target bundleno = 436 (0x1b4), region = 69  ;;  %s853_s10 = sshll.u32 (!%p277_p9), %s283_s8, 6 }
  0x27   : > { %p318_p10 = scmp.lt.s32.totalorder (!%p277_p9), %s854_s9, 31  ;;  %s856_s11 = sshll.u32 (!%p277_p9), %s1142_s15, 4 }
  0x28   : > { %p324_p11 = scmp.lt.s32.totalorder (!%p277_p9), %s856_s11, 31  ;;  %s1276_s15 = scalar_lea.vmem (!%p277_p9), [#allocation2], %s853_s10 }
  0x29   : > { %p860_p12 = scmp.ne.s32.totalorder (!%p277_p9), %s1138_s14, 0 }
  0x2d   : > { %s1438_s9 = smov (!%p318_p10, %s854_s9), 31  ;;  %s1440_s11 = smov (!%p324_p11, %s856_s11), 31 }
  0x2e   : > { %s855_s21 = sshll.u32 %s1438_s9, 3  ;;  %s857_s26 = sshll.u32 %s1440_s11, 3  ;;  %v1156_v16 = vmov (!%p860_p12), 0.0  }
  0x2f   : > { %s1264_s24 = scalar_lea.vmem %s1422_s1, %s855_s21  ;;  %s1269_s29 = scalar_lea.vmem %s1423_s2, %s857_s26 }
  0x30   : > { %s1274_s4 = scalar_lea.vmem %s1424_s3, %s857_s26  ;;  %338 = sbr.rel (%p860_p12) target bundleno = 57 (0x39), region = 77 }
  0x31   : > { %339 = vst [vmem:[%s1274_s4] sm:$0xff] (!%p860_p12), %v1156_v16  ;;  %340 = vst [vmem:[%s1274_s4 + $0x8] sm:$0xff] (!%p860_p12), %v1156_v16 }
  0x32   : > { %341 = vst [vmem:[%s1274_s4 + $0x10] sm:$0xff] (!%p860_p12), %v1156_v16  ;;  %342 = vst [vmem:[%s1274_s4 + $0x18] sm:$0xff] (!%p860_p12), %v1156_v16 }
  0x33   : > { %343 = vst [vmem:[%s1274_s4 + $0x20] sm:$0xff] (!%p860_p12), %v1156_v16  ;;  %344 = vst [vmem:[%s1274_s4 + $0x28] sm:$0xff] (!%p860_p12), %v1156_v16 }
  0x34   : > { %345 = vst [vmem:[%s1274_s4 + $0x30] sm:$0xff] (!%p860_p12), %v1156_v16  ;;  %346 = vst [vmem:[%s1274_s4 + $0x38] sm:$0xff] (!%p860_p12), %v1156_v16 }
  0x35   : > { %347 = vst [vmem:[%s1274_s4 + $0x40] sm:$0xff] (!%p860_p12), %v1156_v16  ;;  %348 = vst [vmem:[%s1274_s4 + $0x48] sm:$0xff] (!%p860_p12), %v1156_v16 }
  0x36   : > { %349 = vst [vmem:[%s1274_s4 + $0x50] sm:$0xff] (!%p860_p12), %v1156_v16  ;;  %350 = vst [vmem:[%s1274_s4 + $0x58] sm:$0xff] (!%p860_p12), %v1156_v16 }
  0x37   : > { %351 = vst [vmem:[%s1274_s4 + $0x60] sm:$0xff] %v1156_v16  ;;  %352 = vst [vmem:[%s1274_s4 + $0x68] sm:$0xff] %v1156_v16 }
  0x38   : > { %353 = vst [vmem:[%s1274_s4 + $0x70] sm:$0xff] %v1156_v16  ;;  %354 = vst [vmem:[%s1274_s4 + $0x78] sm:$0xff] %v1156_v16 }
  0x39 PF: > { %v403_v17 = vld [vmem:[%s1264_s24] sm:$0xff]  ;;  %v404_v18 = vld [vmem:[%s1264_s24 + $0x8] sm:$0xff]  ;;  %v405_v19 = vld [vmem:[%s1264_s24 + $0x10] sm:$0xff]  ;;  %p861_p13 = scmp.ne.s32.totalorder %s1138_s14, 1 }
  0x3a   : > { %v992_v20 = vpack.c.bf16 %v404_v18, %v403_v17  ;;  %v406_v21 = vld [vmem:[%s1264_s24 + $0x18] sm:$0xff]  ;;  %v407_v23 = vld [vmem:[%s1264_s24 + $0x20] sm:$0xff]  ;;  %v408_v24 = vld [vmem:[%s1264_s24 + $0x28] sm:$0xff] }
  0x3b   : > { %v996_v22 = vpack.c.bf16 %v406_v21, %v405_v19  ;;  %v1000_v25 = vpack.c.bf16 %v408_v24, %v407_v23  ;;  %v866_v26 = vld [vmem:[%s1276_s15] sm:$0xff]   ;;  %v409_v28 = vld [vmem:[%s1264_s24 + $0x30] sm:$0xff]  ;;  %v410_v29 = vld [vmem:[%s1264_s24 + $0x38] sm:$0xff] }
  0x3c   : > { %993 = vmatprep.subr.bf16.mxu0 %v992_v20  ;;  %1024 = vmatprep.subr.bf16.mxu1 %v992_v20  ;;  %v900_v27 = vld [vmem:[%s1276_s15 + $0x20] sm:$0xff]   ;;  %v867_v30 = vunpack.c.l.bf16 %v866_v26  ;;  %v1004_v32 = vpack.c.bf16 %v410_v29, %v409_v28  ;;  %v412_v34 = vld [vmem:[%s1264_s24 + $0x48] sm:$0xff]  ;;  %v413_v36 = vld [vmem:[%s1264_s24 + $0x50] sm:$0xff]  ;;  %v868_v47 = vunpack.c.h.bf16 %v866_v26 }
  0x3d   : > { %995 = vmatpush3.bf16.msra.mxu0 %v992_v20  ;;  %1032 = vmatpush3.bf16.msra.mxu1 %v992_v20  ;;  %v883_v31 = vunpack.c.l.bf16 %v900_v27  ;;  %v411_v33 = vld [vmem:[%s1264_s24 + $0x40] sm:$0xff]  ;;  %v414_v37 = vld [vmem:[%s1264_s24 + $0x58] sm:$0xff]  ;;  %v416_v40 = vld [vmem:[%s1264_s24 + $0x68] sm:$0xff]  ;;  %v884_v48 = vunpack.c.h.bf16 %v900_v27 }
  0x3e   : > { %997 = vmatprep.subr.bf16.mxu0 %v996_v22  ;;  %1025 = vmatprep.subr.bf16.mxu1 %v996_v22  ;;  %v1008_v35 = vpack.c.bf16 %v412_v34, %v411_v33  ;;  %v1012_v38 = vpack.c.bf16 %v414_v37, %v413_v36  ;;  %v415_v39 = vld [vmem:[%s1264_s24 + $0x60] sm:$0xff]  ;;  %v417_v42 = vld [vmem:[%s1264_s24 + $0x70] sm:$0xff]  ;;  %v418_v43 = vld [vmem:[%s1264_s24 + $0x78] sm:$0xff] }
  0x3f   : > { %968 = vmatprep.mubr.f32.mxu0 %v867_v30  ;;  %980 = vmatprep.mubr.f32.mxu1 %v883_v31  ;;  %v1016_v41 = vpack.c.bf16 %v416_v40, %v415_v39  ;;  %v1020_v44 = vpack.c.bf16 %v418_v43, %v417_v42  ;;  %v897_v45 = vld [vmem:[%s1276_s15 + $0x8] sm:$0xff]   ;;  %v898_v51 = vld [vmem:[%s1276_s15 + $0x10] sm:$0xff]   ;;  %v899_v57 = vld [vmem:[%s1276_s15 + $0x18] sm:$0xff]  }
  0x40   : > { %v901_v46 = vld [vmem:[%s1276_s15 + $0x28] sm:$0xff]   ;;  %v871_v49 = vunpack.c.l.bf16 %v897_v45  ;;  %v902_v52 = vld [vmem:[%s1276_s15 + $0x30] sm:$0xff]   ;;  %v872_v53 = vunpack.c.h.bf16 %v897_v45  ;;  %v875_v55 = vunpack.c.l.bf16 %v898_v51  ;;  %v903_v58 = vld [vmem:[%s1276_s15 + $0x38] sm:$0xff]   ;;  %v876_v59 = vunpack.c.h.bf16 %v898_v51 }
  0x41   : > { %999 = vmatpush3.bf16.msra.mxu0 %v996_v22  ;;  %1033 = vmatpush3.bf16.msra.mxu1 %v996_v22  ;;  %v887_v50 = vunpack.c.l.bf16 %v901_v46  ;;  %v888_v54 = vunpack.c.h.bf16 %v901_v46  ;;  %v891_v56 = vunpack.c.l.bf16 %v902_v52  ;;  %v892_v60 = vunpack.c.h.bf16 %v902_v52  ;;  %v356_v1 = vld [vmem:[%s1274_s4 + $0x8] sm:$0xff]  ;;  %v355_v3 = vld [vmem:[%s1274_s4] sm:$0xff]  ;;  %v358_v13 = vld [vmem:[%s1274_s4 + $0x18] sm:$0xff] }
  0x42   : > { %1001 = vmatprep.subr.bf16.mxu0 %v1000_v25  ;;  %1026 = vmatprep.subr.bf16.mxu1 %v1000_v25  ;;  %v879_v61 = vunpack.c.l.bf16 %v899_v57  ;;  %v895_v62 = vunpack.c.l.bf16 %v903_v58  ;;  %v880_v63 = vunpack.c.h.bf16 %v899_v57  ;;  %v896_v0 = vunpack.c.h.bf16 %v903_v58  ;;  %v364_v2 = vld [vmem:[%s1274_s4 + $0x48] sm:$0xff]  ;;  %v363_v4 = vld [vmem:[%s1274_s4 + $0x40] sm:$0xff]  ;;  %v366_v14 = vld [vmem:[%s1274_s4 + $0x58] sm:$0xff] }
  0x43   : > { %v357_v15 = vld [vmem:[%s1274_s4 + $0x10] sm:$0xff]  ;;  %v368_v26 = vld [vmem:[%s1274_s4 + $0x68] sm:$0xff]  ;;  %v359_v27 = vld [vmem:[%s1274_s4 + $0x20] sm:$0xff]  ;;  %v1157_v51 = vmov (!%p861_p13), 0  }
  0x44   : > { %v365_v16 = vld [vmem:[%s1274_s4 + $0x50] sm:$0xff]  ;;  %v367_v28 = vld [vmem:[%s1274_s4 + $0x60] sm:$0xff]  ;;  %v362_v37 = vld [vmem:[%s1274_s4 + $0x38] sm:$0xff]  ;;  %1099 = vset.pattern.permute.xlu1 (!%p861_p13), %v1157_v51  ;;  %1098 = vset.pattern.permute.xlu0 (!%p861_p13), %v1157_v51 }
  0x45   : > { %1003 = vmatpush3.bf16.msra.mxu0 %v1000_v25  ;;  %1034 = vmatpush3.bf16.msra.mxu1 %v1000_v25  ;;  %v360_v25 = vld [vmem:[%s1274_s4 + $0x28] sm:$0xff]  ;;  %v361_v39 = vld [vmem:[%s1274_s4 + $0x30] sm:$0xff]  ;;  %v619_v52 = vld [vmem:[%s1269_s29 + $0x18] sm:$0xff] (!%p861_p13) }
  0x46   : > { %1005 = vmatprep.subr.bf16.mxu0 %v1004_v32  ;;  %1027 = vmatprep.subr.bf16.mxu1 %v1004_v32  ;;  %v369_v40 = vld [vmem:[%s1274_s4 + $0x70] sm:$0xff]  ;;  %v625_v58 = vld [vmem:[%s1269_s29 + $0x48] sm:$0xff] (!%p861_p13) }
  0x47   : > { %v622_v57 = vld [vmem:[%s1269_s29 + $0x30] sm:$0xff] (!%p861_p13) }
  0x49   : > { %1007 = vmatpush3.bf16.msra.mxu0 %v1004_v32  ;;  %1035 = vmatpush3.bf16.msra.mxu1 %v1004_v32 }
  0x4a   : > { %1009 = vmatprep.subr.bf16.mxu0 %v1008_v35  ;;  %1028 = vmatprep.subr.bf16.mxu1 %v1008_v35 }
  0x4d   : > { %1011 = vmatpush3.bf16.msra.mxu0 %v1008_v35  ;;  %1036 = vmatpush3.bf16.msra.mxu1 %v1008_v35 }
  0x4e   : > { %1013 = vmatprep.subr.bf16.mxu0 %v1012_v38  ;;  %1029 = vmatprep.subr.bf16.mxu1 %v1012_v38 }
  0x51   : > { %1015 = vmatpush3.bf16.msra.mxu0 %v1012_v38  ;;  %1037 = vmatpush3.bf16.msra.mxu1 %v1012_v38  ;;  %v370_v38 = vld [vmem:[%s1274_s4 + $0x78] sm:$0xff] }
  0x52   : > { %1017 = vmatprep.subr.bf16.mxu0 %v1016_v41  ;;  %1030 = vmatprep.subr.bf16.mxu1 %v1016_v41 }
  0x55   : > { %1019 = vmatpush3.bf16.msra.mxu0 %v1016_v41  ;;  %1038 = vmatpush3.bf16.msra.mxu1 %v1016_v41 }
  0x56   : > { %1021 = vmatprep.subr.bf16.mxu0 %v1020_v44  ;;  %1031 = vmatprep.subr.bf16.mxu1 %v1020_v44 }
  0x59   : > { %1023 = vmatpush3.bf16.msra.mxu0 %v1020_v44  ;;  %1039 = vmatpush3.bf16.msra.mxu1 %v1020_v44 }
  0x5c   : > { %969 = vmatmul.mubr.f32.vlgmr.msra.gmra.mrb[0].mxu0 %v868_v47  ;;  %981 = vmatmul.mubr.f32.vlgmr.msra.gmra.mrb[0].mxu1 %v884_v48 }
  0x5d   : > { %971 = vmatprep.mubr.f32.mxu0 %v871_v49  ;;  %983 = vmatprep.mubr.f32.mxu1 %v887_v50  ;;  %v618_v49 = vld [vmem:[%s1269_s29 + $0x10] sm:$0xff] (!%p861_p13)  ;;  %v616_v50 = vld [vmem:[%s1269_s29] sm:$0xff] (!%p861_p13) }
  0x5e   : > { %644 = vperm.xlu1 (!%p861_p13), %1099, %v618_v49   ;;  %634 = vperm.xlu0 (!%p861_p13), %1098, %v616_v50  }
  0x60   : > { %972 = vmatmul.mubr.f32.gmra.mrb[2].mxu0 %v872_v53  ;;  %984 = vmatmul.mubr.f32.gmra.mrb[2].mxu1 %v888_v54  ;;  %v617_v53 = vld [vmem:[%s1269_s29 + $0x8] sm:$0xff] (!%p861_p13) }
  0x61   : > { %974 = vmatprep.mubr.f32.mxu0 %v875_v55  ;;  %986 = vmatprep.mubr.f32.mxu1 %v891_v56  ;;  %v621_v54 = vld [vmem:[%s1269_s29 + $0x28] sm:$0xff] (!%p861_p13)  ;;  %v620_v55 = vld [vmem:[%s1269_s29 + $0x20] sm:$0xff] (!%p861_p13)  ;;  %v623_v56 = vld [vmem:[%s1269_s29 + $0x38] sm:$0xff] (!%p861_p13) }
  0x62   : > { %649 = vperm.xlu1 (!%p861_p13), %1099, %v619_v52   ;;  %639 = vperm.xlu0 (!%p861_p13), %1098, %v617_v53  }
  0x64   : > { %975 = vmatmul.mubr.f32.gmra.mrb[4].mxu0 %v876_v59  ;;  %987 = vmatmul.mubr.f32.gmra.mrb[4].mxu1 %v892_v60  ;;  %v624_v59 = vld [vmem:[%s1269_s29 + $0x40] sm:$0xff] (!%p861_p13)  ;;  %v627_v60 = vld [vmem:[%s1269_s29 + $0x58] sm:$0xff] (!%p861_p13) }
  0x65   : > { %977 = vmatprep.mubr.f32.mxu0 %v879_v61  ;;  %989 = vmatprep.mubr.f32.mxu1 %v895_v62  ;;  %v626_v61 = vld [vmem:[%s1269_s29 + $0x50] sm:$0xff] (!%p861_p13)  ;;  %v629_v62 = vld [vmem:[%s1269_s29 + $0x68] sm:$0xff] (!%p861_p13) }
  0x66   : > { %659 = vperm.xlu1 (!%p861_p13), %1099, %v621_v54   ;;  %654 = vperm.xlu0 (!%p861_p13), %1098, %v620_v55  }
  0x68   : > { %978 = vmatmul.mubr.f32.gmra.mrb[6].mxu0 %v880_v63  ;;  %990 = vmatmul.mubr.f32.gmra.mrb[6].mxu1 %v896_v0  ;;  %v628_v63 = vld [vmem:[%s1269_s29 + $0x60] sm:$0xff] (!%p861_p13)  ;;  %v631_v0 = vld [vmem:[%s1269_s29 + $0x78] sm:$0xff] (!%p861_p13) }
  0x6a   : > { %669 = vperm.xlu1 (!%p861_p13), %1099, %v623_v56   ;;  %664 = vperm.xlu0 (!%p861_p13), %1098, %v622_v57  }
  0x6e   : > { %679 = vperm.xlu1 (!%p861_p13), %1099, %v625_v58   ;;  %674 = vperm.xlu0 (!%p861_p13), %1098, %v624_v59  }
  0x72   : > { %689 = vperm.xlu1 (!%p861_p13), %1099, %v627_v60   ;;  %684 = vperm.xlu0 (!%p861_p13), %1098, %v626_v61  }
  0x76   : > { %699 = vperm.xlu1 (!%p861_p13), %1099, %v629_v62   ;;  %694 = vperm.xlu0 (!%p861_p13), %1098, %v628_v63  }
  0x7a   : > { %709 = vperm.xlu1 (!%p861_p13), %1099, %v631_v0  }
 0x12f   : > { %v970_v5 = vpop.f32.mrb[0].mxu0  ;;  %v982_v6 = vpop.f32.mrb[0].mxu1 }
 0x130   : > { %v565_v7 = vadd.f32 %v970_v5, %v356_v1  ;;  %v573_v8 = vadd.f32 %v982_v6, %v364_v2  ;;  %v485_v9 = vpop.f32.mrb[1].mxu0  ;;  %v525_v10 = vpop.f32.mrb[1].mxu1  ;;  %v630_v1 = vld [vmem:[%s1269_s29 + $0x70] sm:$0xff] (!%p861_p13) }
 0x131   : > { %v564_v11 = vadd.f32 %v485_v9, %v355_v3  ;;  %v572_v12 = vadd.f32 %v525_v10, %v363_v4  ;;  %704 = vperm.xlu0 (!%p861_p13), %1098, %v630_v1   ;;  %v645_v4 = vpop.permute.xlu1 (!%p861_p13), %644  ;;  %v635_v5 = vpop.permute.xlu0 (!%p861_p13), %634 }
 0x132   : > { %581 = vst [vmem:[%s1274_s4 + $0x8] sm:$0xff] %v565_v7  ;;  %589 = vst [vmem:[%s1274_s4 + $0x48] sm:$0xff] %v573_v8 }
 0x133   : > { %580 = vst [vmem:[%s1274_s4] sm:$0xff] %v564_v11  ;;  %588 = vst [vmem:[%s1274_s4 + $0x40] sm:$0xff] %v572_v12  ;;  %v973_v17 = vpop.f32.mrb[2].mxu0  ;;  %v985_v18 = vpop.f32.mrb[2].mxu1 }
 0x134   : > { %v567_v19 = vadd.f32 %v973_v17, %v358_v13  ;;  %v575_v20 = vadd.f32 %v985_v18, %v366_v14  ;;  %v495_v21 = vpop.f32.mrb[3].mxu0  ;;  %v535_v22 = vpop.f32.mrb[3].mxu1 }
 0x135   : > { %v566_v23 = vadd.f32 %v495_v21, %v357_v15  ;;  %v574_v24 = vadd.f32 %v535_v22, %v365_v16  ;;  %v650_v10 = vpop.permute.xlu1 (!%p861_p13), %649  ;;  %v640_v11 = vpop.permute.xlu0 (!%p861_p13), %639 }
 0x136   : > { %583 = vst [vmem:[%s1274_s4 + $0x18] sm:$0xff] %v567_v19  ;;  %591 = vst [vmem:[%s1274_s4 + $0x58] sm:$0xff] %v575_v20 }
 0x137   : > { %582 = vst [vmem:[%s1274_s4 + $0x10] sm:$0xff] %v566_v23  ;;  %590 = vst [vmem:[%s1274_s4 + $0x50] sm:$0xff] %v574_v24  ;;  %v976_v29 = vpop.f32.mrb[4].mxu0  ;;  %v988_v30 = vpop.f32.mrb[4].mxu1 }
 0x138   : > { %v569_v31 = vadd.f32 %v976_v29, %v360_v25  ;;  %v577_v32 = vadd.f32 %v988_v30, %v368_v26  ;;  %v505_v33 = vpop.f32.mrb[5].mxu0  ;;  %v545_v34 = vpop.f32.mrb[5].mxu1 }
 0x139   : > { %v568_v35 = vadd.f32 %v505_v33, %v359_v27  ;;  %v576_v36 = vadd.f32 %v545_v34, %v367_v28  ;;  %599 = sbr.rel (%p861_p13) target bundleno = 436 (0x1b4), region = 81  ;;  %v601_v9 = vld [vmem:[%s1274_s4 + $0x8] sm:$0xff] (!%p861_p13)  ;;  %v660_v16 = vpop.permute.xlu1 (!%p861_p13), %659  ;;  %v655_v17 = vpop.permute.xlu0 (!%p861_p13), %654 }
 0x13a   : > { %585 = vst [vmem:[%s1274_s4 + $0x28] sm:$0xff] %v569_v31  ;;  %593 = vst [vmem:[%s1274_s4 + $0x68] sm:$0xff] %v577_v32  ;;  %v600_v3 = vld [vmem:[%s1274_s4] sm:$0xff] (!%p861_p13)  ;;  %v713_v13 = vmul.f32 (!%p861_p13), %v640_v11, %v601_v9  ;;  %v609_v26 = vld [vmem:[%s1274_s4 + $0x48] sm:$0xff] (!%p861_p13) }
 0x13b   : > { %584 = vst [vmem:[%s1274_s4 + $0x20] sm:$0xff] %v568_v35  ;;  %592 = vst [vmem:[%s1274_s4 + $0x60] sm:$0xff] %v576_v36  ;;  %v979_v41 = vpop.f32.mrb[6].mxu0  ;;  %v991_v42 = vpop.f32.mrb[6].mxu1  ;;  %v712_v7 = vmul.f32 (!%p861_p13), %v635_v5, %v600_v3  ;;  %v608_v27 = vld [vmem:[%s1274_s4 + $0x40] sm:$0xff] (!%p861_p13) }
 0x13c   : > { %v571_v43 = vadd.f32 %v979_v41, %v362_v37  ;;  %v579_v44 = vadd.f32 %v991_v42, %v370_v38  ;;  %v515_v45 = vpop.f32.mrb[7].mxu0  ;;  %v555_v46 = vpop.f32.mrb[7].mxu1  ;;  %729 = vst [vmem:[%s1274_s4 + $0x8] sm:$0xff] (!%p861_p13), %v713_v13 }
 0x13d   : > { %v570_v47 = vadd.f32 %v515_v45, %v361_v39  ;;  %v578_v48 = vadd.f32 %v555_v46, %v369_v40  ;;  %v603_v8 = vld [vmem:[%s1274_s4 + $0x18] sm:$0xff] (!%p861_p13)  ;;  %728 = vst [vmem:[%s1274_s4] sm:$0xff] (!%p861_p13), %v712_v7  ;;  %v670_v22 = vpop.permute.xlu1 (!%p861_p13), %669  ;;  %v665_v23 = vpop.permute.xlu0 (!%p861_p13), %664 }
 0x13e   : > { %587 = vst [vmem:[%s1274_s4 + $0x38] sm:$0xff] %v571_v43  ;;  %595 = vst [vmem:[%s1274_s4 + $0x78] sm:$0xff] %v579_v44  ;;  %v602_v2 = vld [vmem:[%s1274_s4 + $0x10] sm:$0xff] (!%p861_p13)  ;;  %v715_v12 = vmul.f32 (!%p861_p13), %v650_v10, %v603_v8  ;;  %v611_v32 = vld [vmem:[%s1274_s4 + $0x58] sm:$0xff] (!%p861_p13) }
 0x13f   : > { %586 = vst [vmem:[%s1274_s4 + $0x30] sm:$0xff] %v570_v47  ;;  %594 = vst [vmem:[%s1274_s4 + $0x70] sm:$0xff] %v578_v48  ;;  %v714_v6 = vmul.f32 (!%p861_p13), %v645_v4, %v602_v2  ;;  %v610_v33 = vld [vmem:[%s1274_s4 + $0x50] sm:$0xff] (!%p861_p13) }
 0x140   : > { %731 = vst [vmem:[%s1274_s4 + $0x18] sm:$0xff] %v715_v12 }
 0x141   : > { %730 = vst [vmem:[%s1274_s4 + $0x10] sm:$0xff] %v714_v6  ;;  %v605_v14 = vld [vmem:[%s1274_s4 + $0x28] sm:$0xff]  ;;  %v680_v28 = vpop.permute.xlu1 %679  ;;  %v675_v29 = vpop.permute.xlu0 %674 }
 0x142   : > { %v604_v15 = vld [vmem:[%s1274_s4 + $0x20] sm:$0xff]  ;;  %v717_v18 = vmul.f32 %v660_v16, %v605_v14  ;;  %v721_v30 = vmul.f32 %v680_v28, %v609_v26  ;;  %v720_v31 = vmul.f32 %v675_v29, %v608_v27  ;;  %v613_v38 = vld [vmem:[%s1274_s4 + $0x68] sm:$0xff] }
 0x143   : > { %v716_v19 = vmul.f32 %v655_v17, %v604_v15  ;;  %v612_v39 = vld [vmem:[%s1274_s4 + $0x60] sm:$0xff] }
 0x144   : > { %733 = vst [vmem:[%s1274_s4 + $0x28] sm:$0xff] %v717_v18  ;;  %737 = vst [vmem:[%s1274_s4 + $0x48] sm:$0xff] %v721_v30 }
 0x145   : > { %v607_v20 = vld [vmem:[%s1274_s4 + $0x38] sm:$0xff]  ;;  %732 = vst [vmem:[%s1274_s4 + $0x20] sm:$0xff] %v716_v19  ;;  %736 = vst [vmem:[%s1274_s4 + $0x40] sm:$0xff] %v720_v31  ;;  %v690_v34 = vpop.permute.xlu1 %689  ;;  %v685_v35 = vpop.permute.xlu0 %684 }
 0x146   : > { %v606_v21 = vld [vmem:[%s1274_s4 + $0x30] sm:$0xff]  ;;  %v719_v24 = vmul.f32 %v670_v22, %v607_v20  ;;  %v723_v36 = vmul.f32 %v690_v34, %v611_v32  ;;  %v722_v37 = vmul.f32 %v685_v35, %v610_v33  ;;  %v615_v44 = vld [vmem:[%s1274_s4 + $0x78] sm:$0xff] }
 0x147   : > { %v718_v25 = vmul.f32 %v665_v23, %v606_v21  ;;  %v614_v45 = vld [vmem:[%s1274_s4 + $0x70] sm:$0xff] }
 0x148   : > { %735 = vst [vmem:[%s1274_s4 + $0x38] sm:$0xff] %v719_v24  ;;  %739 = vst [vmem:[%s1274_s4 + $0x58] sm:$0xff] %v723_v36 }
 0x149   : > { %734 = vst [vmem:[%s1274_s4 + $0x30] sm:$0xff] %v718_v25  ;;  %738 = vst [vmem:[%s1274_s4 + $0x50] sm:$0xff] %v722_v37  ;;  %v700_v40 = vpop.permute.xlu1 %699  ;;  %v695_v41 = vpop.permute.xlu0 %694 }
 0x14a   : > { %v725_v42 = vmul.f32 %v700_v40, %v613_v38  ;;  %v724_v43 = vmul.f32 %v695_v41, %v612_v39 }
 0x14c   : > { %741 = vst [vmem:[%s1274_s4 + $0x68] sm:$0xff] %v725_v42  ;;  %740 = vst [vmem:[%s1274_s4 + $0x60] sm:$0xff] %v724_v43 }
 0x14d   : > { %v710_v46 = vpop.permute.xlu1 %709 }
 0x14e   : > { %v727_v48 = vmul.f32 %v710_v46, %v615_v44 }
 0x150   : > { %743 = vst [vmem:[%s1274_s4 + $0x78] sm:$0xff] %v727_v48 }
 0x1b0   : > { %v705_v47 = vpop.permute.xlu0 %704 }
 0x1b1   : > { %v726_v49 = vmul.f32 %v705_v47, %v614_v45 }
 0x1b3   : > { %742 = vst [vmem:[%s1274_s4 + $0x70] sm:$0xff] %v726_v49 }
 0x1b4 PF: > { %s13_s18 = sadd.s32 1, %s1154_s18   ;;  %s1425_s12 = smov %s1134_s13 }
 0x1b5   : > { %p10_p0 = scmp.ge.s32.totalorder %s13_s18, 6   ;;  %s1426_s13 = smov %s1229_s25 }
 0x1b6   : > { %s1427_s14 = smov %s1146_s16  ;;  %s1428_s15 = smov %s1150_s17 }
 0x1b7   : > { %s1429_s16 = smov %s1432_s19  ;;  %s1430_s17 = smov %s1436_s20 }
 0x1b8   :  { %12 = sbr.rel (!%p10_p0) target bundleno = 4 (0x4), region = 122 }

// kernel: maxk_sage_forward.11
= control target key start
LH: loop header
LB: loop body
LE: loop exit
PB: predicated region body
PF: predicated region fallthrough
CT: control target
= control target key end

     0   :  { %s614_s12 = smov 0   ;;  %s725_s0 = inlined_call_operand.vmem [shape: f32[256,128], index: 0, kind: input, shape index: {}]   ;;  %s726_s1 = inlined_call_operand.vmem [shape: f32[128,128], index: 1, kind: input, shape index: {}]   ;;  %s727_s2 = inlined_call_operand.vmem [shape: f32[1,128], index: 2, kind: input, shape index: {}]   ;;  %s728_s3 = inlined_call_operand.vmem [shape: f32[256,128], index: 3, kind: output, shape index: {}]  }
   0x1 LB: > { %s430_s13 = sadd.s32 4294967295, %s592_s12   ;;  %p434_p0 = scmp.ge.s32.totalorder %s592_s12, 1  ;;  %s592_s12 = sphi %s614_s12, %s13_s12  }
   0x2   : > { %p138_p1 = scmp.lt.s32.totalorder %s592_s12, 3 }
   0x4   : > { %p139_p2 = pnand %p434_p0, %p138_p1 }
   0x5   : > { %v190_v0 = vld [vmem:[%s726_s1] sm:$0xff] (!%p139_p2)  ;;  %v191_v1 = vld [vmem:[%s726_s1 + $0x8] sm:$0xff] (!%p139_p2)  ;;  %v192_v2 = vld [vmem:[%s726_s1 + $0x10] sm:$0xff] (!%p139_p2)  ;;  %s435_s20 = sshll.u32 (!%p139_p2), %s430_s13, 4 }
   0x6   : > { %142 = sbr.rel (%p139_p2) target bundleno = 269 (0x10d), region = 32  ;;  %v530_v3 = vpack.c.bf16 (!%p139_p2), %v191_v1, %v190_v0  ;;  %v193_v4 = vld [vmem:[%s726_s1 + $0x18] sm:$0xff] (!%p139_p2)  ;;  %p163_p3 = scmp.lt.s32.totalorder (!%p139_p2), %s435_s20, 31  ;;  %v194_v6 = vld [vmem:[%s726_s1 + $0x20] sm:$0xff] (!%p139_p2)  ;;  %v195_v7 = vld [vmem:[%s726_s1 + $0x28] sm:$0xff] (!%p139_p2) }
   0x7   : > { %v534_v5 = vpack.c.bf16 (!%p139_p2), %v193_v4, %v192_v2  ;;  %v538_v8 = vpack.c.bf16 (!%p139_p2), %v195_v7, %v194_v6  ;;  %v196_v9 = vld [vmem:[%s726_s1 + $0x30] sm:$0xff] (!%p139_p2)  ;;  %v197_v10 = vld [vmem:[%s726_s1 + $0x38] sm:$0xff] (!%p139_p2)  ;;  %v198_v14 = vld [vmem:[%s726_s1 + $0x40] sm:$0xff] (!%p139_p2) }
   0x8   : > { %531 = vmatprep.subr.bf16.mxu0 (!%p139_p2), %v530_v3  ;;  %562 = vmatprep.subr.bf16.mxu1 (!%p139_p2), %v530_v3  ;;  %v542_v13 = vpack.c.bf16 (!%p139_p2), %v197_v10, %v196_v9  ;;  %v199_v15 = vld [vmem:[%s726_s1 + $0x48] sm:$0xff] (!%p139_p2)  ;;  %v200_v17 = vld [vmem:[%s726_s1 + $0x50] sm:$0xff] (!%p139_p2)  ;;  %v201_v18 = vld [vmem:[%s726_s1 + $0x58] sm:$0xff] (!%p139_p2) }
   0x9   : > { %533 = vmatpush3.bf16.msra.mxu0 (!%p139_p2), %v530_v3  ;;  %570 = vmatpush3.bf16.msra.mxu1 (!%p139_p2), %v530_v3  ;;  %v546_v16 = vpack.c.bf16 (!%p139_p2), %v199_v15, %v198_v14  ;;  %v550_v19 = vpack.c.bf16 (!%p139_p2), %v201_v18, %v200_v17  ;;  %v202_v20 = vld [vmem:[%s726_s1 + $0x60] sm:$0xff] (!%p139_p2)  ;;  %v203_v21 = vld [vmem:[%s726_s1 + $0x68] sm:$0xff] (!%p139_p2)  ;;  %v204_v23 = vld [vmem:[%s726_s1 + $0x70] sm:$0xff] (!%p139_p2) }
   0xa   : > { %535 = vmatprep.subr.bf16.mxu0 (!%p139_p2), %v534_v5  ;;  %563 = vmatprep.subr.bf16.mxu1 (!%p139_p2), %v534_v5  ;;  %v554_v22 = vpack.c.bf16 (!%p139_p2), %v203_v21, %v202_v20  ;;  %v205_v24 = vld [vmem:[%s726_s1 + $0x78] sm:$0xff] (!%p139_p2)  ;;  %v439_v40 = vld [vmem:[%s727_s2] ss:$0 sm:$0xff] (!%p139_p2) }
   0xb   : > { %v558_v25 = vpack.c.bf16 (!%p139_p2), %v205_v24, %v204_v23 }
   0xd   : > { %s730_s20 = smov (!%p163_p3, %s435_s20), 31  ;;  %537 = vmatpush3.bf16.msra.mxu0 %v534_v5  ;;  %571 = vmatpush3.bf16.msra.mxu1 %v534_v5 }
   0xe   : > { %s436_s27 = sshll.u32 %s730_s20, 3  ;;  %539 = vmatprep.subr.bf16.mxu0 %v538_v8  ;;  %564 = vmatprep.subr.bf16.mxu1 %v538_v8 }
   0xf   : > { %s654_s7 = scalar_lea.vmem %s725_s0, %s436_s27  ;;  %s704_s4 = scalar_lea.vmem %s728_s3, %s436_s27 }
  0x10   : > { %v174_v11 = vld [vmem:[%s654_s7] sm:$0xff]  ;;  %v175_v26 = vld [vmem:[%s654_s7 + $0x8] sm:$0xff]  ;;  %v176_v28 = vld [vmem:[%s654_s7 + $0x10] sm:$0xff] }
  0x11   : > { %v182_v12 = vld [vmem:[%s654_s7 + $0x40] sm:$0xff]  ;;  %506 = vmatprep.mubr.f32.mxu0 %v174_v11  ;;  %541 = vmatpush3.bf16.msra.mxu0 %v538_v8  ;;  %v183_v27 = vld [vmem:[%s654_s7 + $0x48] sm:$0xff]  ;;  %v184_v29 = vld [vmem:[%s654_s7 + $0x50] sm:$0xff] }
  0x12   : > { %518 = vmatprep.mubr.f32.mxu1 %v182_v12  ;;  %572 = vmatpush3.bf16.msra.mxu1 %v538_v8  ;;  %v177_v30 = vld [vmem:[%s654_s7 + $0x18] sm:$0xff]  ;;  %v178_v32 = vld [vmem:[%s654_s7 + $0x20] sm:$0xff]  ;;  %v179_v34 = vld [vmem:[%s654_s7 + $0x28] sm:$0xff] }
  0x13   : > { %543 = vmatprep.subr.bf16.mxu0 %v542_v13  ;;  %565 = vmatprep.subr.bf16.mxu1 %v542_v13  ;;  %v185_v31 = vld [vmem:[%s654_s7 + $0x58] sm:$0xff]  ;;  %v186_v33 = vld [vmem:[%s654_s7 + $0x60] sm:$0xff]  ;;  %v187_v35 = vld [vmem:[%s654_s7 + $0x68] sm:$0xff] }
  0x14   : > { %v180_v36 = vld [vmem:[%s654_s7 + $0x30] sm:$0xff]  ;;  %v181_v38 = vld [vmem:[%s654_s7 + $0x38] sm:$0xff] }
  0x15   : > { %545 = vmatpush3.bf16.msra.mxu0 %v542_v13  ;;  %v188_v37 = vld [vmem:[%s654_s7 + $0x70] sm:$0xff]  ;;  %v189_v39 = vld [vmem:[%s654_s7 + $0x78] sm:$0xff] }
  0x16   : > { %573 = vmatpush3.bf16.msra.mxu1 %v542_v13  ;;  %547 = vmatprep.subr.bf16.mxu0 %v546_v16 }
  0x17   : > { %566 = vmatprep.subr.bf16.mxu1 %v546_v16 }
  0x19   : > { %549 = vmatpush3.bf16.msra.mxu0 %v546_v16 }
  0x1a   : > { %574 = vmatpush3.bf16.msra.mxu1 %v546_v16  ;;  %551 = vmatprep.subr.bf16.mxu0 %v550_v19 }
  0x1b   : > { %567 = vmatprep.subr.bf16.mxu1 %v550_v19 }
  0x1d   : > { %553 = vmatpush3.bf16.msra.mxu0 %v550_v19 }
  0x1e   : > { %575 = vmatpush3.bf16.msra.mxu1 %v550_v19  ;;  %555 = vmatprep.subr.bf16.mxu0 %v554_v22 }
  0x1f   : > { %568 = vmatprep.subr.bf16.mxu1 %v554_v22 }
  0x21   : > { %557 = vmatpush3.bf16.msra.mxu0 %v554_v22 }
  0x22   : > { %576 = vmatpush3.bf16.msra.mxu1 %v554_v22  ;;  %559 = vmatprep.subr.bf16.mxu0 %v558_v25 }
  0x23   : > { %569 = vmatprep.subr.bf16.mxu1 %v558_v25 }
  0x25   : > { %561 = vmatpush3.bf16.msra.mxu0 %v558_v25 }
  0x26   : > { %577 = vmatpush3.bf16.msra.mxu1 %v558_v25 }
  0x28   : > { %507 = vmatmul.mubr.f32.vlgmr.msra.gmra.mrb[0].mxu0 %v175_v26 }
  0x29   : > { %519 = vmatmul.mubr.f32.vlgmr.msra.gmra.mrb[0].mxu1 %v183_v27  ;;  %509 = vmatprep.mubr.f32.mxu0 %v176_v28 }
  0x2a   : > { %521 = vmatprep.mubr.f32.mxu1 %v184_v29 }
  0x2c   : > { %510 = vmatmul.mubr.f32.gmra.mrb[2].mxu0 %v177_v30 }
  0x2d   : > { %522 = vmatmul.mubr.f32.gmra.mrb[2].mxu1 %v185_v31  ;;  %512 = vmatprep.mubr.f32.mxu0 %v178_v32 }
  0x2e   : > { %524 = vmatprep.mubr.f32.mxu1 %v186_v33 }
  0x30   : > { %513 = vmatmul.mubr.f32.gmra.mrb[4].mxu0 %v179_v34 }
  0x31   : > { %525 = vmatmul.mubr.f32.gmra.mrb[4].mxu1 %v187_v35  ;;  %515 = vmatprep.mubr.f32.mxu0 %v180_v36 }
  0x32   : > { %527 = vmatprep.mubr.f32.mxu1 %v188_v37 }
  0x34   : > { %516 = vmatmul.mubr.f32.gmra.mrb[6].mxu0 %v181_v38 }
  0x35   : > { %528 = vmatmul.mubr.f32.gmra.mrb[6].mxu1 %v189_v39 }
  0xfb   : > { %v508_v41 = vpop.f32.mrb[0].mxu0 }
  0xfc   : > { %v520_v42 = vpop.f32.mrb[0].mxu1  ;;  %v285_v43 = vadd.f32 %v508_v41, %v439_v40  ;;  %v279_v45 = vpop.f32.mrb[1].mxu0 }
  0xfd   : > { %v325_v44 = vadd.f32 %v520_v42, %v439_v40  ;;  %v319_v46 = vpop.f32.mrb[1].mxu1  ;;  %v280_v47 = vadd.f32 %v439_v40, %v279_v45 }
  0xfe   : > { %v320_v48 = vadd.f32 %v439_v40, %v319_v46  ;;  %359 = vst [vmem:[%s704_s4 + $0x8] sm:$0xff] %v285_v43 }
  0xff   : > { %367 = vst [vmem:[%s704_s4 + $0x48] sm:$0xff] %v325_v44  ;;  %358 = vst [vmem:[%s704_s4] sm:$0xff] %v280_v47  ;;  %v511_v49 = vpop.f32.mrb[2].mxu0 }
 0x100   : > { %366 = vst [vmem:[%s704_s4 + $0x40] sm:$0xff] %v320_v48  ;;  %v523_v50 = vpop.f32.mrb[2].mxu1  ;;  %v295_v51 = vadd.f32 %v511_v49, %v439_v40  ;;  %v289_v53 = vpop.f32.mrb[3].mxu0 }
 0x101   : > { %v335_v52 = vadd.f32 %v523_v50, %v439_v40  ;;  %v329_v54 = vpop.f32.mrb[3].mxu1  ;;  %v290_v55 = vadd.f32 %v439_v40, %v289_v53 }
 0x102   : > { %v330_v56 = vadd.f32 %v439_v40, %v329_v54  ;;  %361 = vst [vmem:[%s704_s4 + $0x18] sm:$0xff] %v295_v51 }
 0x103   : > { %369 = vst [vmem:[%s704_s4 + $0x58] sm:$0xff] %v335_v52  ;;  %360 = vst [vmem:[%s704_s4 + $0x10] sm:$0xff] %v290_v55  ;;  %v514_v57 = vpop.f32.mrb[4].mxu0 }
 0x104   : > { %368 = vst [vmem:[%s704_s4 + $0x50] sm:$0xff] %v330_v56  ;;  %v526_v58 = vpop.f32.mrb[4].mxu1  ;;  %v305_v59 = vadd.f32 %v514_v57, %v439_v40  ;;  %v299_v61 = vpop.f32.mrb[5].mxu0 }
 0x105   : > { %v345_v60 = vadd.f32 %v526_v58, %v439_v40  ;;  %v339_v62 = vpop.f32.mrb[5].mxu1  ;;  %v300_v63 = vadd.f32 %v439_v40, %v299_v61 }
 0x106   : > { %v340_v0 = vadd.f32 %v439_v40, %v339_v62  ;;  %363 = vst [vmem:[%s704_s4 + $0x28] sm:$0xff] %v305_v59 }
 0x107   : > { %371 = vst [vmem:[%s704_s4 + $0x68] sm:$0xff] %v345_v60  ;;  %362 = vst [vmem:[%s704_s4 + $0x20] sm:$0xff] %v300_v63  ;;  %v517_v1 = vpop.f32.mrb[6].mxu0 }
 0x108   : > { %370 = vst [vmem:[%s704_s4 + $0x60] sm:$0xff] %v340_v0  ;;  %v529_v2 = vpop.f32.mrb[6].mxu1  ;;  %v315_v3 = vadd.f32 %v517_v1, %v439_v40  ;;  %v309_v5 = vpop.f32.mrb[7].mxu0 }
 0x109   : > { %v355_v4 = vadd.f32 %v529_v2, %v439_v40  ;;  %v349_v6 = vpop.f32.mrb[7].mxu1  ;;  %v310_v7 = vadd.f32 %v439_v40, %v309_v5 }
 0x10a   : > { %v350_v8 = vadd.f32 %v439_v40, %v349_v6  ;;  %365 = vst [vmem:[%s704_s4 + $0x38] sm:$0xff] %v315_v3 }
 0x10b   : > { %373 = vst [vmem:[%s704_s4 + $0x78] sm:$0xff] %v355_v4  ;;  %364 = vst [vmem:[%s704_s4 + $0x30] sm:$0xff] %v310_v7 }
 0x10c   : > { %372 = vst [vmem:[%s704_s4 + $0x70] sm:$0xff] %v350_v8 }
 0x10d PF: > { %s13_s12 = sadd.s32 1, %s592_s12  }
 0x10e   : > { %p10_p4 = scmp.ge.s32.totalorder %s13_s12, 4  }
 0x110   :  { %12 = sbr.rel (!%p10_p4) target bundleno = 1 (0x1), region = 62 }

</bundles_post_ra>
